<compile_context>
chip_gen: v7x
topology: tpu7x:2x2x1
jax: 0.10.0
libtpu: 0.0.40
codegen_flags: <defaults>
</compile_context>

<pallas_src>
import functools

import jax
import jax.numpy as jnp
from jax.experimental import pallas as pl
from jax.experimental.pallas import tpu as pltpu

EPS = 1e-5
NEG_BIG = -1e30          # additive key-padding bias; scores stay f32 so this never overflows
F32 = jnp.float32
BF16 = jnp.bfloat16
N_VEC_ROWS = 16          # rows in the packed bias/LN slab (row 12 = gate bias, 13..15 unused)


# ----------------------------- fused Pallas kernel -----------------------------

def _co_kernel(x_self_ref, x_other_ref, kb_self_ref, kb_other_ref,
               w_in_ref, w_kv_ref, w_out_ref, vec_ref,
               ffw_w1_ref, ffw_w2_ref, tff_w1_ref, tff_w2_ref, tff_b1_ref,
               gate_w_ref, o_ref, *, B, Lmax, H, E, F1, F2):
    """One grid step == one sequence branch (cross + parallel encoder + fusion gate)."""
    Dh = E // H
    scale = 1.0 / (Dh ** 0.5)

    x_s = x_self_ref[0]                       # (B*Lmax, E) f32, batch stacked on sublanes
    x_o = x_other_ref[0]                      # (B*Lmax, E) f32
    kb_s = kb_self_ref[0]                     # (B, Lmax)   f32 additive key bias (pad -> -1e30)
    kb_o = kb_other_ref[0]
    vec = vec_ref[0]                          # (N_VEC_ROWS, VW) f32: all biases + LN gamma/beta

    x_s_b = x_s.astype(BF16)
    x_o_b = x_o.astype(BF16)

    # ---- fused input projections (one matmul per LHS) ----
    # w_in columns: [Wq_cross | Wq_self | Wk_self | Wv_self]  -> 4E lanes
    proj_s = jnp.dot(x_s_b, w_in_ref[0], preferred_element_type=F32) + vec[0:1, :4 * E]
    # w_kv columns: [Wk_cross | Wv_cross]                      -> 2E lanes
    proj_o = jnp.dot(x_o_b, w_kv_ref[0], preferred_element_type=F32) + vec[1:2, :2 * E]

    q_c = proj_s[:, 0:E]
    q_p = proj_s[:, E:2 * E]
    k_p = proj_s[:, 2 * E:3 * E]
    v_p = proj_s[:, 3 * E:4 * E]
    k_c = proj_o[:, 0:E]
    v_c = proj_o[:, E:2 * E]

    def mha_core(q, k, v, key_bias):
        """Scaled-dot-product attention; only scores / P@V run per (batch, head)."""
        rows = []
        for b in range(B):
            r0 = b * Lmax
            qb = q[r0:r0 + Lmax].astype(BF16)
            kb = k[r0:r0 + Lmax].astype(BF16)
            vb = v[r0:r0 + Lmax].astype(BF16)
            bias = key_bias[b:b + 1, :]                       # (1, Lmax)
            ctx = []
            for h in range(H):
                c0 = h * Dh
                s = jax.lax.dot_general(
                    qb[:, c0:c0 + Dh], kb[:, c0:c0 + Dh],
                    (((1,), (1,)), ((), ())),
                    preferred_element_type=F32) * scale + bias
                s = s - jnp.max(s, axis=-1, keepdims=True)
                p = jnp.exp(s)
                p = p * pl.reciprocal(jnp.sum(p, axis=-1, keepdims=True), approx=True)
                ctx.append(jnp.dot(p.astype(BF16), vb[:, c0:c0 + Dh],
                                   preferred_element_type=F32))
            rows.append(jnp.concatenate(ctx, axis=-1))        # (Lmax, E)
        return jnp.concatenate(rows, axis=0)                  # (B*Lmax, E)

    ctx_c = mha_core(q_c, k_c, v_c, kb_o)   # cross attention: keys/values from the other sequence
    ctx_p = mha_core(q_p, k_p, v_p, kb_s)   # self attention inside transformer{1,2}

    # ---- output projections (rows of w_out: [Wo_cross ; Wo_self]) ----
    w_out = w_out_ref[0]
    attn_c = jnp.dot(ctx_c.astype(BF16), w_out[0:E], preferred_element_type=F32) + vec[2:3, 0:E]
    attn_p = jnp.dot(ctx_p.astype(BF16), w_out[E:2 * E], preferred_element_type=F32) + vec[2:3, E:2 * E]

    def layer_norm(h, row):
        g = vec[row:row + 1, 0:E]
        beta = vec[row + 1:row + 2, 0:E]
        mu = jnp.mean(h, axis=-1, keepdims=True)
        var = jnp.mean(jnp.square(h - mu), axis=-1, keepdims=True)
        return (h - mu) * jax.lax.rsqrt(var + EPS) * g + beta

    # ---- cross branch: LN -> FFN(F1) -> LN  (dropouts are eval-mode identities) ----
    h_c = layer_norm(x_s + attn_c, 4)
    ff = jnp.maximum(jnp.dot(h_c.astype(BF16), ffw_w1_ref[0], preferred_element_type=F32)
                     + vec[3:4, 0:F1], 0.0)
    ff = jnp.dot(ff.astype(BF16), ffw_w2_ref[0], preferred_element_type=F32) + vec[2:3, 2 * E:3 * E]
    c_out = layer_norm(h_c + ff, 6)

    # ---- parallel branch (TransformerEncoderLayer tail): LN -> FFN(F2) -> LN ----
    h_p = layer_norm(x_s + attn_p, 8)
    tf = jnp.maximum(jnp.dot(h_p.astype(BF16), tff_w1_ref[0], preferred_element_type=F32)
                     + tff_b1_ref[0], 0.0)
    tf = jnp.dot(tf.astype(BF16), tff_w2_ref[0], preferred_element_type=F32) + vec[2:3, 3 * E:4 * E]
    p_out = layer_norm(h_p + tf, 10)

    # ---- fusion gate: one (R, 2E) @ (2E, E) matmul ----
    gate_in = jnp.concatenate([c_out, p_out], axis=-1).astype(BF16)
    g = jax.nn.sigmoid(jnp.dot(gate_in, gate_w_ref[0], preferred_element_type=F32)
                       + vec[12:13, 0:E])
    o_ref[0] = (1.0 - g) * c_out + g * p_out


# ----------------------------- wrapper -----------------------------

def co_transformer_forward(packed, seqs1, seqs2, padding_mask1, padding_mask2, *, num_heads):
    """seqs: (L, B, E) f32; padding masks: (B, L) with 1.0 = padded (ignored) key."""
    L1, B, E = seqs1.shape
    L2 = seqs2.shape[0]
    Lmax = max(L1, L2)
    R = B * Lmax

    def stack_seq(x, L):
        xb = jnp.transpose(x, (1, 0, 2))                       # (B, L, E)
        xb = jnp.pad(xb, ((0, 0), (0, Lmax - L), (0, 0)))      # structural pad to Lmax
        return xb.reshape(R, E)

    def key_bias(pm, L):
        pm = jnp.pad(pm.astype(F32), ((0, 0), (0, Lmax - L)), constant_values=1.0)
        return pm * NEG_BIG                                    # (B, Lmax) additive bias

    x_stack = jnp.stack([stack_seq(seqs1, L1), stack_seq(seqs2, L2)])              # (2, R, E)
    kb_stack = jnp.stack([key_bias(padding_mask1, L1), key_bias(padding_mask2, L2)])  # (2, B, Lmax)

    F1 = packed[4].shape[-1]
    F2 = packed[6].shape[-1]

    def self_spec(p):
        return pl.BlockSpec((1,) + p.shape[1:], lambda s: (s, 0, 0))

    def other_spec(p):
        return pl.BlockSpec((1,) + p.shape[1:], lambda s: (1 - s, 0, 0))

    kernel = functools.partial(_co_kernel, B=B, Lmax=Lmax, H=num_heads, E=E, F1=F1, F2=F2)

    out = pl.pallas_call(
        kernel,
        grid=(2,),
        out_shape=jax.ShapeDtypeStruct((2, R, E), F32),
        in_specs=[self_spec(x_stack), other_spec(x_stack),
                  self_spec(kb_stack), other_spec(kb_stack)]
                 + [self_spec(p) for p in packed],
        out_specs=pl.BlockSpec((1, R, E), lambda s: (s, 0, 0)),
        compiler_params=pltpu.CompilerParams(dimension_semantics=("parallel",)),
    )(x_stack, x_stack, kb_stack, kb_stack, *packed)

    o1 = jnp.transpose(out[0].reshape(B, Lmax, E)[:, :L1], (1, 0, 2))
    o2 = jnp.transpose(out[1].reshape(B, Lmax, E)[:, :L2], (1, 0, 2))
    return o1, o2


# ----------------------------- parameter init / packing -----------------------------

def _dense(key, fan_in, fan_out):
    kw, kb = jax.random.split(key)
    lim = 1.0 / (fan_in ** 0.5)
    w = jax.random.uniform(kw, (fan_in, fan_out), F32, -lim, lim)
    b = jax.random.uniform(kb, (fan_out,), F32, -lim, lim)
    return w, b


def _mha_params(key, E, prefix, params):
    ks = jax.random.split(key, 4)
    for name, k in zip(("q", "k", "v"), ks[:3]):
        w, b = _dense(k, E, E)
        params[f"{prefix}_w{name}"] = w
        params[f"{prefix}_b{name}"] = b
    wo, bo = _dense(ks[3], E, E)
    params[f"{prefix}_wo"] = wo
    params[f"{prefix}_bo"] = bo


def _ffn_params(key, E, F, prefix, params):
    k1, k2 = jax.random.split(key)
    params[f"{prefix}_w1"], params[f"{prefix}_b1"] = _dense(k1, E, F)
    params[f"{prefix}_w2"], params[f"{prefix}_b2"] = _dense(k2, F, E)


def init_params(key, E, dim_feedforward, transformer_ff=2048):
    # transformer1/2 use nn.TransformerEncoderLayer's default dim_feedforward=2048.
    ks = jax.random.split(key, 10)
    params = {}
    _mha_params(ks[0], E, "attn1", params)
    _mha_params(ks[1], E, "attn2", params)
    _mha_params(ks[2], E, "t1_attn", params)
    _mha_params(ks[3], E, "t2_attn", params)
    for ln in ("ln11", "ln12", "ln21", "ln22", "t1_ln1", "t1_ln2", "t2_ln1", "t2_ln2"):
        params[f"{ln}_g"] = jnp.ones((E,), F32)
        params[f"{ln}_b"] = jnp.zeros((E,), F32)
    _ffn_params(ks[4], E, dim_feedforward, "ffw1", params)
    _ffn_params(ks[5], E, dim_feedforward, "ffw2", params)
    _ffn_params(ks[6], E, transformer_ff, "t1_ff", params)
    _ffn_params(ks[7], E, transformer_ff, "t2_ff", params)
    for gk, g in zip((ks[8], ks[9]), ("g1", "g2")):
        w, b = _dense(gk, 2 * E, E)
        params[f"{g}_w"] = w
        params[f"{g}_b"] = b
    return params


def quantize_weights(params):
    """Weights are deployed in bf16; keep canonical params at the same (bf16-rounded) values."""
    return {k: (v.astype(BF16).astype(F32) if v.ndim == 2 else v) for k, v in params.items()}


def pack_params(params, E, F1, F2):
    """Pack per-branch parameters into 10 lane-dense slabs with a leading branch dim of 2."""
    VW = ((max(4 * E, F1, 128) + 127) // 128) * 128

    def branch(s):
        cr, se = f"attn{s}", f"t{s}_attn"
        w_in = jnp.concatenate([params[f"{cr}_wq"], params[f"{se}_wq"],
                                params[f"{se}_wk"], params[f"{se}_wv"]], axis=1)   # (E, 4E)
        w_kv = jnp.concatenate([params[f"{cr}_wk"], params[f"{cr}_wv"]], axis=1)   # (E, 2E)
        w_out = jnp.concatenate([params[f"{cr}_wo"], params[f"{se}_wo"]], axis=0)  # (2E, E)

        def row(pieces):
            v = jnp.concatenate(pieces)
            return jnp.pad(v, (0, VW - v.shape[0]))

        rows = [
            row([params[f"{cr}_bq"], params[f"{se}_bq"], params[f"{se}_bk"], params[f"{se}_bv"]]),
            row([params[f"{cr}_bk"], params[f"{cr}_bv"]]),
            row([params[f"{cr}_bo"], params[f"{se}_bo"],
                 params[f"ffw{s}_b2"], params[f"t{s}_ff_b2"]]),
            row([params[f"ffw{s}_b1"]]),
            row([params[f"ln{s}1_g"]]), row([params[f"ln{s}1_b"]]),
            row([params[f"ln{s}2_g"]]), row([params[f"ln{s}2_b"]]),
            row([params[f"t{s}_ln1_g"]]), row([params[f"t{s}_ln1_b"]]),
            row([params[f"t{s}_ln2_g"]]), row([params[f"t{s}_ln2_b"]]),
            row([params[f"g{s}_b"]]),
        ]
        rows += [jnp.zeros((VW,), F32)] * (N_VEC_ROWS - len(rows))
        vec = jnp.stack(rows)                                                      # (16, VW) f32
        return (w_in.astype(BF16), w_kv.astype(BF16), w_out.astype(BF16), vec,
                params[f"ffw{s}_w1"].astype(BF16), params[f"ffw{s}_w2"].astype(BF16),
                params[f"t{s}_ff_w1"].astype(BF16), params[f"t{s}_ff_w2"].astype(BF16),
                params[f"t{s}_ff_b1"].reshape(1, F2).astype(F32),
                params[f"g{s}_w"].astype(BF16))

    b1, b2 = branch(1), branch(2)
    return tuple(jnp.stack([a, b]) for a, b in zip(b1, b2))


# ----------------------------- pure-JAX reference (for verification) -----------------------------

def reference_forward(params, seqs1, seqs2, pm1, pm2, num_heads):
    E = seqs1.shape[-1]
    H = num_heads
    Dh = E // H

    def mha(xq, xkv, mask, pfx):
        Lq, B, _ = xq.shape
        Lk = xkv.shape[0]
        q = (xq @ params[pfx + "_wq"] + params[pfx + "_bq"]).reshape(Lq, B, H, Dh).transpose(1, 2, 0, 3)
        k = (xkv @ params[pfx + "_wk"] + params[pfx + "_bk"]).reshape(Lk, B, H, Dh).transpose(1, 2, 0, 3)
        v = (xkv @ params[pfx + "_wv"] + params[pfx + "_bv"]).reshape(Lk, B, H, Dh).transpose(1, 2, 0, 3)
        s = jnp.einsum("bhqd,bhkd->bhqk", q, k) / (Dh ** 0.5)
        s = s + (mask.astype(F32) * NEG_BIG)[:, None, None, :]
        p = jax.nn.softmax(s, axis=-1)
        o = jnp.einsum("bhqk,bhkd->bhqd", p, v).transpose(2, 0, 1, 3).reshape(Lq, B, E)
        return o @ params[pfx + "_wo"] + params[pfx + "_bo"]

    def ln(h, pfx):
        mu = h.mean(-1, keepdims=True)
        var = ((h - mu) ** 2).mean(-1, keepdims=True)
        return (h - mu) / jnp.sqrt(var + EPS) * params[pfx + "_g"] + params[pfx + "_b"]

    def ffn(x, pfx):
        h = jnp.maximum(x @ params[pfx + "_w1"] + params[pfx + "_b1"], 0.0)
        return h @ params[pfx + "_w2"] + params[pfx + "_b2"]

    def enc(x, a, ln1, ln2, ff):
        h = ln(x + a, ln1)
        return ln(h + ffn(h, ff), ln2)

    def fuse(c, p, pfx):
        g = jax.nn.sigmoid(jnp.concatenate([c, p], -1) @ params[pfx + "_w"] + params[pfx + "_b"])
        return (1.0 - g) * c + g * p

    c1 = enc(seqs1, mha(seqs1, seqs2, pm2, "attn1"), "ln11", "ln12", "ffw1")
    c2 = enc(seqs2, mha(seqs2, seqs1, pm1, "attn2"), "ln21", "ln22", "ffw2")
    p1 = enc(seqs1, mha(seqs1, seqs1, pm1, "t1_attn"), "t1_ln1", "t1_ln2", "t1_ff")
    p2 = enc(seqs2, mha(seqs2, seqs2, pm2, "t2_attn"), "t2_ln1", "t2_ln2", "t2_ff")
    return fuse(c1, p1, "g1"), fuse(c2, p2, "g2")


# ----------------------------- main -----------------------------

if __name__ == "__main__":
    E, H = 32, 4
    dim_feedforward = 64
    L1, L2, B = 8, 6, 2
    assert E % H == 0

    key = jax.random.PRNGKey(0)
    k1, k2, kp = jax.random.split(key, 3)
    seqs1 = jax.random.normal(k1, (L1, B, E), F32)
    seqs2 = jax.random.normal(k2, (L2, B, E), F32)
    # key_padding_mask: 1.0 => padded / ignored key position (PyTorch bool-True semantics)
    padding_mask1 = jnp.zeros((B, L1), F32).at[1, L1 - 2:].set(1.0)
    padding_mask2 = jnp.zeros((B, L2), F32).at[0, L2 - 1:].set(1.0)

    params = quantize_weights(init_params(kp, E, dim_feedforward))
    packed = pack_params(params, E, dim_feedforward, params["t1_ff_w1"].shape[-1])

    fwd = jax.jit(functools.partial(co_transformer_forward, num_heads=H))
    out1, out2 = fwd(packed, seqs1, seqs2, padding_mask1, padding_mask2)
    jax.block_until_ready((out1, out2))

    assert out1.shape == (L1, B, E) and out2.shape == (L2, B, E)
    assert bool(jnp.all(jnp.isfinite(out1))) and bool(jnp.all(jnp.isfinite(out2)))

    ref1, ref2 = reference_forward(params, seqs1, seqs2, padding_mask1, padding_mask2, H)
    err = max(float(jnp.max(jnp.abs(out1 - ref1))),
              float(jnp.max(jnp.abs(out2 - ref2))))
    assert err < 5e-2, f"kernel vs jnp reference max abs err = {err}"

    print("KERNEL_OK")
</pallas_src>

<mosaic_0001>
module attributes {stable_mosaic.version = 11 : i64} {
  func.func @_co_kernel(%arg0: i32, %arg1: memref<1x16x32xf32, #tpu.memory_space<vmem>>, %arg2: memref<1x16x32xf32, #tpu.memory_space<vmem>>, %arg3: memref<1x2x8xf32, #tpu.memory_space<vmem>>, %arg4: memref<1x2x8xf32, #tpu.memory_space<vmem>>, %arg5: memref<1x32x128xbf16, #tpu.memory_space<vmem>>, %arg6: memref<1x32x64xbf16, #tpu.memory_space<vmem>>, %arg7: memref<1x64x32xbf16, #tpu.memory_space<vmem>>, %arg8: memref<1x16x128xf32, #tpu.memory_space<vmem>>, %arg9: memref<1x32x64xbf16, #tpu.memory_space<vmem>>, %arg10: memref<1x64x32xbf16, #tpu.memory_space<vmem>>, %arg11: memref<1x32x2048xbf16, #tpu.memory_space<vmem>>, %arg12: memref<1x2048x32xbf16, #tpu.memory_space<vmem>>, %arg13: memref<1x1x2048xf32, #tpu.memory_space<vmem>>, %arg14: memref<1x64x32xbf16, #tpu.memory_space<vmem>>, %arg15: memref<1x16x32xf32, #tpu.memory_space<vmem>>) attributes {dimension_semantics = [#tpu.dimension_semantics<parallel>], iteration_bounds = array<i64: 2>, scalar_prefetch = 0 : i64, scratch_operands = 0 : i64, tpu.core_type = #tpu.core_type<tc>, window_params = [{transform_indices = @transform_0, window_bounds = array<i64: 1, 16, 32>}, {transform_indices = @transform_1, window_bounds = array<i64: 1, 16, 32>}, {transform_indices = @transform_2, window_bounds = array<i64: 1, 2, 8>}, {transform_indices = @transform_3, window_bounds = array<i64: 1, 2, 8>}, {transform_indices = @transform_4, window_bounds = array<i64: 1, 32, 128>}, {transform_indices = @transform_5, window_bounds = array<i64: 1, 32, 64>}, {transform_indices = @transform_6, window_bounds = array<i64: 1, 64, 32>}, {transform_indices = @transform_7, window_bounds = array<i64: 1, 16, 128>}, {transform_indices = @transform_8, window_bounds = array<i64: 1, 32, 64>}, {transform_indices = @transform_9, window_bounds = array<i64: 1, 64, 32>}, {transform_indices = @transform_10, window_bounds = array<i64: 1, 32, 2048>}, {transform_indices = @transform_11, window_bounds = array<i64: 1, 2048, 32>}, {transform_indices = @transform_12, window_bounds = array<i64: 1, 1, 2048>}, {transform_indices = @transform_13, window_bounds = array<i64: 1, 64, 32>}, {transform_indices = @transform_14, window_bounds = array<i64: 1, 16, 32>}]} {
    %c0 = arith.constant 0 : index
    %c0_0 = arith.constant 0 : index
    %c0_1 = arith.constant 0 : index
    %0 = vector.load %arg1[%c0, %c0_0, %c0_1] : memref<1x16x32xf32, #tpu.memory_space<vmem>>, vector<1x16x32xf32>
    %1 = vector.shape_cast %0 : vector<1x16x32xf32> to vector<16x32xf32>
    %c0_2 = arith.constant 0 : index
    %c0_3 = arith.constant 0 : index
    %c0_4 = arith.constant 0 : index
    %2 = vector.load %arg2[%c0_2, %c0_3, %c0_4] : memref<1x16x32xf32, #tpu.memory_space<vmem>>, vector<1x16x32xf32>
    %3 = vector.shape_cast %2 : vector<1x16x32xf32> to vector<16x32xf32>
    %c0_5 = arith.constant 0 : index
    %c0_6 = arith.constant 0 : index
    %c0_7 = arith.constant 0 : index
    %4 = vector.load %arg3[%c0_5, %c0_6, %c0_7] : memref<1x2x8xf32, #tpu.memory_space<vmem>>, vector<1x2x8xf32>
    %5 = vector.shape_cast %4 : vector<1x2x8xf32> to vector<2x8xf32>
    %c0_8 = arith.constant 0 : index
    %c0_9 = arith.constant 0 : index
    %c0_10 = arith.constant 0 : index
    %6 = vector.load %arg4[%c0_8, %c0_9, %c0_10] : memref<1x2x8xf32, #tpu.memory_space<vmem>>, vector<1x2x8xf32>
    %7 = vector.shape_cast %6 : vector<1x2x8xf32> to vector<2x8xf32>
    %c0_11 = arith.constant 0 : index
    %c0_12 = arith.constant 0 : index
    %c0_13 = arith.constant 0 : index
    %8 = vector.load %arg8[%c0_11, %c0_12, %c0_13] : memref<1x16x128xf32, #tpu.memory_space<vmem>>, vector<1x16x128xf32>
    %9 = vector.shape_cast %8 : vector<1x16x128xf32> to vector<16x128xf32>
    %10 = arith.truncf %1 : vector<16x32xf32> to vector<16x32xbf16>
    %11 = arith.truncf %3 : vector<16x32xf32> to vector<16x32xbf16>
    %c0_14 = arith.constant 0 : index
    %c0_15 = arith.constant 0 : index
    %c0_16 = arith.constant 0 : index
    %12 = vector.load %arg5[%c0_14, %c0_15, %c0_16] : memref<1x32x128xbf16, #tpu.memory_space<vmem>>, vector<1x32x128xbf16>
    %13 = vector.shape_cast %12 : vector<1x32x128xbf16> to vector<32x128xbf16>
    %cst = arith.constant dense<0.000000e+00> : vector<16x128xf32>
    %14 = tpu.matmul %10, %13, %cst {dimension_numbers = #tpu.dot_dimension_numbers<[1], [0], [0], [1], [0, 0, 1, 1], [], []>} : vector<16x32xbf16>, vector<32x128xbf16>, vector<16x128xf32> -> vector<16x128xf32>
    %15 = vector.extract_strided_slice %9 {offsets = [0, 0], sizes = [1, 128], strides = [1, 1]} : vector<16x128xf32> to vector<1x128xf32>
    %16 = vector.broadcast %15 : vector<1x128xf32> to vector<16x128xf32>
    %17 = arith.addf %14, %16 : vector<16x128xf32>
    %c0_17 = arith.constant 0 : index
    %c0_18 = arith.constant 0 : index
    %c0_19 = arith.constant 0 : index
    %18 = vector.load %arg6[%c0_17, %c0_18, %c0_19] : memref<1x32x64xbf16, #tpu.memory_space<vmem>>, vector<1x32x64xbf16>
    %19 = vector.shape_cast %18 : vector<1x32x64xbf16> to vector<32x64xbf16>
    %cst_20 = arith.constant dense<0.000000e+00> : vector<16x64xf32>
    %20 = tpu.matmul %11, %19, %cst_20 {dimension_numbers = #tpu.dot_dimension_numbers<[1], [0], [0], [1], [0, 0, 1, 1], [], []>} : vector<16x32xbf16>, vector<32x64xbf16>, vector<16x64xf32> -> vector<16x64xf32>
    %21 = vector.extract_strided_slice %9 {offsets = [1, 0], sizes = [1, 64], strides = [1, 1]} : vector<16x128xf32> to vector<1x64xf32>
    %22 = vector.broadcast %21 : vector<1x64xf32> to vector<16x64xf32>
    %23 = arith.addf %20, %22 : vector<16x64xf32>
    %24 = vector.extract_strided_slice %17 {offsets = [0, 0], sizes = [16, 32], strides = [1, 1]} : vector<16x128xf32> to vector<16x32xf32>
    %25 = vector.extract_strided_slice %17 {offsets = [0, 32], sizes = [16, 32], strides = [1, 1]} : vector<16x128xf32> to vector<16x32xf32>
    %26 = vector.extract_strided_slice %17 {offsets = [0, 64], sizes = [16, 32], strides = [1, 1]} : vector<16x128xf32> to vector<16x32xf32>
    %27 = vector.extract_strided_slice %17 {offsets = [0, 96], sizes = [16, 32], strides = [1, 1]} : vector<16x128xf32> to vector<16x32xf32>
    %28 = vector.extract_strided_slice %23 {offsets = [0, 0], sizes = [16, 32], strides = [1, 1]} : vector<16x64xf32> to vector<16x32xf32>
    %29 = vector.extract_strided_slice %23 {offsets = [0, 32], sizes = [16, 32], strides = [1, 1]} : vector<16x64xf32> to vector<16x32xf32>
    %30 = vector.extract_strided_slice %24 {offsets = [0, 0], sizes = [8, 32], strides = [1, 1]} : vector<16x32xf32> to vector<8x32xf32>
    %31 = arith.truncf %30 : vector<8x32xf32> to vector<8x32xbf16>
    %32 = vector.extract_strided_slice %28 {offsets = [0, 0], sizes = [8, 32], strides = [1, 1]} : vector<16x32xf32> to vector<8x32xf32>
    %33 = arith.truncf %32 : vector<8x32xf32> to vector<8x32xbf16>
    %34 = vector.extract_strided_slice %29 {offsets = [0, 0], sizes = [8, 32], strides = [1, 1]} : vector<16x32xf32> to vector<8x32xf32>
    %35 = arith.truncf %34 : vector<8x32xf32> to vector<8x32xbf16>
    %36 = vector.extract_strided_slice %7 {offsets = [0, 0], sizes = [1, 8], strides = [1, 1]} : vector<2x8xf32> to vector<1x8xf32>
    %37 = vector.extract_strided_slice %31 {offsets = [0, 0], sizes = [8, 8], strides = [1, 1]} : vector<8x32xbf16> to vector<8x8xbf16>
    %38 = vector.extract_strided_slice %33 {offsets = [0, 0], sizes = [8, 8], strides = [1, 1]} : vector<8x32xbf16> to vector<8x8xbf16>
    %cst_21 = arith.constant dense<0.000000e+00> : vector<8x8xf32>
    %39 = tpu.matmul %37, %38, %cst_21 {dimension_numbers = #tpu.dot_dimension_numbers<[1], [1], [0], [0], [0, 0, 1, 0], [], []>} : vector<8x8xbf16>, vector<8x8xbf16>, vector<8x8xf32> -> vector<8x8xf32>
    %cst_22 = arith.constant 0.353553385 : f32
    %40 = vector.broadcast %cst_22 : f32 to vector<8x8xf32>
    %41 = arith.mulf %39, %40 : vector<8x8xf32>
    %42 = vector.broadcast %36 : vector<1x8xf32> to vector<8x8xf32>
    %43 = arith.addf %41, %42 : vector<8x8xf32>
    %cst_23 = arith.constant dense<0xFF800000> : vector<8xf32>
    %44 = vector.multi_reduction <maximumf>, %43, %cst_23 [1] : vector<8x8xf32> to vector<8xf32>
    %45 = vector.shape_cast %44 : vector<8xf32> to vector<8x1xf32>
    %46 = vector.broadcast %45 : vector<8x1xf32> to vector<8x8xf32>
    %47 = arith.subf %43, %46 : vector<8x8xf32>
    %48 = math.exp %47 : vector<8x8xf32>
    %cst_24 = arith.constant dense<0.000000e+00> : vector<8xf32>
    %49 = vector.multi_reduction <add>, %48, %cst_24 [1] : vector<8x8xf32> to vector<8xf32>
    %50 = vector.shape_cast %49 : vector<8xf32> to vector<8x1xf32>
    %51 = tpu.reciprocal %50 {approx = true} : vector<8x1xf32> -> vector<8x1xf32>
    %52 = vector.broadcast %51 : vector<8x1xf32> to vector<8x8xf32>
    %53 = arith.mulf %48, %52 : vector<8x8xf32>
    %54 = arith.truncf %53 : vector<8x8xf32> to vector<8x8xbf16>
    %55 = vector.extract_strided_slice %35 {offsets = [0, 0], sizes = [8, 8], strides = [1, 1]} : vector<8x32xbf16> to vector<8x8xbf16>
    %cst_25 = arith.constant dense<0.000000e+00> : vector<8x8xf32>
    %56 = tpu.matmul %54, %55, %cst_25 {dimension_numbers = #tpu.dot_dimension_numbers<[1], [0], [0], [1], [0, 0, 1, 1], [], []>} : vector<8x8xbf16>, vector<8x8xbf16>, vector<8x8xf32> -> vector<8x8xf32>
    %57 = vector.extract_strided_slice %31 {offsets = [0, 8], sizes = [8, 8], strides = [1, 1]} : vector<8x32xbf16> to vector<8x8xbf16>
    %58 = vector.extract_strided_slice %33 {offsets = [0, 8], sizes = [8, 8], strides = [1, 1]} : vector<8x32xbf16> to vector<8x8xbf16>
    %cst_26 = arith.constant dense<0.000000e+00> : vector<8x8xf32>
    %59 = tpu.matmul %57, %58, %cst_26 {dimension_numbers = #tpu.dot_dimension_numbers<[1], [1], [0], [0], [0, 0, 1, 0], [], []>} : vector<8x8xbf16>, vector<8x8xbf16>, vector<8x8xf32> -> vector<8x8xf32>
    %cst_27 = arith.constant 0.353553385 : f32
    %60 = vector.broadcast %cst_27 : f32 to vector<8x8xf32>
    %61 = arith.mulf %59, %60 : vector<8x8xf32>
    %62 = vector.broadcast %36 : vector<1x8xf32> to vector<8x8xf32>
    %63 = arith.addf %61, %62 : vector<8x8xf32>
    %cst_28 = arith.constant dense<0xFF800000> : vector<8xf32>
    %64 = vector.multi_reduction <maximumf>, %63, %cst_28 [1] : vector<8x8xf32> to vector<8xf32>
    %65 = vector.shape_cast %64 : vector<8xf32> to vector<8x1xf32>
    %66 = vector.broadcast %65 : vector<8x1xf32> to vector<8x8xf32>
    %67 = arith.subf %63, %66 : vector<8x8xf32>
    %68 = math.exp %67 : vector<8x8xf32>
    %cst_29 = arith.constant dense<0.000000e+00> : vector<8xf32>
    %69 = vector.multi_reduction <add>, %68, %cst_29 [1] : vector<8x8xf32> to vector<8xf32>
    %70 = vector.shape_cast %69 : vector<8xf32> to vector<8x1xf32>
    %71 = tpu.reciprocal %70 {approx = true} : vector<8x1xf32> -> vector<8x1xf32>
    %72 = vector.broadcast %71 : vector<8x1xf32> to vector<8x8xf32>
    %73 = arith.mulf %68, %72 : vector<8x8xf32>
    %74 = arith.truncf %73 : vector<8x8xf32> to vector<8x8xbf16>
    %75 = vector.extract_strided_slice %35 {offsets = [0, 8], sizes = [8, 8], strides = [1, 1]} : vector<8x32xbf16> to vector<8x8xbf16>
    %cst_30 = arith.constant dense<0.000000e+00> : vector<8x8xf32>
    %76 = tpu.matmul %74, %75, %cst_30 {dimension_numbers = #tpu.dot_dimension_numbers<[1], [0], [0], [1], [0, 0, 1, 1], [], []>} : vector<8x8xbf16>, vector<8x8xbf16>, vector<8x8xf32> -> vector<8x8xf32>
    %77 = vector.extract_strided_slice %31 {offsets = [0, 16], sizes = [8, 8], strides = [1, 1]} : vector<8x32xbf16> to vector<8x8xbf16>
    %78 = vector.extract_strided_slice %33 {offsets = [0, 16], sizes = [8, 8], strides = [1, 1]} : vector<8x32xbf16> to vector<8x8xbf16>
    %cst_31 = arith.constant dense<0.000000e+00> : vector<8x8xf32>
    %79 = tpu.matmul %77, %78, %cst_31 {dimension_numbers = #tpu.dot_dimension_numbers<[1], [1], [0], [0], [0, 0, 1, 0], [], []>} : vector<8x8xbf16>, vector<8x8xbf16>, vector<8x8xf32> -> vector<8x8xf32>
    %cst_32 = arith.constant 0.353553385 : f32
    %80 = vector.broadcast %cst_32 : f32 to vector<8x8xf32>
    %81 = arith.mulf %79, %80 : vector<8x8xf32>
    %82 = vector.broadcast %36 : vector<1x8xf32> to vector<8x8xf32>
    %83 = arith.addf %81, %82 : vector<8x8xf32>
    %cst_33 = arith.constant dense<0xFF800000> : vector<8xf32>
    %84 = vector.multi_reduction <maximumf>, %83, %cst_33 [1] : vector<8x8xf32> to vector<8xf32>
    %85 = vector.shape_cast %84 : vector<8xf32> to vector<8x1xf32>
    %86 = vector.broadcast %85 : vector<8x1xf32> to vector<8x8xf32>
    %87 = arith.subf %83, %86 : vector<8x8xf32>
    %88 = math.exp %87 : vector<8x8xf32>
    %cst_34 = arith.constant dense<0.000000e+00> : vector<8xf32>
    %89 = vector.multi_reduction <add>, %88, %cst_34 [1] : vector<8x8xf32> to vector<8xf32>
    %90 = vector.shape_cast %89 : vector<8xf32> to vector<8x1xf32>
    %91 = tpu.reciprocal %90 {approx = true} : vector<8x1xf32> -> vector<8x1xf32>
    %92 = vector.broadcast %91 : vector<8x1xf32> to vector<8x8xf32>
    %93 = arith.mulf %88, %92 : vector<8x8xf32>
    %94 = arith.truncf %93 : vector<8x8xf32> to vector<8x8xbf16>
    %95 = vector.extract_strided_slice %35 {offsets = [0, 16], sizes = [8, 8], strides = [1, 1]} : vector<8x32xbf16> to vector<8x8xbf16>
    %cst_35 = arith.constant dense<0.000000e+00> : vector<8x8xf32>
    %96 = tpu.matmul %94, %95, %cst_35 {dimension_numbers = #tpu.dot_dimension_numbers<[1], [0], [0], [1], [0, 0, 1, 1], [], []>} : vector<8x8xbf16>, vector<8x8xbf16>, vector<8x8xf32> -> vector<8x8xf32>
    %97 = vector.extract_strided_slice %31 {offsets = [0, 24], sizes = [8, 8], strides = [1, 1]} : vector<8x32xbf16> to vector<8x8xbf16>
    %98 = vector.extract_strided_slice %33 {offsets = [0, 24], sizes = [8, 8], strides = [1, 1]} : vector<8x32xbf16> to vector<8x8xbf16>
    %cst_36 = arith.constant dense<0.000000e+00> : vector<8x8xf32>
    %99 = tpu.matmul %97, %98, %cst_36 {dimension_numbers = #tpu.dot_dimension_numbers<[1], [1], [0], [0], [0, 0, 1, 0], [], []>} : vector<8x8xbf16>, vector<8x8xbf16>, vector<8x8xf32> -> vector<8x8xf32>
    %cst_37 = arith.constant 0.353553385 : f32
    %100 = vector.broadcast %cst_37 : f32 to vector<8x8xf32>
    %101 = arith.mulf %99, %100 : vector<8x8xf32>
    %102 = vector.broadcast %36 : vector<1x8xf32> to vector<8x8xf32>
    %103 = arith.addf %101, %102 : vector<8x8xf32>
    %cst_38 = arith.constant dense<0xFF800000> : vector<8xf32>
    %104 = vector.multi_reduction <maximumf>, %103, %cst_38 [1] : vector<8x8xf32> to vector<8xf32>
    %105 = vector.shape_cast %104 : vector<8xf32> to vector<8x1xf32>
    %106 = vector.broadcast %105 : vector<8x1xf32> to vector<8x8xf32>
    %107 = arith.subf %103, %106 : vector<8x8xf32>
    %108 = math.exp %107 : vector<8x8xf32>
    %cst_39 = arith.constant dense<0.000000e+00> : vector<8xf32>
    %109 = vector.multi_reduction <add>, %108, %cst_39 [1] : vector<8x8xf32> to vector<8xf32>
    %110 = vector.shape_cast %109 : vector<8xf32> to vector<8x1xf32>
    %111 = tpu.reciprocal %110 {approx = true} : vector<8x1xf32> -> vector<8x1xf32>
    %112 = vector.broadcast %111 : vector<8x1xf32> to vector<8x8xf32>
    %113 = arith.mulf %108, %112 : vector<8x8xf32>
    %114 = arith.truncf %113 : vector<8x8xf32> to vector<8x8xbf16>
    %115 = vector.extract_strided_slice %35 {offsets = [0, 24], sizes = [8, 8], strides = [1, 1]} : vector<8x32xbf16> to vector<8x8xbf16>
    %cst_40 = arith.constant dense<0.000000e+00> : vector<8x8xf32>
    %116 = tpu.matmul %114, %115, %cst_40 {dimension_numbers = #tpu.dot_dimension_numbers<[1], [0], [0], [1], [0, 0, 1, 1], [], []>} : vector<8x8xbf16>, vector<8x8xbf16>, vector<8x8xf32> -> vector<8x8xf32>
    %117 = tpu.concatenate %56, %76, %96, %116 in 1 : vector<8x8xf32>, vector<8x8xf32>, vector<8x8xf32>, vector<8x8xf32> -> vector<8x32xf32>
    %118 = vector.extract_strided_slice %24 {offsets = [8, 0], sizes = [8, 32], strides = [1, 1]} : vector<16x32xf32> to vector<8x32xf32>
    %119 = arith.truncf %118 : vector<8x32xf32> to vector<8x32xbf16>
    %120 = vector.extract_strided_slice %28 {offsets = [8, 0], sizes = [8, 32], strides = [1, 1]} : vector<16x32xf32> to vector<8x32xf32>
    %121 = arith.truncf %120 : vector<8x32xf32> to vector<8x32xbf16>
    %122 = vector.extract_strided_slice %29 {offsets = [8, 0], sizes = [8, 32], strides = [1, 1]} : vector<16x32xf32> to vector<8x32xf32>
    %123 = arith.truncf %122 : vector<8x32xf32> to vector<8x32xbf16>
    %124 = vector.extract_strided_slice %7 {offsets = [1, 0], sizes = [1, 8], strides = [1, 1]} : vector<2x8xf32> to vector<1x8xf32>
    %125 = vector.extract_strided_slice %119 {offsets = [0, 0], sizes = [8, 8], strides = [1, 1]} : vector<8x32xbf16> to vector<8x8xbf16>
    %126 = vector.extract_strided_slice %121 {offsets = [0, 0], sizes = [8, 8], strides = [1, 1]} : vector<8x32xbf16> to vector<8x8xbf16>
    %cst_41 = arith.constant dense<0.000000e+00> : vector<8x8xf32>
    %127 = tpu.matmul %125, %126, %cst_41 {dimension_numbers = #tpu.dot_dimension_numbers<[1], [1], [0], [0], [0, 0, 1, 0], [], []>} : vector<8x8xbf16>, vector<8x8xbf16>, vector<8x8xf32> -> vector<8x8xf32>
    %cst_42 = arith.constant 0.353553385 : f32
    %128 = vector.broadcast %cst_42 : f32 to vector<8x8xf32>
    %129 = arith.mulf %127, %128 : vector<8x8xf32>
    %130 = vector.broadcast %124 : vector<1x8xf32> to vector<8x8xf32>
    %131 = arith.addf %129, %130 : vector<8x8xf32>
    %cst_43 = arith.constant dense<0xFF800000> : vector<8xf32>
    %132 = vector.multi_reduction <maximumf>, %131, %cst_43 [1] : vector<8x8xf32> to vector<8xf32>
    %133 = vector.shape_cast %132 : vector<8xf32> to vector<8x1xf32>
    %134 = vector.broadcast %133 : vector<8x1xf32> to vector<8x8xf32>
    %135 = arith.subf %131, %134 : vector<8x8xf32>
    %136 = math.exp %135 : vector<8x8xf32>
    %cst_44 = arith.constant dense<0.000000e+00> : vector<8xf32>
    %137 = vector.multi_reduction <add>, %136, %cst_44 [1] : vector<8x8xf32> to vector<8xf32>
    %138 = vector.shape_cast %137 : vector<8xf32> to vector<8x1xf32>
    %139 = tpu.reciprocal %138 {approx = true} : vector<8x1xf32> -> vector<8x1xf32>
    %140 = vector.broadcast %139 : vector<8x1xf32> to vector<8x8xf32>
    %141 = arith.mulf %136, %140 : vector<8x8xf32>
    %142 = arith.truncf %141 : vector<8x8xf32> to vector<8x8xbf16>
    %143 = vector.extract_strided_slice %123 {offsets = [0, 0], sizes = [8, 8], strides = [1, 1]} : vector<8x32xbf16> to vector<8x8xbf16>
    %cst_45 = arith.constant dense<0.000000e+00> : vector<8x8xf32>
    %144 = tpu.matmul %142, %143, %cst_45 {dimension_numbers = #tpu.dot_dimension_numbers<[1], [0], [0], [1], [0, 0, 1, 1], [], []>} : vector<8x8xbf16>, vector<8x8xbf16>, vector<8x8xf32> -> vector<8x8xf32>
    %145 = vector.extract_strided_slice %119 {offsets = [0, 8], sizes = [8, 8], strides = [1, 1]} : vector<8x32xbf16> to vector<8x8xbf16>
    %146 = vector.extract_strided_slice %121 {offsets = [0, 8], sizes = [8, 8], strides = [1, 1]} : vector<8x32xbf16> to vector<8x8xbf16>
    %cst_46 = arith.constant dense<0.000000e+00> : vector<8x8xf32>
    %147 = tpu.matmul %145, %146, %cst_46 {dimension_numbers = #tpu.dot_dimension_numbers<[1], [1], [0], [0], [0, 0, 1, 0], [], []>} : vector<8x8xbf16>, vector<8x8xbf16>, vector<8x8xf32> -> vector<8x8xf32>
    %cst_47 = arith.constant 0.353553385 : f32
    %148 = vector.broadcast %cst_47 : f32 to vector<8x8xf32>
    %149 = arith.mulf %147, %148 : vector<8x8xf32>
    %150 = vector.broadcast %124 : vector<1x8xf32> to vector<8x8xf32>
    %151 = arith.addf %149, %150 : vector<8x8xf32>
    %cst_48 = arith.constant dense<0xFF800000> : vector<8xf32>
    %152 = vector.multi_reduction <maximumf>, %151, %cst_48 [1] : vector<8x8xf32> to vector<8xf32>
    %153 = vector.shape_cast %152 : vector<8xf32> to vector<8x1xf32>
    %154 = vector.broadcast %153 : vector<8x1xf32> to vector<8x8xf32>
    %155 = arith.subf %151, %154 : vector<8x8xf32>
    %156 = math.exp %155 : vector<8x8xf32>
    %cst_49 = arith.constant dense<0.000000e+00> : vector<8xf32>
    %157 = vector.multi_reduction <add>, %156, %cst_49 [1] : vector<8x8xf32> to vector<8xf32>
    %158 = vector.shape_cast %157 : vector<8xf32> to vector<8x1xf32>
    %159 = tpu.reciprocal %158 {approx = true} : vector<8x1xf32> -> vector<8x1xf32>
    %160 = vector.broadcast %159 : vector<8x1xf32> to vector<8x8xf32>
    %161 = arith.mulf %156, %160 : vector<8x8xf32>
    %162 = arith.truncf %161 : vector<8x8xf32> to vector<8x8xbf16>
    %163 = vector.extract_strided_slice %123 {offsets = [0, 8], sizes = [8, 8], strides = [1, 1]} : vector<8x32xbf16> to vector<8x8xbf16>
    %cst_50 = arith.constant dense<0.000000e+00> : vector<8x8xf32>
    %164 = tpu.matmul %162, %163, %cst_50 {dimension_numbers = #tpu.dot_dimension_numbers<[1], [0], [0], [1], [0, 0, 1, 1], [], []>} : vector<8x8xbf16>, vector<8x8xbf16>, vector<8x8xf32> -> vector<8x8xf32>
    %165 = vector.extract_strided_slice %119 {offsets = [0, 16], sizes = [8, 8], strides = [1, 1]} : vector<8x32xbf16> to vector<8x8xbf16>
    %166 = vector.extract_strided_slice %121 {offsets = [0, 16], sizes = [8, 8], strides = [1, 1]} : vector<8x32xbf16> to vector<8x8xbf16>
    %cst_51 = arith.constant dense<0.000000e+00> : vector<8x8xf32>
    %167 = tpu.matmul %165, %166, %cst_51 {dimension_numbers = #tpu.dot_dimension_numbers<[1], [1], [0], [0], [0, 0, 1, 0], [], []>} : vector<8x8xbf16>, vector<8x8xbf16>, vector<8x8xf32> -> vector<8x8xf32>
    %cst_52 = arith.constant 0.353553385 : f32
    %168 = vector.broadcast %cst_52 : f32 to vector<8x8xf32>
    %169 = arith.mulf %167, %168 : vector<8x8xf32>
    %170 = vector.broadcast %124 : vector<1x8xf32> to vector<8x8xf32>
    %171 = arith.addf %169, %170 : vector<8x8xf32>
    %cst_53 = arith.constant dense<0xFF800000> : vector<8xf32>
    %172 = vector.multi_reduction <maximumf>, %171, %cst_53 [1] : vector<8x8xf32> to vector<8xf32>
    %173 = vector.shape_cast %172 : vector<8xf32> to vector<8x1xf32>
    %174 = vector.broadcast %173 : vector<8x1xf32> to vector<8x8xf32>
    %175 = arith.subf %171, %174 : vector<8x8xf32>
    %176 = math.exp %175 : vector<8x8xf32>
    %cst_54 = arith.constant dense<0.000000e+00> : vector<8xf32>
    %177 = vector.multi_reduction <add>, %176, %cst_54 [1] : vector<8x8xf32> to vector<8xf32>
    %178 = vector.shape_cast %177 : vector<8xf32> to vector<8x1xf32>
    %179 = tpu.reciprocal %178 {approx = true} : vector<8x1xf32> -> vector<8x1xf32>
    %180 = vector.broadcast %179 : vector<8x1xf32> to vector<8x8xf32>
    %181 = arith.mulf %176, %180 : vector<8x8xf32>
    %182 = arith.truncf %181 : vector<8x8xf32> to vector<8x8xbf16>
    %183 = vector.extract_strided_slice %123 {offsets = [0, 16], sizes = [8, 8], strides = [1, 1]} : vector<8x32xbf16> to vector<8x8xbf16>
    %cst_55 = arith.constant dense<0.000000e+00> : vector<8x8xf32>
    %184 = tpu.matmul %182, %183, %cst_55 {dimension_numbers = #tpu.dot_dimension_numbers<[1], [0], [0], [1], [0, 0, 1, 1], [], []>} : vector<8x8xbf16>, vector<8x8xbf16>, vector<8x8xf32> -> vector<8x8xf32>
    %185 = vector.extract_strided_slice %119 {offsets = [0, 24], sizes = [8, 8], strides = [1, 1]} : vector<8x32xbf16> to vector<8x8xbf16>
    %186 = vector.extract_strided_slice %121 {offsets = [0, 24], sizes = [8, 8], strides = [1, 1]} : vector<8x32xbf16> to vector<8x8xbf16>
    %cst_56 = arith.constant dense<0.000000e+00> : vector<8x8xf32>
    %187 = tpu.matmul %185, %186, %cst_56 {dimension_numbers = #tpu.dot_dimension_numbers<[1], [1], [0], [0], [0, 0, 1, 0], [], []>} : vector<8x8xbf16>, vector<8x8xbf16>, vector<8x8xf32> -> vector<8x8xf32>
    %cst_57 = arith.constant 0.353553385 : f32
    %188 = vector.broadcast %cst_57 : f32 to vector<8x8xf32>
    %189 = arith.mulf %187, %188 : vector<8x8xf32>
    %190 = vector.broadcast %124 : vector<1x8xf32> to vector<8x8xf32>
    %191 = arith.addf %189, %190 : vector<8x8xf32>
    %cst_58 = arith.constant dense<0xFF800000> : vector<8xf32>
    %192 = vector.multi_reduction <maximumf>, %191, %cst_58 [1] : vector<8x8xf32> to vector<8xf32>
    %193 = vector.shape_cast %192 : vector<8xf32> to vector<8x1xf32>
    %194 = vector.broadcast %193 : vector<8x1xf32> to vector<8x8xf32>
    %195 = arith.subf %191, %194 : vector<8x8xf32>
    %196 = math.exp %195 : vector<8x8xf32>
    %cst_59 = arith.constant dense<0.000000e+00> : vector<8xf32>
    %197 = vector.multi_reduction <add>, %196, %cst_59 [1] : vector<8x8xf32> to vector<8xf32>
    %198 = vector.shape_cast %197 : vector<8xf32> to vector<8x1xf32>
    %199 = tpu.reciprocal %198 {approx = true} : vector<8x1xf32> -> vector<8x1xf32>
    %200 = vector.broadcast %199 : vector<8x1xf32> to vector<8x8xf32>
    %201 = arith.mulf %196, %200 : vector<8x8xf32>
    %202 = arith.truncf %201 : vector<8x8xf32> to vector<8x8xbf16>
    %203 = vector.extract_strided_slice %123 {offsets = [0, 24], sizes = [8, 8], strides = [1, 1]} : vector<8x32xbf16> to vector<8x8xbf16>
    %cst_60 = arith.constant dense<0.000000e+00> : vector<8x8xf32>
    %204 = tpu.matmul %202, %203, %cst_60 {dimension_numbers = #tpu.dot_dimension_numbers<[1], [0], [0], [1], [0, 0, 1, 1], [], []>} : vector<8x8xbf16>, vector<8x8xbf16>, vector<8x8xf32> -> vector<8x8xf32>
    %205 = tpu.concatenate %144, %164, %184, %204 in 1 : vector<8x8xf32>, vector<8x8xf32>, vector<8x8xf32>, vector<8x8xf32> -> vector<8x32xf32>
    %206 = tpu.concatenate %117, %205 in 0 : vector<8x32xf32>, vector<8x32xf32> -> vector<16x32xf32>
    %207 = vector.extract_strided_slice %25 {offsets = [0, 0], sizes = [8, 32], strides = [1, 1]} : vector<16x32xf32> to vector<8x32xf32>
    %208 = arith.truncf %207 : vector<8x32xf32> to vector<8x32xbf16>
    %209 = vector.extract_strided_slice %26 {offsets = [0, 0], sizes = [8, 32], strides = [1, 1]} : vector<16x32xf32> to vector<8x32xf32>
    %210 = arith.truncf %209 : vector<8x32xf32> to vector<8x32xbf16>
    %211 = vector.extract_strided_slice %27 {offsets = [0, 0], sizes = [8, 32], strides = [1, 1]} : vector<16x32xf32> to vector<8x32xf32>
    %212 = arith.truncf %211 : vector<8x32xf32> to vector<8x32xbf16>
    %213 = vector.extract_strided_slice %5 {offsets = [0, 0], sizes = [1, 8], strides = [1, 1]} : vector<2x8xf32> to vector<1x8xf32>
    %214 = vector.extract_strided_slice %208 {offsets = [0, 0], sizes = [8, 8], strides = [1, 1]} : vector<8x32xbf16> to vector<8x8xbf16>
    %215 = vector.extract_strided_slice %210 {offsets = [0, 0], sizes = [8, 8], strides = [1, 1]} : vector<8x32xbf16> to vector<8x8xbf16>
    %cst_61 = arith.constant dense<0.000000e+00> : vector<8x8xf32>
    %216 = tpu.matmul %214, %215, %cst_61 {dimension_numbers = #tpu.dot_dimension_numbers<[1], [1], [0], [0], [0, 0, 1, 0], [], []>} : vector<8x8xbf16>, vector<8x8xbf16>, vector<8x8xf32> -> vector<8x8xf32>
    %cst_62 = arith.constant 0.353553385 : f32
    %217 = vector.broadcast %cst_62 : f32 to vector<8x8xf32>
    %218 = arith.mulf %216, %217 : vector<8x8xf32>
    %219 = vector.broadcast %213 : vector<1x8xf32> to vector<8x8xf32>
    %220 = arith.addf %218, %219 : vector<8x8xf32>
    %cst_63 = arith.constant dense<0xFF800000> : vector<8xf32>
    %221 = vector.multi_reduction <maximumf>, %220, %cst_63 [1] : vector<8x8xf32> to vector<8xf32>
    %222 = vector.shape_cast %221 : vector<8xf32> to vector<8x1xf32>
    %223 = vector.broadcast %222 : vector<8x1xf32> to vector<8x8xf32>
    %224 = arith.subf %220, %223 : vector<8x8xf32>
    %225 = math.exp %224 : vector<8x8xf32>
    %cst_64 = arith.constant dense<0.000000e+00> : vector<8xf32>
    %226 = vector.multi_reduction <add>, %225, %cst_64 [1] : vector<8x8xf32> to vector<8xf32>
    %227 = vector.shape_cast %226 : vector<8xf32> to vector<8x1xf32>
    %228 = tpu.reciprocal %227 {approx = true} : vector<8x1xf32> -> vector<8x1xf32>
    %229 = vector.broadcast %228 : vector<8x1xf32> to vector<8x8xf32>
    %230 = arith.mulf %225, %229 : vector<8x8xf32>
    %231 = arith.truncf %230 : vector<8x8xf32> to vector<8x8xbf16>
    %232 = vector.extract_strided_slice %212 {offsets = [0, 0], sizes = [8, 8], strides = [1, 1]} : vector<8x32xbf16> to vector<8x8xbf16>
    %cst_65 = arith.constant dense<0.000000e+00> : vector<8x8xf32>
    %233 = tpu.matmul %231, %232, %cst_65 {dimension_numbers = #tpu.dot_dimension_numbers<[1], [0], [0], [1], [0, 0, 1, 1], [], []>} : vector<8x8xbf16>, vector<8x8xbf16>, vector<8x8xf32> -> vector<8x8xf32>
    %234 = vector.extract_strided_slice %208 {offsets = [0, 8], sizes = [8, 8], strides = [1, 1]} : vector<8x32xbf16> to vector<8x8xbf16>
    %235 = vector.extract_strided_slice %210 {offsets = [0, 8], sizes = [8, 8], strides = [1, 1]} : vector<8x32xbf16> to vector<8x8xbf16>
    %cst_66 = arith.constant dense<0.000000e+00> : vector<8x8xf32>
    %236 = tpu.matmul %234, %235, %cst_66 {dimension_numbers = #tpu.dot_dimension_numbers<[1], [1], [0], [0], [0, 0, 1, 0], [], []>} : vector<8x8xbf16>, vector<8x8xbf16>, vector<8x8xf32> -> vector<8x8xf32>
    %cst_67 = arith.constant 0.353553385 : f32
    %237 = vector.broadcast %cst_67 : f32 to vector<8x8xf32>
    %238 = arith.mulf %236, %237 : vector<8x8xf32>
    %239 = vector.broadcast %213 : vector<1x8xf32> to vector<8x8xf32>
    %240 = arith.addf %238, %239 : vector<8x8xf32>
    %cst_68 = arith.constant dense<0xFF800000> : vector<8xf32>
    %241 = vector.multi_reduction <maximumf>, %240, %cst_68 [1] : vector<8x8xf32> to vector<8xf32>
    %242 = vector.shape_cast %241 : vector<8xf32> to vector<8x1xf32>
    %243 = vector.broadcast %242 : vector<8x1xf32> to vector<8x8xf32>
    %244 = arith.subf %240, %243 : vector<8x8xf32>
    %245 = math.exp %244 : vector<8x8xf32>
    %cst_69 = arith.constant dense<0.000000e+00> : vector<8xf32>
    %246 = vector.multi_reduction <add>, %245, %cst_69 [1] : vector<8x8xf32> to vector<8xf32>
    %247 = vector.shape_cast %246 : vector<8xf32> to vector<8x1xf32>
    %248 = tpu.reciprocal %247 {approx = true} : vector<8x1xf32> -> vector<8x1xf32>
    %249 = vector.broadcast %248 : vector<8x1xf32> to vector<8x8xf32>
    %250 = arith.mulf %245, %249 : vector<8x8xf32>
    %251 = arith.truncf %250 : vector<8x8xf32> to vector<8x8xbf16>
    %252 = vector.extract_strided_slice %212 {offsets = [0, 8], sizes = [8, 8], strides = [1, 1]} : vector<8x32xbf16> to vector<8x8xbf16>
    %cst_70 = arith.constant dense<0.000000e+00> : vector<8x8xf32>
    %253 = tpu.matmul %251, %252, %cst_70 {dimension_numbers = #tpu.dot_dimension_numbers<[1], [0], [0], [1], [0, 0, 1, 1], [], []>} : vector<8x8xbf16>, vector<8x8xbf16>, vector<8x8xf32> -> vector<8x8xf32>
    %254 = vector.extract_strided_slice %208 {offsets = [0, 16], sizes = [8, 8], strides = [1, 1]} : vector<8x32xbf16> to vector<8x8xbf16>
    %255 = vector.extract_strided_slice %210 {offsets = [0, 16], sizes = [8, 8], strides = [1, 1]} : vector<8x32xbf16> to vector<8x8xbf16>
    %cst_71 = arith.constant dense<0.000000e+00> : vector<8x8xf32>
    %256 = tpu.matmul %254, %255, %cst_71 {dimension_numbers = #tpu.dot_dimension_numbers<[1], [1], [0], [0], [0, 0, 1, 0], [], []>} : vector<8x8xbf16>, vector<8x8xbf16>, vector<8x8xf32> -> vector<8x8xf32>
    %cst_72 = arith.constant 0.353553385 : f32
    %257 = vector.broadcast %cst_72 : f32 to vector<8x8xf32>
    %258 = arith.mulf %256, %257 : vector<8x8xf32>
    %259 = vector.broadcast %213 : vector<1x8xf32> to vector<8x8xf32>
    %260 = arith.addf %258, %259 : vector<8x8xf32>
    %cst_73 = arith.constant dense<0xFF800000> : vector<8xf32>
    %261 = vector.multi_reduction <maximumf>, %260, %cst_73 [1] : vector<8x8xf32> to vector<8xf32>
    %262 = vector.shape_cast %261 : vector<8xf32> to vector<8x1xf32>
    %263 = vector.broadcast %262 : vector<8x1xf32> to vector<8x8xf32>
    %264 = arith.subf %260, %263 : vector<8x8xf32>
    %265 = math.exp %264 : vector<8x8xf32>
    %cst_74 = arith.constant dense<0.000000e+00> : vector<8xf32>
    %266 = vector.multi_reduction <add>, %265, %cst_74 [1] : vector<8x8xf32> to vector<8xf32>
    %267 = vector.shape_cast %266 : vector<8xf32> to vector<8x1xf32>
    %268 = tpu.reciprocal %267 {approx = true} : vector<8x1xf32> -> vector<8x1xf32>
    %269 = vector.broadcast %268 : vector<8x1xf32> to vector<8x8xf32>
    %270 = arith.mulf %265, %269 : vector<8x8xf32>
    %271 = arith.truncf %270 : vector<8x8xf32> to vector<8x8xbf16>
    %272 = vector.extract_strided_slice %212 {offsets = [0, 16], sizes = [8, 8], strides = [1, 1]} : vector<8x32xbf16> to vector<8x8xbf16>
    %cst_75 = arith.constant dense<0.000000e+00> : vector<8x8xf32>
    %273 = tpu.matmul %271, %272, %cst_75 {dimension_numbers = #tpu.dot_dimension_numbers<[1], [0], [0], [1], [0, 0, 1, 1], [], []>} : vector<8x8xbf16>, vector<8x8xbf16>, vector<8x8xf32> -> vector<8x8xf32>
    %274 = vector.extract_strided_slice %208 {offsets = [0, 24], sizes = [8, 8], strides = [1, 1]} : vector<8x32xbf16> to vector<8x8xbf16>
    %275 = vector.extract_strided_slice %210 {offsets = [0, 24], sizes = [8, 8], strides = [1, 1]} : vector<8x32xbf16> to vector<8x8xbf16>
    %cst_76 = arith.constant dense<0.000000e+00> : vector<8x8xf32>
    %276 = tpu.matmul %274, %275, %cst_76 {dimension_numbers = #tpu.dot_dimension_numbers<[1], [1], [0], [0], [0, 0, 1, 0], [], []>} : vector<8x8xbf16>, vector<8x8xbf16>, vector<8x8xf32> -> vector<8x8xf32>
    %cst_77 = arith.constant 0.353553385 : f32
    %277 = vector.broadcast %cst_77 : f32 to vector<8x8xf32>
    %278 = arith.mulf %276, %277 : vector<8x8xf32>
    %279 = vector.broadcast %213 : vector<1x8xf32> to vector<8x8xf32>
    %280 = arith.addf %278, %279 : vector<8x8xf32>
    %cst_78 = arith.constant dense<0xFF800000> : vector<8xf32>
    %281 = vector.multi_reduction <maximumf>, %280, %cst_78 [1] : vector<8x8xf32> to vector<8xf32>
    %282 = vector.shape_cast %281 : vector<8xf32> to vector<8x1xf32>
    %283 = vector.broadcast %282 : vector<8x1xf32> to vector<8x8xf32>
    %284 = arith.subf %280, %283 : vector<8x8xf32>
    %285 = math.exp %284 : vector<8x8xf32>
    %cst_79 = arith.constant dense<0.000000e+00> : vector<8xf32>
    %286 = vector.multi_reduction <add>, %285, %cst_79 [1] : vector<8x8xf32> to vector<8xf32>
    %287 = vector.shape_cast %286 : vector<8xf32> to vector<8x1xf32>
    %288 = tpu.reciprocal %287 {approx = true} : vector<8x1xf32> -> vector<8x1xf32>
    %289 = vector.broadcast %288 : vector<8x1xf32> to vector<8x8xf32>
    %290 = arith.mulf %285, %289 : vector<8x8xf32>
    %291 = arith.truncf %290 : vector<8x8xf32> to vector<8x8xbf16>
    %292 = vector.extract_strided_slice %212 {offsets = [0, 24], sizes = [8, 8], strides = [1, 1]} : vector<8x32xbf16> to vector<8x8xbf16>
    %cst_80 = arith.constant dense<0.000000e+00> : vector<8x8xf32>
    %293 = tpu.matmul %291, %292, %cst_80 {dimension_numbers = #tpu.dot_dimension_numbers<[1], [0], [0], [1], [0, 0, 1, 1], [], []>} : vector<8x8xbf16>, vector<8x8xbf16>, vector<8x8xf32> -> vector<8x8xf32>
    %294 = tpu.concatenate %233, %253, %273, %293 in 1 : vector<8x8xf32>, vector<8x8xf32>, vector<8x8xf32>, vector<8x8xf32> -> vector<8x32xf32>
    %295 = vector.extract_strided_slice %25 {offsets = [8, 0], sizes = [8, 32], strides = [1, 1]} : vector<16x32xf32> to vector<8x32xf32>
    %296 = arith.truncf %295 : vector<8x32xf32> to vector<8x32xbf16>
    %297 = vector.extract_strided_slice %26 {offsets = [8, 0], sizes = [8, 32], strides = [1, 1]} : vector<16x32xf32> to vector<8x32xf32>
    %298 = arith.truncf %297 : vector<8x32xf32> to vector<8x32xbf16>
    %299 = vector.extract_strided_slice %27 {offsets = [8, 0], sizes = [8, 32], strides = [1, 1]} : vector<16x32xf32> to vector<8x32xf32>
    %300 = arith.truncf %299 : vector<8x32xf32> to vector<8x32xbf16>
    %301 = vector.extract_strided_slice %5 {offsets = [1, 0], sizes = [1, 8], strides = [1, 1]} : vector<2x8xf32> to vector<1x8xf32>
    %302 = vector.extract_strided_slice %296 {offsets = [0, 0], sizes = [8, 8], strides = [1, 1]} : vector<8x32xbf16> to vector<8x8xbf16>
    %303 = vector.extract_strided_slice %298 {offsets = [0, 0], sizes = [8, 8], strides = [1, 1]} : vector<8x32xbf16> to vector<8x8xbf16>
    %cst_81 = arith.constant dense<0.000000e+00> : vector<8x8xf32>
    %304 = tpu.matmul %302, %303, %cst_81 {dimension_numbers = #tpu.dot_dimension_numbers<[1], [1], [0], [0], [0, 0, 1, 0], [], []>} : vector<8x8xbf16>, vector<8x8xbf16>, vector<8x8xf32> -> vector<8x8xf32>
    %cst_82 = arith.constant 0.353553385 : f32
    %305 = vector.broadcast %cst_82 : f32 to vector<8x8xf32>
    %306 = arith.mulf %304, %305 : vector<8x8xf32>
    %307 = vector.broadcast %301 : vector<1x8xf32> to vector<8x8xf32>
    %308 = arith.addf %306, %307 : vector<8x8xf32>
    %cst_83 = arith.constant dense<0xFF800000> : vector<8xf32>
    %309 = vector.multi_reduction <maximumf>, %308, %cst_83 [1] : vector<8x8xf32> to vector<8xf32>
    %310 = vector.shape_cast %309 : vector<8xf32> to vector<8x1xf32>
    %311 = vector.broadcast %310 : vector<8x1xf32> to vector<8x8xf32>
    %312 = arith.subf %308, %311 : vector<8x8xf32>
    %313 = math.exp %312 : vector<8x8xf32>
    %cst_84 = arith.constant dense<0.000000e+00> : vector<8xf32>
    %314 = vector.multi_reduction <add>, %313, %cst_84 [1] : vector<8x8xf32> to vector<8xf32>
    %315 = vector.shape_cast %314 : vector<8xf32> to vector<8x1xf32>
    %316 = tpu.reciprocal %315 {approx = true} : vector<8x1xf32> -> vector<8x1xf32>
    %317 = vector.broadcast %316 : vector<8x1xf32> to vector<8x8xf32>
    %318 = arith.mulf %313, %317 : vector<8x8xf32>
    %319 = arith.truncf %318 : vector<8x8xf32> to vector<8x8xbf16>
    %320 = vector.extract_strided_slice %300 {offsets = [0, 0], sizes = [8, 8], strides = [1, 1]} : vector<8x32xbf16> to vector<8x8xbf16>
    %cst_85 = arith.constant dense<0.000000e+00> : vector<8x8xf32>
    %321 = tpu.matmul %319, %320, %cst_85 {dimension_numbers = #tpu.dot_dimension_numbers<[1], [0], [0], [1], [0, 0, 1, 1], [], []>} : vector<8x8xbf16>, vector<8x8xbf16>, vector<8x8xf32> -> vector<8x8xf32>
    %322 = vector.extract_strided_slice %296 {offsets = [0, 8], sizes = [8, 8], strides = [1, 1]} : vector<8x32xbf16> to vector<8x8xbf16>
    %323 = vector.extract_strided_slice %298 {offsets = [0, 8], sizes = [8, 8], strides = [1, 1]} : vector<8x32xbf16> to vector<8x8xbf16>
    %cst_86 = arith.constant dense<0.000000e+00> : vector<8x8xf32>
    %324 = tpu.matmul %322, %323, %cst_86 {dimension_numbers = #tpu.dot_dimension_numbers<[1], [1], [0], [0], [0, 0, 1, 0], [], []>} : vector<8x8xbf16>, vector<8x8xbf16>, vector<8x8xf32> -> vector<8x8xf32>
    %cst_87 = arith.constant 0.353553385 : f32
    %325 = vector.broadcast %cst_87 : f32 to vector<8x8xf32>
    %326 = arith.mulf %324, %325 : vector<8x8xf32>
    %327 = vector.broadcast %301 : vector<1x8xf32> to vector<8x8xf32>
    %328 = arith.addf %326, %327 : vector<8x8xf32>
    %cst_88 = arith.constant dense<0xFF800000> : vector<8xf32>
    %329 = vector.multi_reduction <maximumf>, %328, %cst_88 [1] : vector<8x8xf32> to vector<8xf32>
    %330 = vector.shape_cast %329 : vector<8xf32> to vector<8x1xf32>
    %331 = vector.broadcast %330 : vector<8x1xf32> to vector<8x8xf32>
    %332 = arith.subf %328, %331 : vector<8x8xf32>
    %333 = math.exp %332 : vector<8x8xf32>
    %cst_89 = arith.constant dense<0.000000e+00> : vector<8xf32>
    %334 = vector.multi_reduction <add>, %333, %cst_89 [1] : vector<8x8xf32> to vector<8xf32>
    %335 = vector.shape_cast %334 : vector<8xf32> to vector<8x1xf32>
    %336 = tpu.reciprocal %335 {approx = true} : vector<8x1xf32> -> vector<8x1xf32>
    %337 = vector.broadcast %336 : vector<8x1xf32> to vector<8x8xf32>
    %338 = arith.mulf %333, %337 : vector<8x8xf32>
    %339 = arith.truncf %338 : vector<8x8xf32> to vector<8x8xbf16>
    %340 = vector.extract_strided_slice %300 {offsets = [0, 8], sizes = [8, 8], strides = [1, 1]} : vector<8x32xbf16> to vector<8x8xbf16>
    %cst_90 = arith.constant dense<0.000000e+00> : vector<8x8xf32>
    %341 = tpu.matmul %339, %340, %cst_90 {dimension_numbers = #tpu.dot_dimension_numbers<[1], [0], [0], [1], [0, 0, 1, 1], [], []>} : vector<8x8xbf16>, vector<8x8xbf16>, vector<8x8xf32> -> vector<8x8xf32>
    %342 = vector.extract_strided_slice %296 {offsets = [0, 16], sizes = [8, 8], strides = [1, 1]} : vector<8x32xbf16> to vector<8x8xbf16>
    %343 = vector.extract_strided_slice %298 {offsets = [0, 16], sizes = [8, 8], strides = [1, 1]} : vector<8x32xbf16> to vector<8x8xbf16>
    %cst_91 = arith.constant dense<0.000000e+00> : vector<8x8xf32>
    %344 = tpu.matmul %342, %343, %cst_91 {dimension_numbers = #tpu.dot_dimension_numbers<[1], [1], [0], [0], [0, 0, 1, 0], [], []>} : vector<8x8xbf16>, vector<8x8xbf16>, vector<8x8xf32> -> vector<8x8xf32>
    %cst_92 = arith.constant 0.353553385 : f32
    %345 = vector.broadcast %cst_92 : f32 to vector<8x8xf32>
    %346 = arith.mulf %344, %345 : vector<8x8xf32>
    %347 = vector.broadcast %301 : vector<1x8xf32> to vector<8x8xf32>
    %348 = arith.addf %346, %347 : vector<8x8xf32>
    %cst_93 = arith.constant dense<0xFF800000> : vector<8xf32>
    %349 = vector.multi_reduction <maximumf>, %348, %cst_93 [1] : vector<8x8xf32> to vector<8xf32>
    %350 = vector.shape_cast %349 : vector<8xf32> to vector<8x1xf32>
    %351 = vector.broadcast %350 : vector<8x1xf32> to vector<8x8xf32>
    %352 = arith.subf %348, %351 : vector<8x8xf32>
    %353 = math.exp %352 : vector<8x8xf32>
    %cst_94 = arith.constant dense<0.000000e+00> : vector<8xf32>
    %354 = vector.multi_reduction <add>, %353, %cst_94 [1] : vector<8x8xf32> to vector<8xf32>
    %355 = vector.shape_cast %354 : vector<8xf32> to vector<8x1xf32>
    %356 = tpu.reciprocal %355 {approx = true} : vector<8x1xf32> -> vector<8x1xf32>
    %357 = vector.broadcast %356 : vector<8x1xf32> to vector<8x8xf32>
    %358 = arith.mulf %353, %357 : vector<8x8xf32>
    %359 = arith.truncf %358 : vector<8x8xf32> to vector<8x8xbf16>
    %360 = vector.extract_strided_slice %300 {offsets = [0, 16], sizes = [8, 8], strides = [1, 1]} : vector<8x32xbf16> to vector<8x8xbf16>
    %cst_95 = arith.constant dense<0.000000e+00> : vector<8x8xf32>
    %361 = tpu.matmul %359, %360, %cst_95 {dimension_numbers = #tpu.dot_dimension_numbers<[1], [0], [0], [1], [0, 0, 1, 1], [], []>} : vector<8x8xbf16>, vector<8x8xbf16>, vector<8x8xf32> -> vector<8x8xf32>
    %362 = vector.extract_strided_slice %296 {offsets = [0, 24], sizes = [8, 8], strides = [1, 1]} : vector<8x32xbf16> to vector<8x8xbf16>
    %363 = vector.extract_strided_slice %298 {offsets = [0, 24], sizes = [8, 8], strides = [1, 1]} : vector<8x32xbf16> to vector<8x8xbf16>
    %cst_96 = arith.constant dense<0.000000e+00> : vector<8x8xf32>
    %364 = tpu.matmul %362, %363, %cst_96 {dimension_numbers = #tpu.dot_dimension_numbers<[1], [1], [0], [0], [0, 0, 1, 0], [], []>} : vector<8x8xbf16>, vector<8x8xbf16>, vector<8x8xf32> -> vector<8x8xf32>
    %cst_97 = arith.constant 0.353553385 : f32
    %365 = vector.broadcast %cst_97 : f32 to vector<8x8xf32>
    %366 = arith.mulf %364, %365 : vector<8x8xf32>
    %367 = vector.broadcast %301 : vector<1x8xf32> to vector<8x8xf32>
    %368 = arith.addf %366, %367 : vector<8x8xf32>
    %cst_98 = arith.constant dense<0xFF800000> : vector<8xf32>
    %369 = vector.multi_reduction <maximumf>, %368, %cst_98 [1] : vector<8x8xf32> to vector<8xf32>
    %370 = vector.shape_cast %369 : vector<8xf32> to vector<8x1xf32>
    %371 = vector.broadcast %370 : vector<8x1xf32> to vector<8x8xf32>
    %372 = arith.subf %368, %371 : vector<8x8xf32>
    %373 = math.exp %372 : vector<8x8xf32>
    %cst_99 = arith.constant dense<0.000000e+00> : vector<8xf32>
    %374 = vector.multi_reduction <add>, %373, %cst_99 [1] : vector<8x8xf32> to vector<8xf32>
    %375 = vector.shape_cast %374 : vector<8xf32> to vector<8x1xf32>
    %376 = tpu.reciprocal %375 {approx = true} : vector<8x1xf32> -> vector<8x1xf32>
    %377 = vector.broadcast %376 : vector<8x1xf32> to vector<8x8xf32>
    %378 = arith.mulf %373, %377 : vector<8x8xf32>
    %379 = arith.truncf %378 : vector<8x8xf32> to vector<8x8xbf16>
    %380 = vector.extract_strided_slice %300 {offsets = [0, 24], sizes = [8, 8], strides = [1, 1]} : vector<8x32xbf16> to vector<8x8xbf16>
    %cst_100 = arith.constant dense<0.000000e+00> : vector<8x8xf32>
    %381 = tpu.matmul %379, %380, %cst_100 {dimension_numbers = #tpu.dot_dimension_numbers<[1], [0], [0], [1], [0, 0, 1, 1], [], []>} : vector<8x8xbf16>, vector<8x8xbf16>, vector<8x8xf32> -> vector<8x8xf32>
    %382 = tpu.concatenate %321, %341, %361, %381 in 1 : vector<8x8xf32>, vector<8x8xf32>, vector<8x8xf32>, vector<8x8xf32> -> vector<8x32xf32>
    %383 = tpu.concatenate %294, %382 in 0 : vector<8x32xf32>, vector<8x32xf32> -> vector<16x32xf32>
    %c0_101 = arith.constant 0 : index
    %c0_102 = arith.constant 0 : index
    %c0_103 = arith.constant 0 : index
    %384 = vector.load %arg7[%c0_101, %c0_102, %c0_103] : memref<1x64x32xbf16, #tpu.memory_space<vmem>>, vector<1x64x32xbf16>
    %385 = vector.shape_cast %384 : vector<1x64x32xbf16> to vector<64x32xbf16>
    %386 = arith.truncf %206 : vector<16x32xf32> to vector<16x32xbf16>
    %387 = vector.extract_strided_slice %385 {offsets = [0, 0], sizes = [32, 32], strides = [1, 1]} : vector<64x32xbf16> to vector<32x32xbf16>
    %cst_104 = arith.constant dense<0.000000e+00> : vector<16x32xf32>
    %388 = tpu.matmul %386, %387, %cst_104 {dimension_numbers = #tpu.dot_dimension_numbers<[1], [0], [0], [1], [0, 0, 1, 1], [], []>} : vector<16x32xbf16>, vector<32x32xbf16>, vector<16x32xf32> -> vector<16x32xf32>
    %389 = vector.extract_strided_slice %9 {offsets = [2, 0], sizes = [1, 32], strides = [1, 1]} : vector<16x128xf32> to vector<1x32xf32>
    %390 = vector.broadcast %389 : vector<1x32xf32> to vector<16x32xf32>
    %391 = arith.addf %388, %390 : vector<16x32xf32>
    %392 = arith.truncf %383 : vector<16x32xf32> to vector<16x32xbf16>
    %393 = vector.extract_strided_slice %385 {offsets = [32, 0], sizes = [32, 32], strides = [1, 1]} : vector<64x32xbf16> to vector<32x32xbf16>
    %cst_105 = arith.constant dense<0.000000e+00> : vector<16x32xf32>
    %394 = tpu.matmul %392, %393, %cst_105 {dimension_numbers = #tpu.dot_dimension_numbers<[1], [0], [0], [1], [0, 0, 1, 1], [], []>} : vector<16x32xbf16>, vector<32x32xbf16>, vector<16x32xf32> -> vector<16x32xf32>
    %395 = vector.extract_strided_slice %9 {offsets = [2, 32], sizes = [1, 32], strides = [1, 1]} : vector<16x128xf32> to vector<1x32xf32>
    %396 = vector.broadcast %395 : vector<1x32xf32> to vector<16x32xf32>
    %397 = arith.addf %394, %396 : vector<16x32xf32>
    %398 = arith.addf %1, %391 : vector<16x32xf32>
    %399 = vector.extract_strided_slice %9 {offsets = [4, 0], sizes = [1, 32], strides = [1, 1]} : vector<16x128xf32> to vector<1x32xf32>
    %400 = vector.extract_strided_slice %9 {offsets = [5, 0], sizes = [1, 32], strides = [1, 1]} : vector<16x128xf32> to vector<1x32xf32>
    %cst_106 = arith.constant dense<0.000000e+00> : vector<16xf32>
    %401 = vector.multi_reduction <add>, %398, %cst_106 [1] : vector<16x32xf32> to vector<16xf32>
    %402 = vector.shape_cast %401 : vector<16xf32> to vector<16x1xf32>
    %cst_107 = arith.constant 3.200000e+01 : f32
    %403 = vector.broadcast %cst_107 : f32 to vector<16x1xf32>
    %404 = arith.divf %402, %403 : vector<16x1xf32>
    %405 = vector.broadcast %404 : vector<16x1xf32> to vector<16x32xf32>
    %406 = arith.subf %398, %405 : vector<16x32xf32>
    %407 = arith.mulf %406, %406 : vector<16x32xf32>
    %cst_108 = arith.constant dense<0.000000e+00> : vector<16xf32>
    %408 = vector.multi_reduction <add>, %407, %cst_108 [1] : vector<16x32xf32> to vector<16xf32>
    %409 = vector.shape_cast %408 : vector<16xf32> to vector<16x1xf32>
    %cst_109 = arith.constant 3.200000e+01 : f32
    %410 = vector.broadcast %cst_109 : f32 to vector<16x1xf32>
    %411 = arith.divf %409, %410 : vector<16x1xf32>
    %412 = vector.broadcast %404 : vector<16x1xf32> to vector<16x32xf32>
    %413 = arith.subf %398, %412 : vector<16x32xf32>
    %cst_110 = arith.constant 9.99999974E-6 : f32
    %414 = vector.broadcast %cst_110 : f32 to vector<16x1xf32>
    %415 = arith.addf %411, %414 : vector<16x1xf32>
    %416 = math.rsqrt %415 : vector<16x1xf32>
    %417 = vector.broadcast %416 : vector<16x1xf32> to vector<16x32xf32>
    %418 = arith.mulf %413, %417 : vector<16x32xf32>
    %419 = vector.broadcast %399 : vector<1x32xf32> to vector<16x32xf32>
    %420 = arith.mulf %418, %419 : vector<16x32xf32>
    %421 = vector.broadcast %400 : vector<1x32xf32> to vector<16x32xf32>
    %422 = arith.addf %420, %421 : vector<16x32xf32>
    %423 = arith.truncf %422 : vector<16x32xf32> to vector<16x32xbf16>
    %c0_111 = arith.constant 0 : index
    %c0_112 = arith.constant 0 : index
    %c0_113 = arith.constant 0 : index
    %424 = vector.load %arg9[%c0_111, %c0_112, %c0_113] : memref<1x32x64xbf16, #tpu.memory_space<vmem>>, vector<1x32x64xbf16>
    %425 = vector.shape_cast %424 : vector<1x32x64xbf16> to vector<32x64xbf16>
    %cst_114 = arith.constant dense<0.000000e+00> : vector<16x64xf32>
    %426 = tpu.matmul %423, %425, %cst_114 {dimension_numbers = #tpu.dot_dimension_numbers<[1], [0], [0], [1], [0, 0, 1, 1], [], []>} : vector<16x32xbf16>, vector<32x64xbf16>, vector<16x64xf32> -> vector<16x64xf32>
    %427 = vector.extract_strided_slice %9 {offsets = [3, 0], sizes = [1, 64], strides = [1, 1]} : vector<16x128xf32> to vector<1x64xf32>
    %428 = vector.broadcast %427 : vector<1x64xf32> to vector<16x64xf32>
    %429 = arith.addf %426, %428 : vector<16x64xf32>
    %cst_115 = arith.constant 0.000000e+00 : f32
    %430 = vector.broadcast %cst_115 : f32 to vector<16x64xf32>
    %431 = arith.maximumf %429, %430 : vector<16x64xf32>
    %432 = arith.truncf %431 : vector<16x64xf32> to vector<16x64xbf16>
    %c0_116 = arith.constant 0 : index
    %c0_117 = arith.constant 0 : index
    %c0_118 = arith.constant 0 : index
    %433 = vector.load %arg10[%c0_116, %c0_117, %c0_118] : memref<1x64x32xbf16, #tpu.memory_space<vmem>>, vector<1x64x32xbf16>
    %434 = vector.shape_cast %433 : vector<1x64x32xbf16> to vector<64x32xbf16>
    %cst_119 = arith.constant dense<0.000000e+00> : vector<16x32xf32>
    %435 = tpu.matmul %432, %434, %cst_119 {dimension_numbers = #tpu.dot_dimension_numbers<[1], [0], [0], [1], [0, 0, 1, 1], [], []>} : vector<16x64xbf16>, vector<64x32xbf16>, vector<16x32xf32> -> vector<16x32xf32>
    %436 = vector.extract_strided_slice %9 {offsets = [2, 64], sizes = [1, 32], strides = [1, 1]} : vector<16x128xf32> to vector<1x32xf32>
    %437 = vector.broadcast %436 : vector<1x32xf32> to vector<16x32xf32>
    %438 = arith.addf %435, %437 : vector<16x32xf32>
    %439 = arith.addf %422, %438 : vector<16x32xf32>
    %440 = vector.extract_strided_slice %9 {offsets = [6, 0], sizes = [1, 32], strides = [1, 1]} : vector<16x128xf32> to vector<1x32xf32>
    %441 = vector.extract_strided_slice %9 {offsets = [7, 0], sizes = [1, 32], strides = [1, 1]} : vector<16x128xf32> to vector<1x32xf32>
    %cst_120 = arith.constant dense<0.000000e+00> : vector<16xf32>
    %442 = vector.multi_reduction <add>, %439, %cst_120 [1] : vector<16x32xf32> to vector<16xf32>
    %443 = vector.shape_cast %442 : vector<16xf32> to vector<16x1xf32>
    %cst_121 = arith.constant 3.200000e+01 : f32
    %444 = vector.broadcast %cst_121 : f32 to vector<16x1xf32>
    %445 = arith.divf %443, %444 : vector<16x1xf32>
    %446 = vector.broadcast %445 : vector<16x1xf32> to vector<16x32xf32>
    %447 = arith.subf %439, %446 : vector<16x32xf32>
    %448 = arith.mulf %447, %447 : vector<16x32xf32>
    %cst_122 = arith.constant dense<0.000000e+00> : vector<16xf32>
    %449 = vector.multi_reduction <add>, %448, %cst_122 [1] : vector<16x32xf32> to vector<16xf32>
    %450 = vector.shape_cast %449 : vector<16xf32> to vector<16x1xf32>
    %cst_123 = arith.constant 3.200000e+01 : f32
    %451 = vector.broadcast %cst_123 : f32 to vector<16x1xf32>
    %452 = arith.divf %450, %451 : vector<16x1xf32>
    %453 = vector.broadcast %445 : vector<16x1xf32> to vector<16x32xf32>
    %454 = arith.subf %439, %453 : vector<16x32xf32>
    %cst_124 = arith.constant 9.99999974E-6 : f32
    %455 = vector.broadcast %cst_124 : f32 to vector<16x1xf32>
    %456 = arith.addf %452, %455 : vector<16x1xf32>
    %457 = math.rsqrt %456 : vector<16x1xf32>
    %458 = vector.broadcast %457 : vector<16x1xf32> to vector<16x32xf32>
    %459 = arith.mulf %454, %458 : vector<16x32xf32>
    %460 = vector.broadcast %440 : vector<1x32xf32> to vector<16x32xf32>
    %461 = arith.mulf %459, %460 : vector<16x32xf32>
    %462 = vector.broadcast %441 : vector<1x32xf32> to vector<16x32xf32>
    %463 = arith.addf %461, %462 : vector<16x32xf32>
    %464 = arith.addf %1, %397 : vector<16x32xf32>
    %465 = vector.extract_strided_slice %9 {offsets = [8, 0], sizes = [1, 32], strides = [1, 1]} : vector<16x128xf32> to vector<1x32xf32>
    %466 = vector.extract_strided_slice %9 {offsets = [9, 0], sizes = [1, 32], strides = [1, 1]} : vector<16x128xf32> to vector<1x32xf32>
    %cst_125 = arith.constant dense<0.000000e+00> : vector<16xf32>
    %467 = vector.multi_reduction <add>, %464, %cst_125 [1] : vector<16x32xf32> to vector<16xf32>
    %468 = vector.shape_cast %467 : vector<16xf32> to vector<16x1xf32>
    %cst_126 = arith.constant 3.200000e+01 : f32
    %469 = vector.broadcast %cst_126 : f32 to vector<16x1xf32>
    %470 = arith.divf %468, %469 : vector<16x1xf32>
    %471 = vector.broadcast %470 : vector<16x1xf32> to vector<16x32xf32>
    %472 = arith.subf %464, %471 : vector<16x32xf32>
    %473 = arith.mulf %472, %472 : vector<16x32xf32>
    %cst_127 = arith.constant dense<0.000000e+00> : vector<16xf32>
    %474 = vector.multi_reduction <add>, %473, %cst_127 [1] : vector<16x32xf32> to vector<16xf32>
    %475 = vector.shape_cast %474 : vector<16xf32> to vector<16x1xf32>
    %cst_128 = arith.constant 3.200000e+01 : f32
    %476 = vector.broadcast %cst_128 : f32 to vector<16x1xf32>
    %477 = arith.divf %475, %476 : vector<16x1xf32>
    %478 = vector.broadcast %470 : vector<16x1xf32> to vector<16x32xf32>
    %479 = arith.subf %464, %478 : vector<16x32xf32>
    %cst_129 = arith.constant 9.99999974E-6 : f32
    %480 = vector.broadcast %cst_129 : f32 to vector<16x1xf32>
    %481 = arith.addf %477, %480 : vector<16x1xf32>
    %482 = math.rsqrt %481 : vector<16x1xf32>
    %483 = vector.broadcast %482 : vector<16x1xf32> to vector<16x32xf32>
    %484 = arith.mulf %479, %483 : vector<16x32xf32>
    %485 = vector.broadcast %465 : vector<1x32xf32> to vector<16x32xf32>
    %486 = arith.mulf %484, %485 : vector<16x32xf32>
    %487 = vector.broadcast %466 : vector<1x32xf32> to vector<16x32xf32>
    %488 = arith.addf %486, %487 : vector<16x32xf32>
    %489 = arith.truncf %488 : vector<16x32xf32> to vector<16x32xbf16>
    %c0_130 = arith.constant 0 : index
    %c0_131 = arith.constant 0 : index
    %c0_132 = arith.constant 0 : index
    %490 = vector.load %arg11[%c0_130, %c0_131, %c0_132] : memref<1x32x2048xbf16, #tpu.memory_space<vmem>>, vector<1x32x2048xbf16>
    %491 = vector.shape_cast %490 : vector<1x32x2048xbf16> to vector<32x2048xbf16>
    %cst_133 = arith.constant dense<0.000000e+00> : vector<16x2048xf32>
    %492 = tpu.matmul %489, %491, %cst_133 {dimension_numbers = #tpu.dot_dimension_numbers<[1], [0], [0], [1], [0, 0, 1, 1], [], []>} : vector<16x32xbf16>, vector<32x2048xbf16>, vector<16x2048xf32> -> vector<16x2048xf32>
    %c0_134 = arith.constant 0 : index
    %c0_135 = arith.constant 0 : index
    %c0_136 = arith.constant 0 : index
    %493 = vector.load %arg13[%c0_134, %c0_135, %c0_136] : memref<1x1x2048xf32, #tpu.memory_space<vmem>>, vector<1x1x2048xf32>
    %494 = vector.shape_cast %493 : vector<1x1x2048xf32> to vector<1x2048xf32>
    %495 = vector.broadcast %494 : vector<1x2048xf32> to vector<16x2048xf32>
    %496 = arith.addf %492, %495 : vector<16x2048xf32>
    %cst_137 = arith.constant 0.000000e+00 : f32
    %497 = vector.broadcast %cst_137 : f32 to vector<16x2048xf32>
    %498 = arith.maximumf %496, %497 : vector<16x2048xf32>
    %499 = arith.truncf %498 : vector<16x2048xf32> to vector<16x2048xbf16>
    %c0_138 = arith.constant 0 : index
    %c0_139 = arith.constant 0 : index
    %c0_140 = arith.constant 0 : index
    %500 = vector.load %arg12[%c0_138, %c0_139, %c0_140] : memref<1x2048x32xbf16, #tpu.memory_space<vmem>>, vector<1x2048x32xbf16>
    %501 = vector.shape_cast %500 : vector<1x2048x32xbf16> to vector<2048x32xbf16>
    %cst_141 = arith.constant dense<0.000000e+00> : vector<16x32xf32>
    %502 = tpu.matmul %499, %501, %cst_141 {dimension_numbers = #tpu.dot_dimension_numbers<[1], [0], [0], [1], [0, 0, 1, 1], [], []>} : vector<16x2048xbf16>, vector<2048x32xbf16>, vector<16x32xf32> -> vector<16x32xf32>
    %503 = vector.extract_strided_slice %9 {offsets = [2, 96], sizes = [1, 32], strides = [1, 1]} : vector<16x128xf32> to vector<1x32xf32>
    %504 = vector.broadcast %503 : vector<1x32xf32> to vector<16x32xf32>
    %505 = arith.addf %502, %504 : vector<16x32xf32>
    %506 = arith.addf %488, %505 : vector<16x32xf32>
    %507 = vector.extract_strided_slice %9 {offsets = [10, 0], sizes = [1, 32], strides = [1, 1]} : vector<16x128xf32> to vector<1x32xf32>
    %508 = vector.extract_strided_slice %9 {offsets = [11, 0], sizes = [1, 32], strides = [1, 1]} : vector<16x128xf32> to vector<1x32xf32>
    %cst_142 = arith.constant dense<0.000000e+00> : vector<16xf32>
    %509 = vector.multi_reduction <add>, %506, %cst_142 [1] : vector<16x32xf32> to vector<16xf32>
    %510 = vector.shape_cast %509 : vector<16xf32> to vector<16x1xf32>
    %cst_143 = arith.constant 3.200000e+01 : f32
    %511 = vector.broadcast %cst_143 : f32 to vector<16x1xf32>
    %512 = arith.divf %510, %511 : vector<16x1xf32>
    %513 = vector.broadcast %512 : vector<16x1xf32> to vector<16x32xf32>
    %514 = arith.subf %506, %513 : vector<16x32xf32>
    %515 = arith.mulf %514, %514 : vector<16x32xf32>
    %cst_144 = arith.constant dense<0.000000e+00> : vector<16xf32>
    %516 = vector.multi_reduction <add>, %515, %cst_144 [1] : vector<16x32xf32> to vector<16xf32>
    %517 = vector.shape_cast %516 : vector<16xf32> to vector<16x1xf32>
    %cst_145 = arith.constant 3.200000e+01 : f32
    %518 = vector.broadcast %cst_145 : f32 to vector<16x1xf32>
    %519 = arith.divf %517, %518 : vector<16x1xf32>
    %520 = vector.broadcast %512 : vector<16x1xf32> to vector<16x32xf32>
    %521 = arith.subf %506, %520 : vector<16x32xf32>
    %cst_146 = arith.constant 9.99999974E-6 : f32
    %522 = vector.broadcast %cst_146 : f32 to vector<16x1xf32>
    %523 = arith.addf %519, %522 : vector<16x1xf32>
    %524 = math.rsqrt %523 : vector<16x1xf32>
    %525 = vector.broadcast %524 : vector<16x1xf32> to vector<16x32xf32>
    %526 = arith.mulf %521, %525 : vector<16x32xf32>
    %527 = vector.broadcast %507 : vector<1x32xf32> to vector<16x32xf32>
    %528 = arith.mulf %526, %527 : vector<16x32xf32>
    %529 = vector.broadcast %508 : vector<1x32xf32> to vector<16x32xf32>
    %530 = arith.addf %528, %529 : vector<16x32xf32>
    %531 = tpu.concatenate %463, %530 in 1 : vector<16x32xf32>, vector<16x32xf32> -> vector<16x64xf32>
    %532 = arith.truncf %531 : vector<16x64xf32> to vector<16x64xbf16>
    %c0_147 = arith.constant 0 : index
    %c0_148 = arith.constant 0 : index
    %c0_149 = arith.constant 0 : index
    %533 = vector.load %arg14[%c0_147, %c0_148, %c0_149] : memref<1x64x32xbf16, #tpu.memory_space<vmem>>, vector<1x64x32xbf16>
    %534 = vector.shape_cast %533 : vector<1x64x32xbf16> to vector<64x32xbf16>
    %cst_150 = arith.constant dense<0.000000e+00> : vector<16x32xf32>
    %535 = tpu.matmul %532, %534, %cst_150 {dimension_numbers = #tpu.dot_dimension_numbers<[1], [0], [0], [1], [0, 0, 1, 1], [], []>} : vector<16x64xbf16>, vector<64x32xbf16>, vector<16x32xf32> -> vector<16x32xf32>
    %536 = vector.extract_strided_slice %9 {offsets = [12, 0], sizes = [1, 32], strides = [1, 1]} : vector<16x128xf32> to vector<1x32xf32>
    %537 = vector.broadcast %536 : vector<1x32xf32> to vector<16x32xf32>
    %538 = arith.addf %535, %537 : vector<16x32xf32>
    %539 = arith.negf %538 : vector<16x32xf32>
    %540 = math.exp %539 : vector<16x32xf32>
    %cst_151 = arith.constant 1.000000e+00 : f32
    %541 = vector.broadcast %cst_151 : f32 to vector<16x32xf32>
    %542 = arith.addf %541, %540 : vector<16x32xf32>
    %543 = arith.divf %541, %542 : vector<16x32xf32>
    %cst_152 = arith.constant 1.000000e+00 : f32
    %544 = vector.broadcast %cst_152 : f32 to vector<16x32xf32>
    %545 = arith.subf %544, %543 : vector<16x32xf32>
    %546 = arith.mulf %545, %463 : vector<16x32xf32>
    %547 = arith.mulf %543, %530 : vector<16x32xf32>
    %548 = arith.addf %546, %547 : vector<16x32xf32>
    %c0_153 = arith.constant 0 : index
    %c0_154 = arith.constant 0 : index
    %c0_155 = arith.constant 0 : index
    %549 = vector.load %arg15[%c0_153, %c0_154, %c0_155] : memref<1x16x32xf32, #tpu.memory_space<vmem>>, vector<1x16x32xf32>
    %550 = vector.shape_cast %549 : vector<1x16x32xf32> to vector<16x32xf32>
    %551 = vector.shape_cast %548 : vector<16x32xf32> to vector<1x16x32xf32>
    tpu.vector_store %arg15[%c0_153, %c0_154, %c0_155], %551 {strides = array<i32>} : memref<1x16x32xf32, #tpu.memory_space<vmem>>, vector<1x16x32xf32>,
    return
  }
  func.func @transform_0(%arg0: i32) -> (i32, i32, i32) {
    %c0_i32 = arith.constant 0 : i32
    %c0_i32_0 = arith.constant 0 : i32
    %c0_i32_1 = arith.constant 0 : i32
    return %arg0, %c0_i32, %c0_i32_0 : i32, i32, i32
  }
  func.func @transform_1(%arg0: i32) -> (i32, i32, i32) {
    %c1_i32 = arith.constant 1 : i32
    %0 = arith.subi %c1_i32, %arg0 : i32
    %c0_i32 = arith.constant 0 : i32
    %c0_i32_0 = arith.constant 0 : i32
    %c0_i32_1 = arith.constant 0 : i32
    return %0, %c0_i32, %c0_i32_0 : i32, i32, i32
  }
  func.func @transform_2(%arg0: i32) -> (i32, i32, i32) {
    %c0_i32 = arith.constant 0 : i32
    %c0_i32_0 = arith.constant 0 : i32
    %c0_i32_1 = arith.constant 0 : i32
    return %arg0, %c0_i32, %c0_i32_0 : i32, i32, i32
  }
  func.func @transform_3(%arg0: i32) -> (i32, i32, i32) {
    %c1_i32 = arith.constant 1 : i32
    %0 = arith.subi %c1_i32, %arg0 : i32
    %c0_i32 = arith.constant 0 : i32
    %c0_i32_0 = arith.constant 0 : i32
    %c0_i32_1 = arith.constant 0 : i32
    return %0, %c0_i32, %c0_i32_0 : i32, i32, i32
  }
  func.func @transform_4(%arg0: i32) -> (i32, i32, i32) {
    %c0_i32 = arith.constant 0 : i32
    %c0_i32_0 = arith.constant 0 : i32
    %c0_i32_1 = arith.constant 0 : i32
    return %arg0, %c0_i32, %c0_i32_0 : i32, i32, i32
  }
  func.func @transform_5(%arg0: i32) -> (i32, i32, i32) {
    %c0_i32 = arith.constant 0 : i32
    %c0_i32_0 = arith.constant 0 : i32
    %c0_i32_1 = arith.constant 0 : i32
    return %arg0, %c0_i32, %c0_i32_0 : i32, i32, i32
  }
  func.func @transform_6(%arg0: i32) -> (i32, i32, i32) {
    %c0_i32 = arith.constant 0 : i32
    %c0_i32_0 = arith.constant 0 : i32
    %c0_i32_1 = arith.constant 0 : i32
    return %arg0, %c0_i32, %c0_i32_0 : i32, i32, i32
  }
  func.func @transform_7(%arg0: i32) -> (i32, i32, i32) {
    %c0_i32 = arith.constant 0 : i32
    %c0_i32_0 = arith.constant 0 : i32
    %c0_i32_1 = arith.constant 0 : i32
    return %arg0, %c0_i32, %c0_i32_0 : i32, i32, i32
  }
  func.func @transform_8(%arg0: i32) -> (i32, i32, i32) {
    %c0_i32 = arith.constant 0 : i32
    %c0_i32_0 = arith.constant 0 : i32
    %c0_i32_1 = arith.constant 0 : i32
    return %arg0, %c0_i32, %c0_i32_0 : i32, i32, i32
  }
  func.func @transform_9(%arg0: i32) -> (i32, i32, i32) {
    %c0_i32 = arith.constant 0 : i32
    %c0_i32_0 = arith.constant 0 : i32
    %c0_i32_1 = arith.constant 0 : i32
    return %arg0, %c0_i32, %c0_i32_0 : i32, i32, i32
  }
  func.func @transform_10(%arg0: i32) -> (i32, i32, i32) {
    %c0_i32 = arith.constant 0 : i32
    %c0_i32_0 = arith.constant 0 : i32
    %c0_i32_1 = arith.constant 0 : i32
    return %arg0, %c0_i32, %c0_i32_0 : i32, i32, i32
  }
  func.func @transform_11(%arg0: i32) -> (i32, i32, i32) {
    %c0_i32 = arith.constant 0 : i32
    %c0_i32_0 = arith.constant 0 : i32
    %c0_i32_1 = arith.constant 0 : i32
    return %arg0, %c0_i32, %c0_i32_0 : i32, i32, i32
  }
  func.func @transform_12(%arg0: i32) -> (i32, i32, i32) {
    %c0_i32 = arith.constant 0 : i32
    %c0_i32_0 = arith.constant 0 : i32
    %c0_i32_1 = arith.constant 0 : i32
    return %arg0, %c0_i32, %c0_i32_0 : i32, i32, i32
  }
  func.func @transform_13(%arg0: i32) -> (i32, i32, i32) {
    %c0_i32 = arith.constant 0 : i32
    %c0_i32_0 = arith.constant 0 : i32
    %c0_i32_1 = arith.constant 0 : i32
    return %arg0, %c0_i32, %c0_i32_0 : i32, i32, i32
  }
  func.func @transform_14(%arg0: i32) -> (i32, i32, i32) {
    %c0_i32 = arith.constant 0 : i32
    %c0_i32_0 = arith.constant 0 : i32
    %c0_i32_1 = arith.constant 0 : i32
    return %arg0, %c0_i32, %c0_i32_0 : i32, i32, i32
  }
}

</mosaic_0001>

<bundles_post_ra>
// kernel: co_transformer_forward.1
= control target key start
LH: loop header
LB: loop body
LE: loop exit
PB: predicated region body
PF: predicated region fallthrough
CT: control target
= control target key end

     0   :  { %s6730_s29 = smov 0   ;;  %s7695_s0 = inlined_call_operand.vmem [shape: f32[2,16,32], index: 0, kind: input, shape index: {}, may-alias: {0,1}]   ;;  %s7696_s1 = inlined_call_operand.vmem [shape: f32[2,16,32], index: 1, kind: input, shape index: {}, may-alias: {0,1}]   ;;  %s7697_s2 = inlined_call_operand.vmem [shape: f32[2,2,8], index: 2, kind: input, shape index: {}, may-alias: {2,3}]   ;;  %s7698_s3 = inlined_call_operand.vmem [shape: f32[2,2,8], index: 3, kind: input, shape index: {}, may-alias: {2,3}]   ;;  %s7699_s4 = inlined_call_operand.vmem [shape: bf16[2,32,128], index: 4, kind: input, shape index: {}]   ;;  %s7700_s5 = inlined_call_operand.vmem [shape: bf16[2,32,64], index: 5, kind: input, shape index: {}]   ;;  %s7701_s6 = inlined_call_operand.vmem [shape: bf16[2,64,32], index: 6, kind: input, shape index: {}]   ;;  %s7702_s7 = inlined_call_operand.vmem [shape: f32[2,16,128], index: 7, kind: input, shape index: {}]   ;;  %s7703_s8 = inlined_call_operand.vmem [shape: bf16[2,32,64], index: 8, kind: input, shape index: {}]   ;;  %s7704_s9 = inlined_call_operand.vmem [shape: bf16[2,64,32], index: 9, kind: input, shape index: {}]   ;;  %s7705_s10 = inlined_call_operand.vmem [shape: bf16[2,32,2048], index: 10, kind: input, shape index: {}]   ;;  %s7706_s11 = inlined_call_operand.vmem [shape: bf16[2,2048,32], index: 11, kind: input, shape index: {}]   ;;  %s7707_s12 = inlined_call_operand.vmem [shape: f32[2,1,2048], index: 12, kind: input, shape index: {}]   ;;  %s7708_s13 = inlined_call_operand.vmem [shape: bf16[2,64,32], index: 13, kind: input, shape index: {}]   ;;  %s7709_s14 = inlined_call_operand.vmem [shape: f32[2,16,32], index: 14, kind: output, shape index: {}]  }
   0x1 LB: > { %7711 = sst [smem:[#allocation2_spill]] %s6635_s29  ;;  %s5535_s30 = sadd.s32 4294967295, %s6635_s29   ;;  %s6635_s29 = sphi %s6730_s29, %s24_s29  }
   0x2   : > { %p5539_p0 = scmp.ge.s32.totalorder %s6635_s29, 1  ;;  %p547_p1 = scmp.lt.s32.totalorder %s6635_s29, 3 }
   0x4   : > { %p548_p2 = pnand %p5539_p0, %p547_p1 }
   0x5   : > { %p657_p3 = scmp.lt.s32.totalorder (!%p548_p2), %s5535_s30, 1  ;;  %s662_s15 = ssub.s32 (!%p548_p2), 1, %s5535_s30  ;;  %v6637_v0 = vmov (!%p548_p2), 0.0   ;;  %vm6638_vm0 = vmmov (!%p548_p2), 0   ;;  %vm764_vm1 = vcmask (!%p548_p2), 261120   ;;  %v748_v11 = vlaneseq (!%p548_p2) }
   0x6   : > { %551 = sbr.rel (%p548_p2) target bundleno = 3378 (0xd32), region = 76  ;;  %6081 = vmatprep.subr.bf16.mxu1 (!%p548_p2), %v6637_v0  ;;  %6073 = vmatprep.subr.bf16.mxu0 (!%p548_p2), %v6637_v0  ;;  %p663_p4 = scmp.lt.s32.totalorder (!%p548_p2), %s662_s15, 1  ;;  %vm875_vm2 = vcmask (!%p548_p2), 64512   ;;  %vm946_vm3 = vcmask (!%p548_p2), 1043456   ;;  %vm1340_vm4 = vcmask (!%p548_p2), 130048   ;;  %vm1342_vm5 = vcmask (!%p548_p2), 195584  }
   0x7   : > { %6085 = vmatprep.mubr.msk.bf16.mxu1 (!%p548_p2), %vm6638_vm0, %v6637_v0  ;;  %6077 = vmatprep.mubr.msk.bf16.mxu0 (!%p548_p2), %vm6638_vm0, %v6637_v0  ;;  %v6787_v12 = vshrl.u32 (!%p548_p2), %v748_v11, 7  ;;  %s6641_s25 = smov (!%p548_p2), 104   ;;  %s6642_s26 = smov (!%p548_p2), 64   ;;  %vm3019_vm6 = vcmask (!%p548_p2), 523264  }
   0x8   : > { %s6644_s28 = smov (!%p548_p2), 56   ;;  %s6645_s18 = smov (!%p548_p2), 88  }
   0x9   : > { %v6796_v13 = vsub.s32 (!%p548_p2), 1, %v6787_v12  ;;  %v6800_v15 = vsub.s32 (!%p548_p2), 0, %v6787_v12  ;;  %s6647_s29 = smov (!%p548_p2), 80  }
   0xd   : > { %s7714_s30 = smov (!%p657_p3, %s5535_s30), 1  ;;  %s7716_s15 = smov (!%p663_p4, %s662_s15), 1 }
   0xe   : > { %s6749_s16 = sshll.u32 %s7714_s30, 4  ;;  %s5805_s20 = sshll.u32 %s7714_s30, 10 }
   0xf   : > { %s688_s19 = scalar_lea.vmem %s7700_s5, %s6749_s16  ;;  %s683_s23 = scalar_lea.vmem %s7699_s4, %s6749_s16 }
  0x10   : > { %v6390_v1 = vld [vmem:[%s688_s19] sm:$0xff]   ;;  %s5797_s24 = sshll.u32 %s7716_s15, 4  ;;  %v6392_v3 = vld [vmem:[%s688_s19 + $0x8] sm:$0xff]   ;;  %s6768_s17 = scalar_lea.vmem %s7695_s0, %s6749_s16 }
  0x11   : > { %v6391_v2 = vld [vmem:[%s683_s23] sm:$0xff]   ;;  %6082 = vmatpush3.bf16.msra.mxu1 %v6390_v1  ;;  %s667_s27 = scalar_lea.vmem %s7696_s1, %s5797_s24  ;;  %v6393_v6 = vld [vmem:[%s683_s23 + $0x8] sm:$0xff]   ;;  %s6776_s21 = scalar_lea.vmem %s7706_s11, %s5805_s20 }
  0x12   : > { %6083 = vmatprep.subr.bf16.mxu1 %v6637_v0  ;;  %6074 = vmatpush3.bf16.msra.mxu0 %v6391_v2  ;;  %v736_v4 = vld [vmem:[%s667_s27] sm:$0xff]  ;;  %v737_v5 = vld [vmem:[%s667_s27 + $0x8] sm:$0xff]  ;;  %s6793_s22 = scalar_lea.vmem %s7702_s7, %s6749_s16  ;;  %s6639_s23 = smov 112  }
  0x13   : > { %6075 = vmatprep.subr.bf16.mxu0 %v6637_v0  ;;  %v734_v7 = vld [vmem:[%s6768_s17] sm:$0xff]  ;;  %v743_v8 = vpack.c.bf16 %v737_v5, %v736_v4  ;;  %v735_v9 = vld [vmem:[%s6768_s17 + $0x8] sm:$0xff]  ;;  %s6640_s24 = smov 120   ;;  %s6643_s27 = smov 96  }
  0x14   : > { %v742_v10 = vpack.c.bf16 %v735_v9, %v734_v7  ;;  %v740_v14 = vld [vmem:[%s6793_s22] sm:$0xff]  ;;  %s6646_s19 = smov 48   ;;  %s6648_s20 = smov 40  }
  0x15   : > { %6084 = vmatpush3.bf16.msra.mxu1 %v6392_v3  ;;  %v816_v16 = vrot.slane %v740_v14, %v6796_v13  ;;  %v751_v17 = vrot.slane %v740_v14, %v6800_v15 }
  0x16   : > { %6076 = vmatpush3.bf16.msra.mxu0 %v6393_v6  ;;  %6095 = vmatprep.subr.bf16.mxu1 %v6637_v0 }
  0x17   : > { %6089 = vmatprep.subr.bf16.mxu0 %v6637_v0 }
  0x18   : > { %6086 = vmatmul.mubr.msk.bf16.vlgmr.msra.gmra.mrb[0].mxu1 %vm764_vm1, %v743_v8 }
  0x19   : > { %6078 = vmatmul.mubr.msk.bf16.vlgmr.msra.gmra.mrb[0].mxu0 %vm764_vm1, %v742_v10  ;;  %6097 = vmatprep.mubr.msk.bf16.mxu1 %vm6638_vm0, %v6637_v0 }
  0x1a   : > { %6091 = vmatprep.mubr.msk.bf16.mxu0 %vm6638_vm0, %v6637_v0 }
  0xeb   : > { %v866_v18 = vpop.f32.mrb[0].mxu1 }
  0xec   : > { %v867_v19 = vadd.f32 %v866_v18, %v816_v16  ;;  %v6087_v20 = vpop.f32.mrb[1].mxu1  ;;  %v802_v21 = vpop.f32.mrb[0].mxu0 }
  0xed   : > { %v869_v22 = vpop.f32.mrb[2].mxu1  ;;  %v803_v23 = vadd.f32 %v802_v21, %v751_v17  ;;  %v6079_v24 = vpop.f32.mrb[1].mxu0 }
  0xee   : > { %v6804_v25 = vpack.c.bf16 %v867_v19, %v867_v19  ;;  %v6088_v26 = vpop.f32.mrb[3].mxu1  ;;  %v805_v27 = vpop.f32.mrb[2].mxu0  ;;  %v870_v31 = vadd.f32 %v869_v22, %v816_v16 }
  0xef   : > { %v6080_v28 = vpop.f32.mrb[3].mxu0  ;;  %v6806_v29 = vpack.c.bf16 %v803_v23, %v803_v23  ;;  %v806_v32 = vadd.f32 %v805_v27, %v751_v17 }
  0xf0   : > { %1105 = vrot.lane.b32.xlu1 %v6804_v25, %s6639_s23  ;;  %993 = vrot.lane.b32.xlu0 %v6804_v25, %s6640_s24  ;;  %v880_v30 = vsel %vm875_vm2, %v6804_v25, 0  ;;  %v6819_v33 = vpack.c.bf16 %v870_v31, %v870_v31 }
  0xf1   : > { %6090 = vmatpush3.bf16.xpose.msra.mxu0 %v880_v30  ;;  %v6821_v34 = vpack.c.bf16 %v806_v32, %v806_v32 }
  0xf2   : > { %6101 = vmatprep.subr.bf16.mxu0 %v6637_v0  ;;  %v1350_v44 = vsel %vm875_vm2, %v6819_v33, 0 }
  0xf4   : > { %1103 = vrot.lane.b32.xlu1 %v6806_v29, %s6639_s23  ;;  %991 = vrot.lane.b32.xlu0 %v6806_v29, %s6640_s24 }
  0xf8   : > { %1215 = vrot.lane.b32.xlu1 %v6806_v29, %s6641_s25  ;;  %1217 = vrot.lane.b32.xlu0 %v6804_v25, %s6641_s25 }
  0xf9   : > { %6092 = vmatmul.mubr.msk.bf16.vlgmr.msra.gmra.mrb[4].mxu0 %vm875_vm2, %v6806_v29 }
  0xfa   : > { %6103 = vmatprep.mubr.msk.bf16.mxu0 %vm6638_vm0, %v6637_v0 }
  0xfc   : > { %1462 = vrot.lane.b32.xlu0 %v6819_v33, %s6640_s24  ;;  %1460 = vrot.lane.b32.xlu1 %v6821_v34, %s6640_s24  ;;  %s5545_s24 = sshll.u32 %s7716_s15, 1  ;;  %s5544_s15 = sshll.u32 %s7714_s30, 1 }
 0x100   : > { %1574 = vrot.lane.b32.xlu0 %v6819_v33, %s6639_s23  ;;  %1572 = vrot.lane.b32.xlu1 %v6821_v34, %s6639_s23  ;;  %s6649_s23 = smov 72  }
 0x104   : > { %1686 = vrot.lane.b32.xlu0 %v6819_v33, %s6641_s25  ;;  %1684 = vrot.lane.b32.xlu1 %v6821_v34, %s6641_s25  ;;  %s6652_s25 = smov 8  }
 0x108   : > { %1813 = vrot.lane.b32.xlu0 %v6806_v29, %s6642_s26  ;;  %1811 = vrot.lane.b32.xlu1 %v6806_v29, %s6643_s27 }
 0x10c   : > { %1929 = vrot.lane.b32.xlu0 %v6806_v29, %s6644_s28  ;;  %1927 = vrot.lane.b32.xlu1 %v6806_v29, %s6645_s18 }
 0x110   : > { %2041 = vrot.lane.b32.xlu0 %v6806_v29, %s6646_s19  ;;  %2039 = vrot.lane.b32.xlu1 %v6806_v29, %s6647_s29 }
 0x114   : > { %2153 = vrot.lane.b32.xlu0 %v6806_v29, %s6648_s20  ;;  %2151 = vrot.lane.b32.xlu1 %v6806_v29, %s6649_s23 }
 0x118   : > { %2280 = vrot.lane.b32.xlu0 %v6821_v34, %s6642_s26  ;;  %2278 = vrot.lane.b32.xlu1 %v6821_v34, %s6643_s27 }
 0x11c   : > { %2396 = vrot.lane.b32.xlu0 %v6821_v34, %s6644_s28  ;;  %2394 = vrot.lane.b32.xlu1 %v6821_v34, %s6645_s18  ;;  %s6653_s28 = smov 16  }
 0x120   : > { %2508 = vrot.lane.b32.xlu0 %v6821_v34, %s6646_s19  ;;  %2506 = vrot.lane.b32.xlu1 %v6821_v34, %s6647_s29  ;;  %s677_s19 = scalar_lea.vmem %s7698_s3, %s5545_s24  ;;  %s6651_s24 = smov 24  }
 0x121   : > { %v739_v9 = vld [vmem:[%s677_s19] sm:$0x3]  ;;  %s7216_s19 = sshll.u32 %s7714_s30, 5 }
 0x122   : > { %v926_v14 = vrot.slane %v739_v9, %v6800_v15 }
 0x124   : > { %2620 = vrot.lane.b32.xlu0 %v6821_v34, %s6648_s20  ;;  %2618 = vrot.lane.b32.xlu1 %v6821_v34, %s6649_s23  ;;  %s672_s20 = scalar_lea.vmem %s7697_s2, %s5544_s15  ;;  %s5804_s15 = sshll.u32 %s7714_s30, 8 }
 0x162   : > { %v994_v35 = vpop.permute.xlu0 %993  ;;  %v1106_v37 = vpop.permute.xlu1 %1105 }
 0x163   : > { %v999_v36 = vsel %vm875_vm2, %v994_v35, 0  ;;  %v1111_v39 = vsel %vm875_vm2, %v1106_v37, 0 }
 0x164   : > { %6102 = vmatpush3.bf16.xpose.msra.mxu0 %v999_v36 }
 0x165   : > { %6113 = vmatprep.subr.bf16.mxu0 %v6637_v0 }
 0x166   : > { %v992_v38 = vpop.permute.xlu0 %991  ;;  %v1104_v41 = vpop.permute.xlu1 %1103 }
 0x16a   : > { %v1218_v40 = vpop.permute.xlu0 %1217  ;;  %v1216_v43 = vpop.permute.xlu1 %1215 }
 0x16b   : > { %6104 = vmatmul.mubr.msk.bf16.vlgmr.msra.gmra.mrb[8].mxu0 %vm875_vm2, %v992_v38  ;;  %v1223_v42 = vsel %vm875_vm2, %v1218_v40, 0 }
 0x16c   : > { %6114 = vmatpush3.bf16.xpose.msra.mxu0 %v1111_v39  ;;  %6115 = vmatprep.mubr.msk.bf16.mxu0 %vm6638_vm0, %v6637_v0 }
 0x16d   : > { %6125 = vmatprep.subr.bf16.mxu0 %v6637_v0 }
 0x16e   : > { %v1463_v45 = vpop.permute.xlu0 %1462  ;;  %v1461_v48 = vpop.permute.xlu1 %1460 }
 0x16f   : > { %v1468_v46 = vsel %vm875_vm2, %v1463_v45, 0 }
 0x172   : > { %v1575_v47 = vpop.permute.xlu0 %1574  ;;  %v1573_v51 = vpop.permute.xlu1 %1572 }
 0x173   : > { %6116 = vmatmul.mubr.msk.bf16.vlgmr.msra.gmra.mrb[12].mxu0 %vm875_vm2, %v1104_v41  ;;  %v1580_v49 = vsel %vm875_vm2, %v1575_v47, 0 }
 0x174   : > { %6126 = vmatpush3.bf16.xpose.msra.mxu0 %v1223_v42  ;;  %6127 = vmatprep.mubr.msk.bf16.mxu0 %vm6638_vm0, %v6637_v0 }
 0x175   : > { %6137 = vmatprep.subr.bf16.mxu0 %v6637_v0 }
 0x176   : > { %v1687_v50 = vpop.permute.xlu0 %1686  ;;  %v1685_v54 = vpop.permute.xlu1 %1684 }
 0x177   : > { %v1692_v52 = vsel %vm875_vm2, %v1687_v50, 0 }
 0x17a   : > { %v1814_v53 = vpop.permute.xlu0 %1813  ;;  %v1812_v57 = vpop.permute.xlu1 %1811 }
 0x17b   : > { %6128 = vmatmul.mubr.msk.bf16.vlgmr.msra.gmra.mrb[16].mxu0 %vm875_vm2, %v1216_v43  ;;  %v1819_v55 = vsel %vm875_vm2, %v1814_v53, 0 }
 0x17c   : > { %6138 = vmatpush3.bf16.xpose.msra.mxu0 %v1350_v44  ;;  %6139 = vmatprep.mubr.msk.bf16.mxu0 %vm6638_vm0, %v6637_v0 }
 0x17d   : > { %6149 = vmatprep.subr.bf16.mxu0 %v6637_v0 }
 0x17e   : > { %v1930_v56 = vpop.permute.xlu0 %1929  ;;  %v1928_v60 = vpop.permute.xlu1 %1927 }
 0x17f   : > { %v1935_v58 = vsel %vm875_vm2, %v1930_v56, 0 }
 0x182   : > { %v2042_v59 = vpop.permute.xlu0 %2041  ;;  %v2040_v63 = vpop.permute.xlu1 %2039 }
 0x183   : > { %6140 = vmatmul.mubr.msk.bf16.vlgmr.msra.gmra.mrb[20].mxu0 %vm875_vm2, %v6821_v34  ;;  %v2047_v61 = vsel %vm875_vm2, %v2042_v59, 0 }
 0x184   : > { %6150 = vmatpush3.bf16.xpose.msra.mxu0 %v1468_v46  ;;  %6151 = vmatprep.mubr.msk.bf16.mxu0 %vm6638_vm0, %v6637_v0 }
 0x185   : > { %6161 = vmatprep.subr.bf16.mxu0 %v6637_v0 }
 0x186   : > { %v2154_v62 = vpop.permute.xlu0 %2153  ;;  %v2152_v3 = vpop.permute.xlu1 %2151 }
 0x187   : > { %v2159_v1 = vsel %vm875_vm2, %v2154_v62, 0 }
 0x18a   : > { %v2281_v2 = vpop.permute.xlu0 %2280  ;;  %v2279_v6 = vpop.permute.xlu1 %2278 }
 0x18b   : > { %6152 = vmatmul.mubr.msk.bf16.vlgmr.msra.gmra.mrb[24].mxu0 %vm875_vm2, %v1461_v48  ;;  %v2286_v4 = vsel %vm875_vm2, %v2281_v2, 0 }
 0x18c   : > { %6162 = vmatpush3.bf16.xpose.msra.mxu0 %v1580_v49  ;;  %6163 = vmatprep.mubr.msk.bf16.mxu0 %vm6638_vm0, %v6637_v0 }
 0x18d   : > { %6173 = vmatprep.subr.bf16.mxu0 %v6637_v0 }
 0x18e   : > { %v2397_v5 = vpop.permute.xlu0 %2396  ;;  %v2395_v10 = vpop.permute.xlu1 %2394 }
 0x18f   : > { %v2402_v7 = vsel %vm875_vm2, %v2397_v5, 0 }
 0x192   : > { %v2509_v8 = vpop.permute.xlu0 %2508  ;;  %v2507_v24 = vpop.permute.xlu1 %2506 }
 0x193   : > { %6164 = vmatmul.mubr.msk.bf16.vlgmr.msra.gmra.mrb[28].mxu0 %vm875_vm2, %v1573_v51  ;;  %v2514_v11 = vsel %vm875_vm2, %v2509_v8, 0 }
 0x194   : > { %6174 = vmatpush3.bf16.xpose.msra.mxu0 %v1692_v52  ;;  %6175 = vmatprep.mubr.msk.bf16.mxu0 %vm6638_vm0, %v6637_v0  ;;  %v1396_v52 = vrot.slane %v739_v9, %v6796_v13 }
 0x195   : > { %6185 = vmatprep.subr.bf16.mxu0 %v6637_v0 }
 0x196   : > { %v2621_v22 = vpop.permute.xlu0 %2620  ;;  %v2619_v27 = vpop.permute.xlu1 %2618 }
 0x197   : > { %v2626_v26 = vsel %vm875_vm2, %v2621_v22, 0 }
 0x19b   : > { %6176 = vmatmul.mubr.msk.bf16.vlgmr.msra.gmra.mrb[32].mxu0 %vm875_vm2, %v1685_v54 }
 0x19c   : > { %6186 = vmatpush3.bf16.xpose.msra.mxu0 %v1819_v55  ;;  %6187 = vmatprep.mubr.msk.bf16.mxu0 %vm6638_vm0, %v6637_v0 }
 0x19d   : > { %6197 = vmatprep.subr.bf16.mxu0 %v6637_v0 }
 0x1a3   : > { %6188 = vmatmul.mubr.msk.bf16.vlgmr.msra.gmra.mrb[36].mxu0 %vm875_vm2, %v1812_v57 }
 0x1a4   : > { %6198 = vmatpush3.bf16.xpose.msra.mxu0 %v1935_v58  ;;  %6199 = vmatprep.mubr.msk.bf16.mxu0 %vm6638_vm0, %v6637_v0 }
 0x1a5   : > { %6209 = vmatprep.subr.bf16.mxu0 %v6637_v0 }
 0x1ab   : > { %6200 = vmatmul.mubr.msk.bf16.vlgmr.msra.gmra.mrb[40].mxu0 %vm875_vm2, %v1928_v60 }
 0x1ac   : > { %6210 = vmatpush3.bf16.xpose.msra.mxu0 %v2047_v61  ;;  %6211 = vmatprep.mubr.msk.bf16.mxu0 %vm6638_vm0, %v6637_v0 }
 0x1ad   : > { %6221 = vmatprep.subr.bf16.mxu0 %v6637_v0 }
 0x1b3   : > { %6212 = vmatmul.mubr.msk.bf16.vlgmr.msra.gmra.mrb[44].mxu0 %vm875_vm2, %v2040_v63 }
 0x1b4   : > { %6222 = vmatpush3.bf16.xpose.msra.mxu0 %v2159_v1  ;;  %6223 = vmatprep.mubr.msk.bf16.mxu0 %vm6638_vm0, %v6637_v0 }
 0x1b5   : > { %6233 = vmatprep.subr.bf16.mxu0 %v6637_v0 }
 0x1bb   : > { %6224 = vmatmul.mubr.msk.bf16.vlgmr.msra.gmra.mrb[48].mxu0 %vm875_vm2, %v2152_v3 }
 0x1bc   : > { %6234 = vmatpush3.bf16.xpose.msra.mxu0 %v2286_v4  ;;  %6235 = vmatprep.mubr.msk.bf16.mxu0 %vm6638_vm0, %v6637_v0 }
 0x1bd   : > { %6245 = vmatprep.subr.bf16.mxu0 %v6637_v0 }
 0x1c3   : > { %6236 = vmatmul.mubr.msk.bf16.vlgmr.msra.gmra.mrb[52].mxu0 %vm875_vm2, %v2279_v6 }
 0x1c4   : > { %6246 = vmatpush3.bf16.xpose.msra.mxu0 %v2402_v7  ;;  %6247 = vmatprep.mubr.msk.bf16.mxu0 %vm6638_vm0, %v6637_v0 }
 0x1c5   : > { %6257 = vmatprep.subr.bf16.mxu0 %v6637_v0 }
 0x1cb   : > { %6248 = vmatmul.mubr.msk.bf16.vlgmr.msra.gmra.mrb[56].mxu0 %vm875_vm2, %v2395_v10 }
 0x1cc   : > { %v916_v16 = vpop.f32.mrb[4].mxu0  ;;  %6258 = vmatpush3.bf16.xpose.msra.mxu0 %v2514_v11  ;;  %6259 = vmatprep.mubr.msk.bf16.mxu0 %vm6638_vm0, %v6637_v0 }
 0x1cd   : > { %v922_v17 = vmul.f32 0.35355338, %v916_v16  ;;  %v6093_v18 = vpop.f32.mrb[5].mxu0  ;;  %6269 = vmatprep.subr.bf16.mxu0 %v6637_v0 }
 0x1ce   : > { %v919_v19 = vpop.f32.mrb[6].mxu0 }
 0x1cf   : > { %v6094_v20 = vpop.f32.mrb[7].mxu0  ;;  %v6931_v21 = vadd.f32 %v926_v14, %v922_v17 }
 0x1d1   : > { %v928_v23 = vsel %vm875_vm2, %v6931_v21, -inf }
 0x1d2   : > { %929 = vmax.xlane.f32.xlu0 %v928_v23 }
 0x1d3   : > { %6260 = vmatmul.mubr.msk.bf16.vlgmr.msra.gmra.mrb[60].mxu0 %vm875_vm2, %v2507_v24 }
 0x1d4   : > { %6270 = vmatpush3.bf16.xpose.msra.mxu0 %v2626_v26  ;;  %6271 = vmatprep.mubr.msk.bf16.mxu0 %vm6638_vm0, %v6637_v0 }
 0x1d5   : > { %6281 = vmatprep.subr.bf16.mxu0 %v6637_v0 }
 0x1db   : > { %6272 = vmatmul.mubr.msk.bf16.vlgmr.msra.gmra.mrb[64].mxu0 %vm875_vm2, %v2619_v27 }
 0x1dc   : > { %6285 = vmatprep.mubr.msk.bf16.mxu0 %vm6638_vm0, %v6637_v0 }
 0x23e   : > { %v1035_v28 = vpop.f32.mrb[8].mxu0 }
 0x23f   : > { %v1041_v30 = vmul.f32 0.35355338, %v1035_v28  ;;  %v6105_v31 = vpop.f32.mrb[9].mxu0 }
 0x240   : > { %v1038_v32 = vpop.f32.mrb[10].mxu0 }
 0x241   : > { %v6106_v35 = vpop.f32.mrb[11].mxu0  ;;  %v6943_v36 = vadd.f32 %v1041_v30, %v926_v14 }
 0x243   : > { %v1043_v37 = vsel %vm875_vm2, %v6943_v36, -inf }
 0x244   : > { %1044 = vmax.xlane.f32.xlu1 %v1043_v37 }
 0x246   : > { %v1147_v38 = vpop.f32.mrb[12].mxu0 }
 0x247   : > { %v1153_v39 = vmul.f32 0.35355338, %v1147_v38  ;;  %v6117_v40 = vpop.f32.mrb[13].mxu0 }
 0x248   : > { %v1150_v41 = vpop.f32.mrb[14].mxu0 }
 0x249   : > { %v6118_v42 = vpop.f32.mrb[15].mxu0  ;;  %v6947_v43 = vadd.f32 %v1153_v39, %v926_v14 }
 0x24b   : > { %v1155_v44 = vsel %vm875_vm2, %v6947_v43, -inf }
 0x24c   : > { %1156 = vmax.xlane.f32.xlu0 %v1155_v44 }
 0x24e   : > { %v1259_v45 = vpop.f32.mrb[16].mxu0 }
 0x24f   : > { %v1265_v46 = vmul.f32 0.35355338, %v1259_v45  ;;  %v6129_v47 = vpop.f32.mrb[17].mxu0 }
 0x250   : > { %v1262_v48 = vpop.f32.mrb[18].mxu0 }
 0x251   : > { %v6130_v49 = vpop.f32.mrb[19].mxu0  ;;  %v6951_v50 = vadd.f32 %v1265_v46, %v926_v14 }
 0x253   : > { %v1267_v51 = vsel %vm875_vm2, %v6951_v50, -inf }
 0x254   : > { %1268 = vmax.xlane.f32.xlu0 %v1267_v51 }
 0x256   : > { %v1386_v53 = vpop.f32.mrb[20].mxu0 }
 0x257   : > { %v1392_v54 = vmul.f32 0.35355338, %v1386_v53  ;;  %v6141_v55 = vpop.f32.mrb[21].mxu0 }
 0x258   : > { %v1389_v56 = vpop.f32.mrb[22].mxu0 }
 0x259   : > { %v6142_v57 = vpop.f32.mrb[23].mxu0  ;;  %v6956_v58 = vadd.f32 %v1396_v52, %v1392_v54 }
 0x25b   : > { %v1398_v59 = vsel %vm875_vm2, %v6956_v58, -inf }
 0x25c   : > { %1399 = vmax.xlane.f32.xlu1 %v1398_v59 }
 0x25e   : > { %v1504_v60 = vpop.f32.mrb[24].mxu0 }
 0x25f   : > { %v1510_v61 = vmul.f32 0.35355338, %v1504_v60  ;;  %v6153_v62 = vpop.f32.mrb[25].mxu0  ;;  %v930_v31 = vpop.xlane.xlu0 %929 }
 0x260   : > { %v1507_v63 = vpop.f32.mrb[26].mxu0  ;;  %v931_v37 = vsub.f32 %v6931_v21, %v930_v31 }
 0x261   : > { %v6154_v1 = vpop.f32.mrb[27].mxu0  ;;  %v6960_v2 = vadd.f32 %v1510_v61, %v1396_v52 }
 0x262   : > { %v932_v39 = vmul.f32 1.442695, %v931_v37 }
 0x263   : > { %v1512_v3 = vsel %vm875_vm2, %v6960_v2, -inf }
 0x264   : > { %1513 = vmax.xlane.f32.xlu0 %v1512_v3  ;;  %6536 = vpow2.f32 %v932_v39 }
 0x266   : > { %v1616_v4 = vpop.f32.mrb[28].mxu0 }
 0x267   : > { %v1622_v5 = vmul.f32 0.35355338, %v1616_v4  ;;  %v6165_v6 = vpop.f32.mrb[29].mxu0 }
 0x268   : > { %v1619_v7 = vpop.f32.mrb[30].mxu0 }
 0x269   : > { %v6166_v8 = vpop.f32.mrb[31].mxu0  ;;  %v6964_v9 = vadd.f32 %v1622_v5, %v1396_v52 }
 0x26b   : > { %v1624_v10 = vsel %vm875_vm2, %v6964_v9, -inf }
 0x26c   : > { %1625 = vmax.xlane.f32.xlu1 %v1624_v10 }
 0x26e   : > { %v1728_v11 = vpop.f32.mrb[32].mxu0  ;;  %v6987_v21 = vpop.eup %6536 }
 0x26f   : > { %v6177_v14 = vpop.f32.mrb[33].mxu0  ;;  %v1734_v41 = vmul.f32 0.35355338, %v1728_v11  ;;  %v934_v56 = vsel %vm875_vm2, %v6987_v21, 0.0 }
 0x270   : > { %v1731_v16 = vpop.f32.mrb[34].mxu0 }
 0x271   : > { %v6178_v17 = vpop.f32.mrb[35].mxu0  ;;  %v6981_v45 = vadd.f32 %v1734_v41, %v1396_v52 }
 0x273   : > { %v1736_v49 = vsel %vm875_vm2, %v6981_v45, -inf }
 0x276   : > { %v6968_v18 = vpop.f32.mrb[36].mxu0 }
 0x277   : > { %v6189_v19 = vpop.f32.mrb[37].mxu0 }
 0x278   : > { %v1858_v20 = vpop.f32.mrb[38].mxu0 }
 0x279   : > { %v6190_v22 = vpop.f32.mrb[39].mxu0 }
 0x27a   : > { %1055 = vrot.lane.b32.xlu0 %v6804_v25, %s6645_s18 }
 0x27d   : > { %941 = vrot.lane.b32.xlu1 %v6804_v25, %s6643_s27 }
 0x27e   : > { %v6974_v23 = vpop.f32.mrb[40].mxu0 }
 0x27f   : > { %v6201_v24 = vpop.f32.mrb[41].mxu0 }
 0x280   : > { %v1974_v26 = vpop.f32.mrb[42].mxu0 }
 0x281   : > { %v6202_v27 = vpop.f32.mrb[43].mxu0 }
 0x286   : > { %v6976_v28 = vpop.f32.mrb[44].mxu0 }
 0x287   : > { %v6213_v30 = vpop.f32.mrb[45].mxu0 }
 0x288   : > { %v2086_v32 = vpop.f32.mrb[46].mxu0 }
 0x289   : > { %v6214_v35 = vpop.f32.mrb[47].mxu0 }
 0x28e   : > { %v6979_v38 = vpop.f32.mrb[48].mxu0 }
 0x28f   : > { %v6225_v40 = vpop.f32.mrb[49].mxu0 }
 0x290   : > { %v2198_v42 = vpop.f32.mrb[50].mxu0 }
 0x291   : > { %v6226_v44 = vpop.f32.mrb[51].mxu0 }
 0x296   : > { %v6983_v46 = vpop.f32.mrb[52].mxu0 }
 0x297   : > { %v6237_v47 = vpop.f32.mrb[53].mxu0 }
 0x298   : > { %v2325_v48 = vpop.f32.mrb[54].mxu0 }
 0x299   : > { %1737 = vmax.xlane.f32.xlu0 %v1736_v49  ;;  %v6238_v51 = vpop.f32.mrb[55].mxu0 }
 0x29e   : > { %v6989_v53 = vpop.f32.mrb[56].mxu0 }
 0x29f   : > { %v6249_v54 = vpop.f32.mrb[57].mxu0 }
 0x2a0   : > { %v2441_v55 = vpop.f32.mrb[58].mxu0 }
 0x2a1   : > { %935 = vadd.xlane.f32.xlu1 %v934_v56  ;;  %v6250_v52 = vpop.f32.mrb[59].mxu0 }
 0x2a6   : > { %v6993_v57 = vpop.f32.mrb[60].mxu0 }
 0x2a7   : > { %v6261_v59 = vpop.f32.mrb[61].mxu0 }
 0x2a8   : > { %v2553_v60 = vpop.f32.mrb[62].mxu0 }
 0x2a9   : > { %v6262_v61 = vpop.f32.mrb[63].mxu0  ;;  %v1861_v60 = vmul.f32 0.35355338, %v6968_v18 }
 0x2ae   : > { %v6995_v62 = vpop.f32.mrb[64].mxu0 }
 0x2af   : > { %v6273_v63 = vpop.f32.mrb[65].mxu0 }
 0x2b0   : > { %v2665_v1 = vpop.f32.mrb[66].mxu0  ;;  %v2089_v63 = vmul.f32 0.35355338, %v6976_v28  ;;  %v1977_v28 = vmul.f32 0.35355338, %v6974_v23 }
 0x2b1   : > { %v6274_v3 = vpop.f32.mrb[67].mxu0 }
 0x2b2   : > { %v2328_v3 = vmul.f32 0.35355338, %v6983_v46 }
 0x2d1   : > { %v1045_v4 = vpop.xlane.xlu1 %1044 }
 0x2d2   : > { %v1046_v5 = vsub.f32 %v6943_v36, %v1045_v4 }
 0x2d4   : > { %v1047_v6 = vmul.f32 1.442695, %v1046_v5 }
 0x2d6   : > { %6538 = vpow2.f32 %v1047_v6  ;;  %v2556_v6 = vmul.f32 0.35355338, %v6993_v57 }
 0x2d9   : > { %v1157_v7 = vpop.xlane.xlu0 %1156 }
 0x2da   : > { %v1158_v8 = vsub.f32 %v6947_v43, %v1157_v7 }
 0x2dc   : > { %v1159_v10 = vmul.f32 1.442695, %v1158_v8 }
 0x2de   : > { %6540 = vpow2.f32 %v1159_v10  ;;  %v2201_v10 = vmul.f32 0.35355338, %v6979_v38 }
 0x2e0   : > { %v6999_v11 = vpop.eup %6538 }
 0x2e1   : > { %v1049_v14 = vsel %vm875_vm2, %v6999_v11, 0.0  ;;  %v1269_v20 = vpop.xlane.xlu0 %1268 }
 0x2e2   : > { %1050 = vadd.xlane.f32.xlu0 %v1049_v14  ;;  %v1270_v24 = vsub.f32 %v6951_v50, %v1269_v20 }
 0x2e4   : > { %v1271_v26 = vmul.f32 1.442695, %v1270_v24 }
 0x2e6   : > { %6542 = vpow2.f32 %v1271_v26 }
 0x2e8   : > { %v7003_v16 = vpop.eup %6540 }
 0x2e9   : > { %v1161_v17 = vsel %vm875_vm2, %v7003_v16, 0.0  ;;  %v1400_v36 = vpop.xlane.xlu1 %1399 }
 0x2ea   : > { %1162 = vadd.xlane.f32.xlu1 %v1161_v17  ;;  %v1401_v27 = vsub.f32 %v6956_v58, %v1400_v36  ;;  %v2444_v17 = vmul.f32 0.35355338, %v6989_v53 }
 0x2ec   : > { %v1402_v32 = vmul.f32 1.442695, %v1401_v27 }
 0x2ee   : > { %6544 = vpow2.f32 %v1402_v32 }
 0x2f0   : > { %v7017_v39 = vpop.eup %6542 }
 0x2f1   : > { %v1514_v30 = vpop.xlane.xlu0 %1513  ;;  %v1273_v50 = vsel %vm875_vm2, %v7017_v39, 0.0 }
 0x2f2   : > { %v1515_v31 = vsub.f32 %v6960_v2, %v1514_v30 }
 0x2f4   : > { %v1516_v35 = vmul.f32 1.442695, %v1515_v31 }
 0x2f5   : > { %v1056_v44 = vpop.permute.xlu0 %1055 }
 0x2f6   : > { %6546 = vpow2.f32 %v1516_v35  ;;  %v1061_v59 = vsel %vm946_vm3, %v1056_v44, 0 }
 0x2f8   : > { %1167 = vrot.lane.b32.xlu0 %v6804_v25, %s6647_s29  ;;  %v7021_v40 = vpop.eup %6544 }
 0x2f9   : > { %v1626_v19 = vpop.xlane.xlu1 %1625  ;;  %v1404_v2 = vsel %vm875_vm2, %v7021_v40, 0.0 }
 0x2fb   : > { %1279 = vrot.lane.b32.xlu1 %v6804_v25, %s6649_s23  ;;  %v1627_v25 = vsub.f32 %v6964_v9, %v1626_v19  ;;  %v2668_v19 = vmul.f32 0.35355338, %v6995_v62 }
 0x2fd   : > { %v942_v43 = vpop.permute.xlu1 %941  ;;  %v1628_v37 = vmul.f32 1.442695, %v1627_v25 }
 0x2fe   : > { %v948_v22 = vsel %vm946_vm3, %v942_v43, 0 }
 0x2ff   : > { %6096 = vmatpush3.bf16.msra.mxu1 %v948_v22  ;;  %6548 = vpow2.f32 %v1628_v37 }
 0x300   : > { %6107 = vmatprep.subr.bf16.mxu1 %v6637_v0  ;;  %v7023_v58 = vpop.eup %6546 }
 0x301   : > { %v1518_v9 = vsel %vm875_vm2, %v7023_v58, 0.0 }
 0x309   : > { %v7027_v41 = vpop.eup %6548 }
 0x30a   : > { %v1630_v42 = vsel %vm875_vm2, %v7027_v41, 0.0 }
 0x317   : > { %1274 = vadd.xlane.f32.xlu0 %v1273_v50 }
 0x31b   : > { %1405 = vadd.xlane.f32.xlu0 %v1404_v2 }
 0x31f   : > { %1519 = vadd.xlane.f32.xlu1 %v1518_v9  ;;  %1631 = vadd.xlane.f32.xlu0 %v1630_v42 }
 0x326   : > { %v1738_v47 = vpop.xlane.xlu0 %1737 }
 0x327   : > { %v1739_v48 = vsub.f32 %v6981_v45, %v1738_v47 }
 0x329   : > { %v1740_v49 = vmul.f32 1.442695, %v1739_v48 }
 0x32b   : > { %6550 = vpow2.f32 %v1740_v49 }
 0x32e   : > { %v936_v51 = vpop.xlane.xlu1 %935 }
 0x32f   : > { %6552 = vrcp.f32 %v936_v51 }
 0x330   : > { %1524 = vrot.lane.b32.xlu1 %v6819_v33, %s6645_s18 }
 0x334   : > { %1636 = vrot.lane.b32.xlu1 %v6819_v33, %s6647_s29  ;;  %s7224_s29 = scalar_lea.vmem %s7701_s6, %s7216_s19 }
 0x335   : > { %v7038_v54 = vpop.eup %6550 }
 0x336   : > { %v1742_v55 = vsel %vm875_vm2, %v7038_v54, 0.0 }
 0x337   : > { %1743 = vadd.xlane.f32.xlu0 %v1742_v55 }
 0x338   : > { %1748 = vrot.lane.b32.xlu1 %v6819_v33, %s6649_s23  ;;  %s6650_s23 = smov 32  }
 0x339   : > { %v6553_v45 = vpop.eup %6552 }
 0x33a   : > { %v938_v56 = vmul.f32 %v6553_v45, %v6987_v21  ;;  %v738_v21 = vld [vmem:[%s672_s20] sm:$0x3]  ;;  %s703_s20 = scalar_lea.vmem %s7703_s8, %s6749_s16 }
 0x33b   : > { %v1865_v61 = vrot.slane %v738_v21, %v6800_v15 }
 0x33c   : > { %v939_v52 = vpack.c.bf16 %v938_v56, %v938_v56 }
 0x33d   : > { %v7059_v1 = vadd.f32 %v1865_v61, %v1861_v60  ;;  %v7064_v5 = vadd.f32 %v2089_v63, %v1865_v61  ;;  %v7080_v57 = vadd.f32 %v1977_v28, %v1865_v61  ;;  %v7085_v23 = vadd.f32 %v2201_v10, %v1865_v61 }
 0x33e   : > { %6098 = vmatmul.mubr.msk.bf16.vlgmr.msra.gmra.mrb[4].mxu1 %vm875_vm2, %v939_v52 }
 0x33f   : > { %6108 = vmatpush3.bf16.msra.mxu1 %v1061_v59  ;;  %6109 = vmatprep.mubr.msk.bf16.mxu1 %vm6638_vm0, %v6637_v0  ;;  %v1867_v4 = vsel %vm875_vm2, %v7059_v1, -inf  ;;  %v2091_v18 = vsel %vm875_vm2, %v7064_v5, -inf  ;;  %v1979_v36 = vsel %vm875_vm2, %v7080_v57, -inf  ;;  %v2203_v38 = vsel %vm875_vm2, %v7085_v23, -inf }
 0x340   : > { %6119 = vmatprep.subr.bf16.mxu1 %v6637_v0 }
 0x34d   : > { %1411 = vrot.lane.b32.xlu0 %v6819_v33, %s6643_s27  ;;  %v2332_v33 = vrot.slane %v738_v21, %v6796_v13 }
 0x34f   : > { %v7070_v7 = vadd.f32 %v2332_v33, %v2328_v3  ;;  %v7075_v8 = vadd.f32 %v2556_v6, %v2332_v33  ;;  %v7090_v20 = vadd.f32 %v2444_v17, %v2332_v33  ;;  %v7094_v53 = vadd.f32 %v2668_v19, %v2332_v33 }
 0x351   : > { %v2334_v46 = vsel %vm875_vm2, %v7070_v7, -inf  ;;  %v2558_v14 = vsel %vm875_vm2, %v7075_v8, -inf  ;;  %v2446_v22 = vsel %vm875_vm2, %v7090_v20, -inf  ;;  %v2670_v26 = vsel %vm875_vm2, %v7094_v53, -inf }
 0x35c   : > { %1868 = vmax.xlane.f32.xlu1 %v1867_v4 }
 0x360   : > { %2092 = vmax.xlane.f32.xlu1 %v2091_v18 }
 0x364   : > { %2335 = vmax.xlane.f32.xlu1 %v2334_v46 }
 0x368   : > { %2559 = vmax.xlane.f32.xlu1 %v2558_v14 }
 0x36c   : > { %1980 = vmax.xlane.f32.xlu0 %v1979_v36 }
 0x36f   : > { %v1051_v43 = vpop.xlane.xlu0 %1050 }
 0x370   : > { %6554 = vrcp.f32 %v1051_v43  ;;  %2204 = vmax.xlane.f32.xlu0 %v2203_v38 }
 0x373   : > { %v1168_v30 = vpop.permute.xlu0 %1167 }
 0x374   : > { %2447 = vmax.xlane.f32.xlu0 %v2446_v22  ;;  %v1173_v32 = vsel %vm946_vm3, %v1168_v30, 0 }
 0x377   : > { %v1163_v24 = vpop.xlane.xlu1 %1162 }
 0x378   : > { %6556 = vrcp.f32 %v1163_v24  ;;  %2671 = vmax.xlane.f32.xlu0 %v2670_v26 }
 0x379   : > { %1879 = vrot.lane.b32.xlu1 %v6806_v29, %s6650_s23 }
 0x37a   : > { %v6555_v62 = vpop.eup %6554 }
 0x37b   : > { %v1053_v27 = vmul.f32 %v6555_v62, %v6999_v11  ;;  %v1280_v37 = vpop.permute.xlu1 %1279 }
 0x37c   : > { %v1285_v2 = vsel %vm946_vm3, %v1280_v37, 0 }
 0x37d   : > { %v1054_v31 = vpack.c.bf16 %v1053_v27, %v1053_v27 }
 0x37f   : > { %6110 = vmatmul.mubr.msk.bf16.vlgmr.msra.gmra.mrb[8].mxu1 %vm875_vm2, %v1054_v31 }
 0x380   : > { %6120 = vmatpush3.bf16.msra.mxu1 %v1173_v32  ;;  %6121 = vmatprep.mubr.msk.bf16.mxu1 %vm6638_vm0, %v6637_v0 }
 0x381   : > { %6131 = vmatprep.subr.bf16.mxu1 %v6637_v0 }
 0x382   : > { %v6557_v25 = vpop.eup %6556 }
 0x383   : > { %v1165_v35 = vmul.f32 %v6557_v25, %v7003_v16 }
 0x385   : > { %v1166_v50 = vpack.c.bf16 %v1165_v35, %v1165_v35 }
 0x387   : > { %6122 = vmatmul.mubr.msk.bf16.vlgmr.msra.gmra.mrb[12].mxu1 %vm875_vm2, %v1166_v50 }
 0x388   : > { %6132 = vmatpush3.bf16.msra.mxu1 %v1285_v2  ;;  %6133 = vmatprep.mubr.msk.bf16.mxu1 %vm6638_vm0, %v6637_v0 }
 0x389   : > { %6143 = vmatprep.subr.bf16.mxu1 %v6637_v0 }
 0x38e   : > { %1991 = vrot.lane.b32.xlu0 %v6806_v29, %s6651_s24 }
 0x3a4   : > { %v1275_v11 = vpop.xlane.xlu0 %1274 }
 0x3a5   : > { %6558 = vrcp.f32 %v1275_v11 }
 0x3a8   : > { %v1406_v44 = vpop.xlane.xlu0 %1405 }
 0x3a9   : > { %6560 = vrcp.f32 %v1406_v44 }
 0x3ac   : > { %v1520_v47 = vpop.xlane.xlu1 %1519  ;;  %v1632_v48 = vpop.xlane.xlu0 %1631 }
 0x3ad   : > { %6562 = vrcp.f32 %v1520_v47 }
 0x3ae   : > { %6564 = vrcp.f32 %v1632_v48 }
 0x3af   : > { %v6559_v9 = vpop.eup %6558 }
 0x3b0   : > { %v1277_v16 = vmul.f32 %v6559_v9, %v7017_v39  ;;  %v1525_v39 = vpop.permute.xlu1 %1524 }
 0x3b1   : > { %v1530_v21 = vsel %vm946_vm3, %v1525_v39, 0 }
 0x3b2   : > { %v1278_v42 = vpack.c.bf16 %v1277_v16, %v1277_v16 }
 0x3b3   : > { %v6561_v49 = vpop.eup %6560 }
 0x3b4   : > { %6134 = vmatmul.mubr.msk.bf16.vlgmr.msra.gmra.mrb[16].mxu1 %vm875_vm2, %v1278_v42  ;;  %v1408_v55 = vmul.f32 %v6561_v49, %v7021_v40  ;;  %v1637_v60 = vpop.permute.xlu1 %1636 }
 0x3b5   : > { %6145 = vmatprep.mubr.msk.bf16.mxu1 %vm6638_vm0, %v6637_v0  ;;  %v1642_v3 = vsel %vm946_vm3, %v1637_v60, 0 }
 0x3b6   : > { %v1409_v52 = vpack.c.bf16 %v1408_v55, %v1408_v55 }
 0x3b7   : > { %v6563_v59 = vpop.eup %6562 }
 0x3b8   : > { %v1522_v40 = vmul.f32 %v6563_v59, %v7023_v58  ;;  %v6565_v63 = vpop.eup %6564  ;;  %v1749_v33 = vpop.permute.xlu1 %1748 }
 0x3b9   : > { %v1634_v4 = vmul.f32 %v6565_v63, %v7027_v41  ;;  %v1754_v18 = vsel %vm946_vm3, %v1749_v33, 0 }
 0x3ba   : > { %v1523_v61 = vpack.c.bf16 %v1522_v40, %v1522_v40 }
 0x3bb   : > { %v1635_v58 = vpack.c.bf16 %v1634_v4, %v1634_v4 }
 0x3c4   : > { %v1744_v51 = vpop.xlane.xlu0 %1743 }
 0x3c5   : > { %6566 = vrcp.f32 %v1744_v51 }
 0x3c8   : > { %v1412_v45 = vpop.permute.xlu0 %1411 }
 0x3c9   : > { %v1417_v56 = vsel %vm946_vm3, %v1412_v45, 0 }
 0x3ca   : > { %6144 = vmatpush3.bf16.msra.mxu1 %v1417_v56 }
 0x3cb   : > { %6155 = vmatprep.subr.bf16.mxu1 %v6637_v0 }
 0x3cd   : > { %6146 = vmatmul.mubr.msk.bf16.vlgmr.msra.gmra.mrb[20].mxu1 %vm875_vm2, %v1409_v52 }
 0x3ce   : > { %6156 = vmatpush3.bf16.msra.mxu1 %v1530_v21  ;;  %6157 = vmatprep.mubr.msk.bf16.mxu1 %vm6638_vm0, %v6637_v0 }
 0x3cf   : > { %6167 = vmatprep.subr.bf16.mxu1 %v6637_v0  ;;  %v6567_v6 = vpop.eup %6566 }
 0x3d0   : > { %v1746_v28 = vmul.f32 %v6567_v6, %v7038_v54 }
 0x3d2   : > { %v1747_v46 = vpack.c.bf16 %v1746_v28, %v1746_v28 }
 0x3d5   : > { %6158 = vmatmul.mubr.msk.bf16.vlgmr.msra.gmra.mrb[24].mxu1 %vm875_vm2, %v1523_v61 }
 0x3d6   : > { %6168 = vmatpush3.bf16.msra.mxu1 %v1642_v3  ;;  %6169 = vmatprep.mubr.msk.bf16.mxu1 %vm6638_vm0, %v6637_v0 }
 0x3d7   : > { %6179 = vmatprep.subr.bf16.mxu1 %v6637_v0 }
 0x3dd   : > { %6170 = vmatmul.mubr.msk.bf16.vlgmr.msra.gmra.mrb[28].mxu1 %vm875_vm2, %v1635_v58 }
 0x3de   : > { %6180 = vmatpush3.bf16.msra.mxu1 %v1754_v18  ;;  %6181 = vmatprep.mubr.msk.bf16.mxu1 %vm6638_vm0, %v6637_v0 }
 0x3df   : > { %6191 = vmatprep.subr.bf16.mxu1 %v6637_v0 }
 0x3e5   : > { %6182 = vmatmul.mubr.msk.bf16.vlgmr.msra.gmra.mrb[32].mxu1 %vm875_vm2, %v1747_v46 }
 0x3e6   : > { %6193 = vmatprep.mubr.msk.bf16.mxu1 %vm6638_vm0, %v6637_v0 }
 0x3e9   : > { %v1869_v41 = vpop.xlane.xlu1 %1868 }
 0x3ea   : > { %v1870_v10 = vsub.f32 %v7059_v1, %v1869_v41 }
 0x3ec   : > { %v1871_v14 = vmul.f32 1.442695, %v1870_v10 }
 0x3ed   : > { %v2093_v17 = vpop.xlane.xlu1 %2092 }
 0x3ee   : > { %6568 = vpow2.f32 %v1871_v14  ;;  %v2094_v36 = vsub.f32 %v7064_v5, %v2093_v17 }
 0x3f0   : > { %v2095_v19 = vmul.f32 1.442695, %v2094_v36 }
 0x3f1   : > { %v2336_v43 = vpop.xlane.xlu1 %2335 }
 0x3f2   : > { %6570 = vpow2.f32 %v2095_v19  ;;  %v2337_v42 = vsub.f32 %v7070_v7, %v2336_v43 }
 0x3f4   : > { %v2338_v48 = vmul.f32 1.442695, %v2337_v42 }
 0x3f5   : > { %v2560_v54 = vpop.xlane.xlu1 %2559 }
 0x3f6   : > { %v2561_v49 = vsub.f32 %v7075_v8, %v2560_v54 }
 0x3f8   : > { %v7144_v38 = vpop.eup %6568 }
 0x3f9   : > { %v1981_v22 = vpop.xlane.xlu0 %1980  ;;  %v1880_v24 = vpop.permute.xlu1 %1879  ;;  %v1873_v26 = vsel %vm875_vm2, %v7144_v38, 0.0 }
 0x3fa   : > { %v1982_v62 = vsub.f32 %v7080_v57, %v1981_v22  ;;  %v1885_v1 = vsel %vm946_vm3, %v1880_v24, 0  ;;  %1874 = vadd.xlane.f32.xlu1 %v1873_v26 }
 0x3fb   : > { %6192 = vmatpush3.bf16.msra.mxu1 %v1885_v1 }
 0x3fc   : > { %v7150_v27 = vpop.eup %6570  ;;  %v1983_v5 = vmul.f32 1.442695, %v1982_v62  ;;  %6203 = vmatprep.subr.bf16.mxu1 %v6637_v0 }
 0x3fd   : > { %v2097_v30 = vsel %vm875_vm2, %v7150_v27, 0.0  ;;  %v2205_v37 = vpop.xlane.xlu0 %2204 }
 0x3fe   : > { %6572 = vpow2.f32 %v1983_v5  ;;  %2098 = vadd.xlane.f32.xlu1 %v2097_v30  ;;  %v2206_v16 = vsub.f32 %v7085_v23, %v2205_v37 }
 0x400   : > { %v2207_v44 = vmul.f32 1.442695, %v2206_v16  ;;  %v6395_v16 = vld [vmem:[%s7224_s29 + $0x8] sm:$0xff]  }
 0x401   : > { %v2448_v2 = vpop.xlane.xlu0 %2447 }
 0x402   : > { %v2449_v11 = vsub.f32 %v7090_v20, %v2448_v2 }
 0x404   : > { %v2450_v9 = vmul.f32 1.442695, %v2449_v11 }
 0x405   : > { %v2672_v51 = vpop.xlane.xlu0 %2671 }
 0x406   : > { %6574 = vpow2.f32 %v2450_v9  ;;  %v2673_v55 = vsub.f32 %v7094_v53, %v2672_v51 }
 0x407   : > { %6576 = vpow2.f32 %v2207_v44 }
 0x408   : > { %v7155_v31 = vpop.eup %6572  ;;  %6578 = vpow2.f32 %v2338_v48  ;;  %v2674_v23 = vmul.f32 1.442695, %v2673_v55 }
 0x409   : > { %v1985_v32 = vsel %vm875_vm2, %v7155_v31, 0.0  ;;  %v1992_v10 = vpop.permute.xlu0 %1991 }
 0x40a   : > { %1986 = vadd.xlane.f32.xlu0 %v1985_v32  ;;  %v1997_v36 = vsel %vm946_vm3, %v1992_v10, 0 }
 0x40f   : > { %2215 = vrot.lane.b32.xlu1 %v6806_v29, %s6652_s25 }
 0x410   : > { %v7168_v47 = vpop.eup %6574 }
 0x411   : > { %v7161_v57 = vpop.f32.mrb[4].mxu1  ;;  %v2452_v20 = vsel %vm875_vm2, %v7168_v47, 0.0  ;;  %v7174_v45 = vpop.eup %6576 }
 0x412   : > { %v6099_v25 = vpop.f32.mrb[5].mxu1  ;;  %v2209_v7 = vsel %vm875_vm2, %v7174_v45, 0.0  ;;  %v7178_v56 = vpop.eup %6578 }
 0x413   : > { %v987_v35 = vpop.f32.mrb[6].mxu1  ;;  %v2340_v8 = vsel %vm875_vm2, %v7178_v56, 0.0 }
 0x414   : > { %v6100_v50 = vpop.f32.mrb[7].mxu1 }
 0x415   : > { %v6394_v50 = vld [vmem:[%s7224_s29] sm:$0xff]  }
 0x416   : > { %6282 = vmatpush3.bf16.msra.mxu0 %v6394_v50 }
 0x417   : > { %6283 = vmatprep.subr.bf16.mxu0 %v6637_v0 }
 0x41a   : > { %6284 = vmatpush3.bf16.msra.mxu0 %v6395_v16 }
 0x41b   : > { %6297 = vmatprep.subr.bf16.mxu0 %v6637_v0 }
 0x420   : > { %2103 = vrot.lane.b32.xlu0 %v6806_v29, %s6653_s28  ;;  %v2562_v29 = vmul.f32 1.442695, %v2561_v49 }
 0x422   : > { %6580 = vpow2.f32 %v2562_v29 }
 0x423   : > { %6582 = vpow2.f32 %v2674_v23 }
 0x42c   : > { %v7182_v39 = vpop.eup %6580 }
 0x42d   : > { %v2564_v53 = vsel %vm875_vm2, %v7182_v39, 0.0  ;;  %v7188_v52 = vpop.eup %6582 }
 0x42e   : > { %v2676_v59 = vsel %vm875_vm2, %v7188_v52, 0.0 }
 0x433   : > { %2453 = vadd.xlane.f32.xlu1 %v2452_v20 }
 0x43f   : > { %2210 = vadd.xlane.f32.xlu0 %v2209_v7 }
 0x443   : > { %2341 = vadd.xlane.f32.xlu0 %v2340_v8 }
 0x444   : > { %2458 = vrot.lane.b32.xlu1 %v6821_v34, %s6651_s24 }
 0x447   : > { %2565 = vadd.xlane.f32.xlu0 %v2564_v53 }
 0x448   : > { %2570 = vrot.lane.b32.xlu1 %v6821_v34, %s6653_s28 }
 0x44b   : > { %2677 = vadd.xlane.f32.xlu0 %v2676_v59 }
 0x44c   : > { %2682 = vrot.lane.b32.xlu1 %v6821_v34, %s6652_s25 }
 0x452   : > { %v1097_v21 = vpop.f32.mrb[8].mxu1 }
 0x453   : > { %v6111_v40 = vpop.f32.mrb[9].mxu1 }
 0x454   : > { %v1100_v60 = vpop.f32.mrb[10].mxu1 }
 0x455   : > { %v6112_v61 = vpop.f32.mrb[11].mxu1 }
 0x45a   : > { %v7196_v63 = vpop.f32.mrb[12].mxu1 }
 0x45b   : > { %v6123_v3 = vpop.f32.mrb[13].mxu1 }
 0x45c   : > { %v1212_v4 = vpop.f32.mrb[14].mxu1 }
 0x45d   : > { %v6124_v33 = vpop.f32.mrb[15].mxu1 }
 0x461   : > { %2346 = vrot.lane.b32.xlu0 %v6821_v34, %s6650_s23 }
 0x487   : > { %v7200_v58 = vpop.f32.mrb[16].mxu1  ;;  %v1875_v6 = vpop.xlane.xlu1 %1874 }
 0x488   : > { %6584 = vrcp.f32 %v1875_v6  ;;  %v6135_v18 = vpop.f32.mrb[17].mxu1 }
 0x489   : > { %v1324_v28 = vpop.f32.mrb[18].mxu1 }
 0x48a   : > { %v6136_v46 = vpop.f32.mrb[19].mxu1 }
 0x48b   : > { %v2099_v34 = vpop.xlane.xlu1 %2098 }
 0x48f   : > { %v2216_v11 = vpop.permute.xlu1 %2215 }
 0x492   : > { %v6585_v41 = vpop.eup %6584 }
 0x493   : > { %v1877_v14 = vmul.f32 %v6585_v41, %v7144_v38 }
 0x495   : > { %v1878_v17 = vpack.c.bf16 %v1877_v14, %v1877_v14 }
 0x497   : > { %6194 = vmatmul.mubr.msk.bf16.vlgmr.msra.gmra.mrb[36].mxu1 %vm875_vm2, %v1878_v17  ;;  %v1987_v19 = vpop.xlane.xlu0 %1986 }
 0x498   : > { %6204 = vmatpush3.bf16.msra.mxu1 %v1997_v36  ;;  %6586 = vrcp.f32 %v1987_v19  ;;  %6205 = vmatprep.mubr.msk.bf16.mxu1 %vm6638_vm0, %v6637_v0 }
 0x499   : > { %6215 = vmatprep.subr.bf16.mxu1 %v6637_v0  ;;  %6588 = vrcp.f32 %v2099_v34 }
 0x49b   : > { %v2104_v62 = vpop.permute.xlu0 %2103 }
 0x49c   : > { %v2109_v30 = vsel %vm946_vm3, %v2104_v62, 0 }
 0x4a0   : > { %v7208_v43 = vpop.f32.mrb[20].mxu1 }
 0x4a1   : > { %v6147_v54 = vpop.f32.mrb[21].mxu1 }
 0x4a2   : > { %v6587_v38 = vpop.eup %6586  ;;  %v1456_v22 = vpop.f32.mrb[22].mxu1 }
 0x4a3   : > { %v1989_v24 = vmul.f32 %v6587_v38, %v7155_v31  ;;  %v6148_v26 = vpop.f32.mrb[23].mxu1  ;;  %v6589_v5 = vpop.eup %6588 }
 0x4a4   : > { %v2101_v25 = vmul.f32 %v6589_v5, %v7150_v27  ;;  %v2221_v27 = vsel %vm946_vm3, %v2216_v11, 0 }
 0x4a5   : > { %v1990_v1 = vpack.c.bf16 %v1989_v24, %v1989_v24 }
 0x4a6   : > { %v2102_v9 = vpack.c.bf16 %v2101_v25, %v2101_v25 }
 0x4a7   : > { %6206 = vmatmul.mubr.msk.bf16.vlgmr.msra.gmra.mrb[40].mxu1 %vm875_vm2, %v1990_v1 }
 0x4a8   : > { %6216 = vmatpush3.bf16.msra.mxu1 %v2109_v30  ;;  %v1566_v32 = vpop.f32.mrb[24].mxu1  ;;  %6217 = vmatprep.mubr.msk.bf16.mxu1 %vm6638_vm0, %v6637_v0 }
 0x4a9   : > { %v6355_v35 = vpack.i.bf16 %v1566_v32, %v1097_v21  ;;  %v6159_v31 = vpop.f32.mrb[25].mxu1  ;;  %6227 = vmatprep.subr.bf16.mxu1 %v6637_v0 }
 0x4aa   : > { %v1569_v37 = vpop.f32.mrb[26].mxu1 }
 0x4ab   : > { %v6160_v2 = vpop.f32.mrb[27].mxu1  ;;  %6356 = vrot.lane.b32.xlu1 %v6355_v35, %s6652_s25 }
 0x4af   : > { %6218 = vmatmul.mubr.msk.bf16.vlgmr.msra.gmra.mrb[44].mxu1 %vm875_vm2, %v2102_v9 }
 0x4b0   : > { %6228 = vmatpush3.bf16.msra.mxu1 %v2221_v27  ;;  %v1678_v42 = vpop.f32.mrb[28].mxu1  ;;  %6229 = vmatprep.mubr.msk.bf16.mxu1 %vm6638_vm0, %v6637_v0 }
 0x4b1   : > { %v6360_v44 = vpack.i.bf16 %v1678_v42, %v7196_v63  ;;  %v6171_v48 = vpop.f32.mrb[29].mxu1  ;;  %6239 = vmatprep.subr.bf16.mxu1 %v6637_v0 }
 0x4b2   : > { %v1681_v49 = vpop.f32.mrb[30].mxu1 }
 0x4b3   : > { %v6172_v51 = vpop.f32.mrb[31].mxu1  ;;  %6361 = vrot.lane.b32.xlu1 %v6360_v44, %s6653_s28 }
 0x4b8   : > { %v1790_v20 = vpop.f32.mrb[32].mxu1 }
 0x4b9   : > { %v6365_v29 = vpack.i.bf16 %v1790_v20, %v7200_v58  ;;  %v6183_v55 = vpop.f32.mrb[33].mxu1 }
 0x4ba   : > { %v1793_v23 = vpop.f32.mrb[34].mxu1 }
 0x4bb   : > { %v6184_v7 = vpop.f32.mrb[35].mxu1  ;;  %6366 = vrot.lane.b32.xlu0 %v6365_v29, %s6651_s24 }
 0x4c0   : > { %v2454_v21 = vpop.xlane.xlu1 %2453 }
 0x4c4   : > { %v2459_v6 = vpop.permute.xlu1 %2458 }
 0x4c5   : > { %v2464_v28 = vsel %vm946_vm3, %v2459_v6, 0 }
 0x4cc   : > { %v2211_v8 = vpop.xlane.xlu0 %2210 }
 0x4cd   : > { %6590 = vrcp.f32 %v2211_v8 }
 0x4d0   : > { %v2342_v53 = vpop.xlane.xlu0 %2341 }
 0x4d1   : > { %6592 = vrcp.f32 %v2342_v53 }
 0x4d2   : > { %6594 = vrcp.f32 %v2454_v21 }
 0x4d4   : > { %v2566_v59 = vpop.xlane.xlu0 %2565 }
 0x4d5   : > { %6596 = vrcp.f32 %v2566_v59 }
 0x4d7   : > { %v6591_v40 = vpop.eup %6590 }
 0x4d8   : > { %v2213_v60 = vmul.f32 %v6591_v40, %v7174_v45  ;;  %v2678_v61 = vpop.xlane.xlu0 %2677 }
 0x4d9   : > { %6598 = vrcp.f32 %v2678_v61 }
 0x4da   : > { %v2214_v63 = vpack.c.bf16 %v2213_v60, %v2213_v60  ;;  %v6396_v60 = vld [vmem:[%s7224_s29 + $0x10] sm:$0xff]  }
 0x4db   : > { %v6593_v3 = vpop.eup %6592 }
 0x4dc   : > { %6230 = vmatmul.mubr.msk.bf16.vlgmr.msra.gmra.mrb[48].mxu1 %vm875_vm2, %v2214_v63  ;;  %v2347_v4 = vpop.permute.xlu0 %2346  ;;  %v2344_v58 = vmul.f32 %v6593_v3, %v7178_v56  ;;  %v6595_v18 = vpop.eup %6594 }
 0x4dd   : > { %v2352_v33 = vsel %vm946_vm3, %v2347_v4, 0  ;;  %6241 = vmatprep.mubr.msk.bf16.mxu1 %vm6638_vm0, %v6637_v0  ;;  %v2456_v46 = vmul.f32 %v6595_v18, %v7168_v47  ;;  %v2571_v56 = vpop.permute.xlu1 %2570 }
 0x4de   : > { %6240 = vmatpush3.bf16.msra.mxu1 %v2352_v33  ;;  %v2345_v45 = vpack.c.bf16 %v2344_v58, %v2344_v58  ;;  %v2576_v14 = vsel %vm946_vm3, %v2571_v56, 0  ;;  %v6397_v33 = vld [vmem:[%s7224_s29 + $0x18] sm:$0xff]  }
 0x4df   : > { %6251 = vmatprep.subr.bf16.mxu1 %v6637_v0  ;;  %v2457_v41 = vpack.c.bf16 %v2456_v46, %v2456_v46  ;;  %v6597_v10 = vpop.eup %6596 }
 0x4e0   : > { %v2568_v17 = vmul.f32 %v6597_v10, %v7182_v39 }
 0x4e1   : > { %v2683_v36 = vpop.permute.xlu1 %2682 }
 0x4e2   : > { %v2569_v47 = vpack.c.bf16 %v2568_v17, %v2568_v17  ;;  %v2688_v34 = vsel %vm946_vm3, %v2683_v36, 0  ;;  %v7289_v17 = vsub.s32 2, %v6787_v12  ;;  %v7292_v36 = vld [vmem:[%s6793_s22] sm:$0xff] }
 0x4e3   : > { %v6599_v19 = vpop.eup %6598 }
 0x4e4   : > { %6242 = vmatmul.mubr.msk.bf16.vlgmr.msra.gmra.mrb[52].mxu1 %vm875_vm2, %v2345_v45  ;;  %v2680_v54 = vmul.f32 %v6599_v19, %v7188_v52 }
 0x4e5   : > { %6252 = vmatpush3.bf16.msra.mxu1 %v2464_v28  ;;  %6253 = vmatprep.mubr.msk.bf16.mxu1 %vm6638_vm0, %v6637_v0 }
 0x4e6   : > { %6263 = vmatprep.subr.bf16.mxu1 %v6637_v0  ;;  %v2681_v38 = vpack.c.bf16 %v2680_v54, %v2680_v54 }
 0x4ec   : > { %6254 = vmatmul.mubr.msk.bf16.vlgmr.msra.gmra.mrb[56].mxu1 %vm875_vm2, %v2457_v41 }
 0x4ed   : > { %6264 = vmatpush3.bf16.msra.mxu1 %v2576_v14  ;;  %6265 = vmatprep.mubr.msk.bf16.mxu1 %vm6638_vm0, %v6637_v0 }
 0x4ee   : > { %6275 = vmatprep.subr.bf16.mxu1 %v6637_v0 }
 0x4f4   : > { %6266 = vmatmul.mubr.msk.bf16.vlgmr.msra.gmra.mrb[60].mxu1 %vm875_vm2, %v2569_v47  ;;  %v7296_v47 = vrot.slane %v7292_v36, %v7289_v17 }
 0x4f5   : > { %6276 = vmatpush3.bf16.msra.mxu1 %v2688_v34  ;;  %6277 = vmatprep.mubr.msk.bf16.mxu1 %vm6638_vm0, %v6637_v0 }
 0x4f6   : > { %6289 = vmatprep.subr.bf16.mxu1 %v6637_v0 }
 0x4fc   : > { %6278 = vmatmul.mubr.msk.bf16.vlgmr.msra.gmra.mrb[64].mxu1 %vm875_vm2, %v2681_v38 }
 0x4fd   : > { %6293 = vmatprep.mubr.msk.bf16.mxu1 %vm6638_vm0, %v6637_v0  ;;  %6290 = vmatpush3.bf16.msra.mxu1 %v6396_v60 }
 0x4fe   : > { %6291 = vmatprep.subr.bf16.mxu1 %v6637_v0 }
 0x501   : > { %6292 = vmatpush3.bf16.msra.mxu1 %v6397_v33 }
 0x502   : > { %6305 = vmatprep.subr.bf16.mxu1 %v6637_v0 }
 0x51d   : > { %v6357_v39 = vpop.permute.xlu1 %6356 }
 0x51e   : > { %v6359_v24 = vunpack.i.h.bf16 %v6357_v39  ;;  %v6358_v26 = vunpack.i.l.bf16 %v6357_v39 }
 0x520   : > { %v1808_v52 = vsel %vm875_vm2, %v7208_v43, %v6359_v24  ;;  %v1339_v30 = vsel %vm875_vm2, %v7161_v57, %v6358_v26  ;;  %v6625_v24 = vld [vmem:[%s6768_s17] sm:$0xff] }
 0x525   : > { %v6362_v22 = vpop.permute.xlu1 %6361 }
 0x526   : > { %v6364_v62 = vunpack.i.h.bf16 %v6362_v22  ;;  %v6363_v1 = vunpack.i.l.bf16 %v6362_v22 }
 0x528   : > { %v1341_v35 = vsel %vm1340_vm4, %v1339_v30, %v6363_v1  ;;  %v1809_v31 = vsel %vm1340_vm4, %v1808_v52, %v6364_v62  ;;  %v6626_v1 = vld [vmem:[%s6768_s17 + $0x8] sm:$0xff]  ;;  %s7367_s17 = scalar_lea.vmem %s7705_s10, %s5804_s15 }
 0x52d   : > { %v6367_v5 = vpop.permute.xlu0 %6366 }
 0x52e   : > { %v6369_v32 = vunpack.i.h.bf16 %v6367_v5  ;;  %v6368_v25 = vunpack.i.l.bf16 %v6367_v5 }
 0x530   : > { %v1810_v37 = vsel %vm1342_vm5, %v1809_v31, %v6369_v32  ;;  %v1343_v50 = vsel %vm1342_vm5, %v1341_v35, %v6368_v25 }
 0x531   : > { %v2753_v2 = vpack.c.bf16 %v1810_v37, %v1343_v50 }
 0x533   : > { %6286 = vmatmul.mubr.msk.bf16.vlgmr.msra.gmra.mrb[68].mxu0 %vm764_vm1, %v2753_v2 }
 0x534   : > { %6301 = vmatprep.mubr.msk.bf16.mxu0 %vm6638_vm0, %v6637_v0 }
 0x56a   : > { %v7279_v43 = vpop.f32.mrb[36].mxu1 }
 0x56b   : > { %v6195_v11 = vpop.f32.mrb[37].mxu1 }
 0x56c   : > { %v1924_v57 = vpop.f32.mrb[38].mxu1 }
 0x56d   : > { %v6196_v9 = vpop.f32.mrb[39].mxu1 }
 0x57a   : > { %v2033_v27 = vpop.f32.mrb[40].mxu1 }
 0x57b   : > { %v6207_v16 = vpop.f32.mrb[41].mxu1 }
 0x57c   : > { %v2036_v42 = vpop.f32.mrb[42].mxu1 }
 0x57d   : > { %v6208_v44 = vpop.f32.mrb[43].mxu1 }
 0x582   : > { %v2145_v48 = vpop.f32.mrb[44].mxu1 }
 0x583   : > { %v6219_v49 = vpop.f32.mrb[45].mxu1 }
 0x584   : > { %v2148_v51 = vpop.f32.mrb[46].mxu1 }
 0x585   : > { %v6220_v20 = vpop.f32.mrb[47].mxu1 }
 0x5af   : > { %v2257_v29 = vpop.f32.mrb[48].mxu1 }
 0x5b0   : > { %v6231_v55 = vpop.f32.mrb[49].mxu1 }
 0x5b1   : > { %v2260_v23 = vpop.f32.mrb[50].mxu1 }
 0x5b2   : > { %v6232_v7 = vpop.f32.mrb[51].mxu1 }
 0x5b7   : > { %v2388_v8 = vpop.f32.mrb[52].mxu1 }
 0x5b8   : > { %v6243_v53 = vpop.f32.mrb[53].mxu1 }
 0x5b9   : > { %v2391_v59 = vpop.f32.mrb[54].mxu1 }
 0x5ba   : > { %v6244_v21 = vpop.f32.mrb[55].mxu1  ;;  %v6398_v59 = vld [vmem:[%s703_s20] sm:$0xff]  }
 0x5bb   : > { %6298 = vmatpush3.bf16.msra.mxu0 %v6398_v59  ;;  %v6399_v21 = vld [vmem:[%s703_s20 + $0x8] sm:$0xff]  }
 0x5bc   : > { %6299 = vmatprep.subr.bf16.mxu0 %v6637_v0  ;;  %v7376_v59 = vld [vmem:[%s7367_s17 + $0x8] sm:$0xff] }
 0x5bf   : > { %v2500_v40 = vpop.f32.mrb[56].mxu1  ;;  %6300 = vmatpush3.bf16.msra.mxu0 %v6399_v21  ;;  %v7379_v21 = vld [vmem:[%s7367_s17 + $0x48] sm:$0xff] }
 0x5c0   : > { %v6370_v61 = vpack.i.bf16 %v2500_v40, %v2033_v27  ;;  %v6255_v63 = vpop.f32.mrb[57].mxu1 }
 0x5c1   : > { %v2503_v3 = vpop.f32.mrb[58].mxu1 }
 0x5c2   : > { %6371 = vrot.lane.b32.xlu1 %v6370_v61, %s6652_s25  ;;  %v6256_v4 = vpop.f32.mrb[59].mxu1 }
 0x5c7   : > { %v2612_v58 = vpop.f32.mrb[60].mxu1 }
 0x5c8   : > { %v6375_v6 = vpack.i.bf16 %v2612_v58, %v2145_v48  ;;  %v6267_v45 = vpop.f32.mrb[61].mxu1 }
 0x5c9   : > { %v2615_v18 = vpop.f32.mrb[62].mxu1 }
 0x5ca   : > { %6376 = vrot.lane.b32.xlu0 %v6375_v6, %s6653_s28  ;;  %v6268_v28 = vpop.f32.mrb[63].mxu1  ;;  %s708_s28 = scalar_lea.vmem %s7704_s9, %s7216_s19 }
 0x5cf   : > { %v2724_v46 = vpop.f32.mrb[64].mxu1 }
 0x5d0   : > { %v6380_v56 = vpack.i.bf16 %v2724_v46, %v2257_v29  ;;  %v6279_v41 = vpop.f32.mrb[65].mxu1 }
 0x5d1   : > { %v2727_v10 = vpop.f32.mrb[66].mxu1 }
 0x5d2   : > { %6381 = vrot.lane.b32.xlu1 %v6380_v56, %s6651_s24  ;;  %v6280_v14 = vpop.f32.mrb[67].mxu1  ;;  %s727_s24 = scalar_lea.vmem %s7708_s13, %s7216_s19  ;;  %s732_s19 = scalar_lea.vmem %s7709_s14, %s6749_s16 }
 0x606   : > { %v2807_v19 = vpop.f32.mrb[68].mxu0 }
 0x607   : > { %v2808_v34 = vadd.f32 %v2807_v19, %v7296_v47  ;;  %v6287_v54 = vpop.f32.mrb[69].mxu0  ;;  %v7328_v19 = vsub.s32 4, %v6787_v12 }
 0x608   : > { %v2810_v38 = vpop.f32.mrb[70].mxu0  ;;  %v6400_v54 = vld [vmem:[%s708_s28] sm:$0xff]  }
 0x609   : > { %v2811_v39 = vadd.f32 %v2810_v38, %v7296_v47  ;;  %v6288_v22 = vpop.f32.mrb[71].mxu0  ;;  %v2875_v26 = vadd.f32 %v6625_v24, %v2808_v34  ;;  %v2907_v38 = vrot.slane %v7292_v36, %v7328_v19 }
 0x60a   : > { %v7337_v22 = vsub.s32 5, %v6787_v12 }
 0x60b   : > { %v2877_v62 = vsel %vm764_vm1, %v2875_v26, 0.0  ;;  %v2876_v5 = vadd.f32 %v6626_v1, %v2811_v39 }
 0x60c   : > { %2878 = vadd.xlane.f32.xlu0 %v2877_v62 }
 0x60d   : > { %v2880_v52 = vsel %vm764_vm1, %v2876_v5, 0.0 }
 0x60e   : > { %2881 = vadd.xlane.f32.xlu1 %v2880_v52 }
 0x61f   : > { %2828 = vrot.lane.b32.xlu1 %v7296_v47, %s6643_s27  ;;  %s722_s27 = scalar_lea.vmem %s7707_s12, %s6749_s16 }
 0x623   : > { %4840 = vrot.lane.b32.xlu1 %v7296_v47, %s6650_s23 }
 0x634   : > { %v6372_v30 = vpop.permute.xlu1 %6371 }
 0x635   : > { %v6374_v25 = vunpack.i.h.bf16 %v6372_v30  ;;  %v6373_v35 = vunpack.i.l.bf16 %v6372_v30 }
 0x637   : > { %v2742_v2 = vsel %vm875_vm2, %v2388_v8, %v6374_v25  ;;  %v2275_v11 = vsel %vm875_vm2, %v7279_v43, %v6373_v35  ;;  %v6402_v35 = vld [vmem:[%s708_s28 + $0x10] sm:$0xff]  }
 0x63c   : > { %v6377_v32 = vpop.permute.xlu0 %6376 }
 0x63d   : > { %v6379_v31 = vunpack.i.h.bf16 %v6377_v32  ;;  %v6378_v37 = vunpack.i.l.bf16 %v6377_v32 }
 0x63f   : > { %v2743_v27 = vsel %vm1340_vm4, %v2742_v2, %v6379_v31  ;;  %v2276_v16 = vsel %vm1340_vm4, %v2275_v11, %v6378_v37  ;;  %v6403_v31 = vld [vmem:[%s708_s28 + $0x18] sm:$0xff]  }
 0x644   : > { %v6382_v50 = vpop.permute.xlu1 %6381 }
 0x645   : > { %v6384_v57 = vunpack.i.h.bf16 %v6382_v50  ;;  %v6383_v9 = vunpack.i.l.bf16 %v6382_v50 }
 0x647   : > { %v2277_v42 = vsel %vm1342_vm5, %v2276_v16, %v6383_v9  ;;  %v2744_v44 = vsel %vm1342_vm5, %v2743_v27, %v6384_v57 }
 0x648   : > { %v2814_v48 = vpack.c.bf16 %v2744_v44, %v2277_v42 }
 0x64a   : > { %6294 = vmatmul.mubr.msk.bf16.vlgmr.msra.gmra.mrb[68].mxu1 %vm764_vm1, %v2814_v48  ;;  %v3145_v48 = vld [vmem:[%s7367_s17] sm:$0xff] }
 0x64b   : > { %6313 = vmatprep.mubr.msk.bf16.mxu1 %vm6638_vm0, %v6637_v0  ;;  %6306 = vmatpush3.bf16.msra.mxu1 %v6400_v54  ;;  %v3157_v54 = vld [vmem:[%s7367_s17 + $0x60] sm:$0xff] }
 0x64c   : > { %6307 = vmatprep.subr.bf16.mxu1 %v6637_v0 }
 0x699   : > { %v2879_v49 = vpop.xlane.xlu0 %2878 }
 0x69a   : > { %v2884_v51 = vmul.f32 0.03125, %v2879_v49  ;;  %v3153_v49 = vld [vmem:[%s7367_s17 + $0x40] sm:$0xff] }
 0x69b   : > { %v2882_v43 = vpop.xlane.xlu1 %2881 }
 0x69c   : > { %v2886_v20 = vsub.f32 %v2875_v26, %v2884_v51  ;;  %v2885_v29 = vmul.f32 0.03125, %v2882_v43  ;;  %v3147_v51 = vld [vmem:[%s7367_s17 + $0x10] sm:$0xff]  ;;  %v5620_v43 = vcombine.high %v3145_v48, %v3153_v49 }
 0x69e   : > { %v2887_v55 = vsub.f32 %v2876_v5, %v2885_v29  ;;  %v2888_v23 = vmul.f32 %v2886_v20, %v2886_v20  ;;  %v2913_v5 = vrot.slane %v7292_v36, %v7337_v22  ;;  %v5619_v29 = vcombine.low %v3145_v48, %v3153_v49  ;;  %3424 = vmatprep.subr.bf16.mxu0 %v5620_v43  ;;  %v3173_v48 = vld [vmem:[%s7367_s17 + $0xe0] sm:$0xff] }
 0x69f   : > { %v2829_v40 = vpop.permute.xlu1 %2828 }
 0x6a0   : > { %v2890_v7 = vsel %vm764_vm1, %v2888_v23, 0.0  ;;  %v2889_v8 = vmul.f32 %v2887_v55, %v2887_v55  ;;  %v3161_v23 = vld [vmem:[%s7367_s17 + $0x80] sm:$0xff] }
 0x6a1   : > { %2891 = vadd.xlane.f32.xlu0 %v2890_v7  ;;  %v3169_v7 = vld [vmem:[%s7367_s17 + $0xc0] sm:$0xff] }
 0x6a2   : > { %v2893_v53 = vsel %vm764_vm1, %v2889_v8, 0.0  ;;  %v5636_v8 = vcombine.high %v3161_v23, %v3169_v7 }
 0x6a5   : > { %2894 = vadd.xlane.f32.xlu0 %v2893_v53  ;;  %v5635_v53 = vcombine.low %v3161_v23, %v3169_v7  ;;  %v3159_v23 = vld [vmem:[%s7367_s17 + $0x70] sm:$0xff] }
 0x71d   : > { %v2868_v60 = vpop.f32.mrb[68].mxu1 }
 0x71e   : > { %v2869_v61 = vadd.f32 %v2868_v60, %v2829_v40  ;;  %v6295_v63 = vpop.f32.mrb[69].mxu1  ;;  %v5622_v60 = vcombine.high %v7376_v59, %v7379_v21 }
 0x71f   : > { %v2871_v3 = vpop.f32.mrb[70].mxu1  ;;  %v7387_v63 = vsub.s32 3, %v6787_v12 }
 0x720   : > { %v2872_v4 = vadd.f32 %v2871_v3, %v2829_v40  ;;  %v6296_v33 = vpop.f32.mrb[71].mxu1  ;;  %v3104_v58 = vadd.f32 %v6625_v24, %v2869_v61  ;;  %v6401_v24 = vld [vmem:[%s708_s28 + $0x8] sm:$0xff]   ;;  %v6654_v40 = vmov 0   ;;  %v5621_v61 = vcombine.low %v7376_v59, %v7379_v21  ;;  %v3164_v21 = vld [vmem:[%s7367_s17 + $0x98] sm:$0xff] }
 0x721   : > { %6308 = vmatpush3.bf16.msra.mxu1 %v6401_v24  ;;  %v2924_v3 = vrot.slane %v7292_v36, %v7387_v63 }
 0x722   : > { %v3106_v6 = vsel %vm764_vm1, %v3104_v58, 0.0  ;;  %v3105_v45 = vadd.f32 %v6626_v1, %v2872_v4  ;;  %6309 = vmatprep.subr.bf16.mxu1 %v6637_v0 }
 0x723   : > { %3107 = vadd.xlane.f32.xlu0 %v3106_v6 }
 0x724   : > { %v3109_v18 = vsel %vm764_vm1, %v3105_v45, 0.0 }
 0x725   : > { %6310 = vmatpush3.bf16.msra.mxu1 %v6402_v35 }
 0x726   : > { %6311 = vmatprep.subr.bf16.mxu1 %v6637_v0 }
 0x727   : > { %3110 = vadd.xlane.f32.xlu0 %v3109_v18 }
 0x729   : > { %6312 = vmatpush3.bf16.msra.mxu1 %v6403_v31 }
 0x72e   : > { %v2892_v28 = vpop.xlane.xlu0 %2891 }
 0x72f   : > { %v2896_v46 = vmul.f32 0.03125, %v2892_v28  ;;  %v3163_v28 = vld [vmem:[%s7367_s17 + $0x90] sm:$0xff] }
 0x731   : > { %v2898_v56 = vadd.f32 1e-05, %v2896_v46  ;;  %v3171_v46 = vld [vmem:[%s7367_s17 + $0xd0] sm:$0xff] }
 0x732   : > { %v2895_v41 = vpop.xlane.xlu0 %2894  ;;  %v5639_v36 = vcombine.low %v3163_v28, %v3171_v46 }
 0x733   : > { %6600 = vrsqrt.f32 %v2898_v56  ;;  %v2897_v10 = vmul.f32 0.03125, %v2895_v41 }
 0x735   : > { %v2899_v14 = vadd.f32 1e-05, %v2897_v10 }
 0x737   : > { %6602 = vrsqrt.f32 %v2899_v14  ;;  %v5640_v14 = vcombine.high %v3163_v28, %v3171_v46 }
 0x73d   : > { %v6601_v34 = vpop.eup %6600 }
 0x73e   : > { %v2902_v39 = vmul.f32 %v6601_v34, %v2886_v20  ;;  %v3155_v20 = vld [vmem:[%s7367_s17 + $0x50] sm:$0xff]  ;;  %v3149_v34 = vld [vmem:[%s7367_s17 + $0x20] sm:$0xff] }
 0x740   : > { %v2908_v62 = vmul.f32 %v2907_v38, %v2902_v39 }
 0x741   : > { %v6603_v26 = vpop.eup %6602 }
 0x742   : > { %v2903_v1 = vmul.f32 %v6603_v26, %v2887_v55  ;;  %v7343_v30 = vadd.f32 %v2913_v5, %v2908_v62  ;;  %v5624_v55 = vcombine.high %v3147_v51, %v3155_v20 }
 0x744   : > { %v2909_v52 = vmul.f32 %v2907_v38, %v2903_v1  ;;  %3510 = vmatprep.subr.bf16.mxu1 %v5624_v55  ;;  %v5628_v38 = vcombine.high %v3149_v34, %v3157_v54  ;;  %v3156_v55 = vld [vmem:[%s7367_s17 + $0x58] sm:$0xff] }
 0x746   : > { %v7345_v32 = vadd.f32 %v2913_v5, %v2909_v52  ;;  %v741_v52 = vld [vmem:[%s6793_s22 + $0x8] sm:$0xff] }
 0x747   : > { %v3135_v35 = vrot.slane %v741_v52, %v6800_v15 }
 0x748   : > { %v2916_v25 = vpack.c.bf16 %v7345_v32, %v7343_v30 }
 0x74a   : > { %6302 = vmatmul.mubr.msk.bf16.vlgmr.msra.gmra.mrb[72].mxu0 %vm764_vm1, %v2916_v25 }
 0x74b   : > { %3425 = vmatpush1.bf16.msra.mxu0 %v5619_v29  ;;  %3456 = vmatprep.mubr.bf16.mxu0 %v6654_v40 }
 0x74c   : > { %3426 = vmatprep.subr.bf16.mxu0 %v5636_v8 }
 0x74f   : > { %3427 = vmatpush1.bf16.msra.mxu0 %v5635_v53 }
 0x750   : > { %3467 = vmatprep.subr.bf16.mxu0 %v5622_v60  ;;  %v3172_v60 = vld [vmem:[%s7367_s17 + $0xd8] sm:$0xff] }
 0x751   : > { %v5641_v28 = vcombine.low %v3164_v21, %v3172_v60 }
 0x7b0   : > { %v3108_v37 = vpop.xlane.xlu0 %3107 }
 0x7b1   : > { %v3112_v50 = vmul.f32 0.03125, %v3108_v37 }
 0x7b3   : > { %v7351_v2 = vsub.f32 %v3104_v58, %v3112_v50  ;;  %v3141_v50 = vrot.slane %v741_v52, %v6796_v13  ;;  %v6404_v52 = vld [vmem:[%s6776_s21 + $0x40] sm:$0xff]  }
 0x7b4   : > { %v3111_v11 = vpop.xlane.xlu0 %3110 }
 0x7b5   : > { %v3113_v57 = vmul.f32 0.03125, %v3111_v11  ;;  %v3116_v9 = vmul.f32 %v7351_v2, %v7351_v2 }
 0x7b7   : > { %v7355_v27 = vsub.f32 %v3105_v45, %v3113_v57  ;;  %v3118_v16 = vsel %vm764_vm1, %v3116_v9, 0.0 }
 0x7b8   : > { %3119 = vadd.xlane.f32.xlu0 %v3118_v16  ;;  %v3162_v16 = vld [vmem:[%s7367_s17 + $0x88] sm:$0xff] }
 0x7b9   : > { %v3117_v42 = vmul.f32 %v7355_v27, %v7355_v27 }
 0x7bb   : > { %v3121_v44 = vsel %vm764_vm1, %v3117_v42, 0.0  ;;  %v3170_v42 = vld [vmem:[%s7367_s17 + $0xc8] sm:$0xff] }
 0x7bc   : > { %3122 = vadd.xlane.f32.xlu0 %v3121_v44  ;;  %v3165_v44 = vld [vmem:[%s7367_s17 + $0xa0] sm:$0xff]  ;;  %v5637_v7 = vcombine.low %v3162_v16, %v3170_v42 }
 0x7bd   : > { %v5644_v29 = vcombine.high %v3165_v44, %v3173_v48  ;;  %v5643_v8 = vcombine.low %v3165_v44, %v3173_v48  ;;  %v6419_v44 = vld [vmem:[%s6776_s21 + $0x90] sm:$0xff]   ;;  %v6414_v48 = vld [vmem:[%s6776_s21 + $0x18] sm:$0xff]  }
 0x7d2   : > { %3016 = vrot.lane.b32.xlu0 %v7296_v47, %s6642_s26  ;;  %v5623_v47 = vcombine.low %v3147_v51, %v3155_v20  ;;  %v5638_v20 = vcombine.high %v3162_v16, %v3170_v42  ;;  %v6417_v16 = vld [vmem:[%s6776_s21 + $0xd0] sm:$0xff]   ;;  %v6412_v42 = vld [vmem:[%s6776_s21 + $0x58] sm:$0xff]  }
 0x81d   : > { %v2974_v4 = vpop.f32.mrb[72].mxu0 }
 0x81e   : > { %v2975_v33 = vadd.f32 %v2974_v4, %v2924_v3  ;;  %v6303_v58 = vpop.f32.mrb[73].mxu0  ;;  %v3175_v4 = vld [vmem:[%s7367_s17 + $0xf0] sm:$0xff] }
 0x81f   : > { %v2977_v6 = vpop.f32.mrb[74].mxu0  ;;  %v5642_v58 = vcombine.high %v3164_v21, %v3172_v60  ;;  %v6430_v21 = vld [vmem:[%s6776_s21 + $0x38] sm:$0xff]   ;;  %v6431_v60 = vld [vmem:[%s6776_s21 + $0xa8] sm:$0xff]  }
 0x820   : > { %v2978_v45 = vadd.f32 %v2977_v6, %v2924_v3  ;;  %v6304_v18 = vpop.f32.mrb[75].mxu0  ;;  %v2981_v56 = vmax.f32 %v2975_v33, 0.0  ;;  %v3167_v3 = vld [vmem:[%s7367_s17 + $0xb0] sm:$0xff] }
 0x821   : > { %v5648_v6 = vcombine.high %v3167_v3, %v3175_v4  ;;  %v3158_v18 = vld [vmem:[%s7367_s17 + $0x68] sm:$0xff]  ;;  %v5647_v46 = vcombine.low %v3167_v3, %v3175_v4  ;;  %v6432_v3 = vld [vmem:[%s6776_s21 + $0xf0] sm:$0xff]   ;;  %v6433_v4 = vld [vmem:[%s6776_s21 + $0x140] sm:$0xff]  }
 0x822   : > { %v2982_v41 = vmax.f32 %v2978_v45, 0.0  ;;  %v3150_v45 = vld [vmem:[%s7367_s17 + $0x28] sm:$0xff] }
 0x824   : > { %v2983_v10 = vpack.c.bf16 %v2982_v41, %v2981_v56  ;;  %v5630_v56 = vcombine.high %v3150_v45, %v3158_v18  ;;  %v3166_v41 = vld [vmem:[%s7367_s17 + $0xa8] sm:$0xff] }
 0x826   : > { %6314 = vmatmul.mubr.msk.bf16.vlgmr.msra.gmra.mrb[72].mxu1 %vm3019_vm6, %v2983_v10  ;;  %v3174_v10 = vld [vmem:[%s7367_s17 + $0xe8] sm:$0xff] }
 0x827   : > { %3511 = vmatpush1.bf16.msra.mxu1 %v5623_v47  ;;  %3542 = vmatprep.mubr.bf16.mxu1 %v6654_v40  ;;  %v3148_v47 = vld [vmem:[%s7367_s17 + $0x18] sm:$0xff] }
 0x828   : > { %3512 = vmatprep.subr.bf16.mxu1 %v5640_v14  ;;  %v5626_v53 = vcombine.high %v3148_v47, %v3156_v55  ;;  %v5629_v14 = vcombine.low %v3150_v45, %v3158_v18  ;;  %v7491_v45 = vsub.s32 6, %v6787_v12  ;;  %v7493_v18 = vld [vmem:[%s722_s27 + $0x8] sm:$0xff] }
 0x82b   : > { %3513 = vmatpush1.bf16.msra.mxu1 %v5639_v36  ;;  %v3160_v36 = vld [vmem:[%s7367_s17 + $0x78] sm:$0xff] }
 0x82c   : > { %3596 = vmatprep.subr.bf16.mxu1 %v5628_v38  ;;  %v5645_v38 = vcombine.low %v3166_v41, %v3174_v10 }
 0x845   : > { %v3120_v39 = vpop.xlane.xlu0 %3119 }
 0x846   : > { %v3124_v24 = vmul.f32 0.03125, %v3120_v39 }
 0x848   : > { %v3126_v26 = vadd.f32 1e-05, %v3124_v24  ;;  %v3168_v24 = vld [vmem:[%s7367_s17 + $0xb8] sm:$0xff] }
 0x849   : > { %v3123_v62 = vpop.xlane.xlu0 %3122 }
 0x84a   : > { %6604 = vrsqrt.f32 %v3126_v26  ;;  %v3125_v1 = vmul.f32 0.03125, %v3123_v62  ;;  %v3176_v26 = vld [vmem:[%s7367_s17 + $0xf8] sm:$0xff] }
 0x84c   : > { %v3127_v5 = vadd.f32 1e-05, %v3125_v1  ;;  %v5650_v1 = vcombine.high %v3168_v24, %v3176_v26 }
 0x84e   : > { %6606 = vrsqrt.f32 %v3127_v5  ;;  %v5649_v5 = vcombine.low %v3168_v24, %v3176_v26 }
 0x854   : > { %v6605_v25 = vpop.eup %6604 }
 0x855   : > { %v3130_v31 = vmul.f32 %v6605_v25, %v7351_v2  ;;  %v5627_v2 = vcombine.low %v3149_v34, %v3157_v54  ;;  %v5646_v34 = vcombine.high %v3166_v41, %v3174_v10  ;;  %v3152_v54 = vld [vmem:[%s7367_s17 + $0x38] sm:$0xff]  ;;  %v6405_v25 = vld [vmem:[%s6776_s21] sm:$0xff]  }
 0x856   : > { %v5634_v39 = vcombine.high %v3152_v54, %v3160_v36  ;;  %v5633_v62 = vcombine.low %v3152_v54, %v3160_v36 }
 0x857   : > { %v3136_v11 = vmul.f32 %v3135_v35, %v3130_v31  ;;  %v6409_v31 = vld [vmem:[%s6776_s21 + $0xc0] sm:$0xff]  }
 0x858   : > { %v6607_v37 = vpop.eup %6606 }
 0x859   : > { %v3131_v57 = vmul.f32 %v6607_v37, %v7355_v27  ;;  %v7406_v49 = vadd.f32 %v3141_v50, %v3136_v11  ;;  %v3151_v27 = vld [vmem:[%s7367_s17 + $0x30] sm:$0xff]  ;;  %v6411_v37 = vld [vmem:[%s6776_s21 + $0x80] sm:$0xff]   ;;  %v6413_v11 = vld [vmem:[%s6776_s21 + $0xc8] sm:$0xff]  }
 0x85a   : > { %v5632_v59 = vcombine.high %v3151_v27, %v3159_v23  ;;  %v5631_v33 = vcombine.low %v3151_v27, %v3159_v23  ;;  %v6424_v27 = vld [vmem:[%s6776_s21 + $0x70] sm:$0xff]   ;;  %v6425_v23 = vld [vmem:[%s6776_s21 + $0xe0] sm:$0xff]  }
 0x85b   : > { %v3137_v9 = vmul.f32 %v3135_v35, %v3131_v57  ;;  %v6406_v35 = vld [vmem:[%s6776_s21 + $0x48] sm:$0xff]  }
 0x85c   : > { %v6415_v57 = vld [vmem:[%s6776_s21 + $0x88] sm:$0xff]  }
 0x85d   : > { %v7408_v51 = vadd.f32 %v3141_v50, %v3137_v9  ;;  %v6407_v50 = vld [vmem:[%s6776_s21 + $0x8] sm:$0xff]   ;;  %v6410_v9 = vld [vmem:[%s6776_s21 + $0x10] sm:$0xff]  }
 0x85f   : > { %v7412_v43 = vpack.c.bf16 %v7408_v51, %v7406_v49 }
 0x861   : > { %5651 = vmatmul.mubr.msk.bf16.vlgmr.msra.gmra.mrb[76].mxu0 %vm764_vm1, %v7412_v43  ;;  %5653 = vmatmul.mubr.msk.bf16.vlgmr.msra.gmra.mrb[76].mxu1 %vm764_vm1, %v7412_v43 }
 0x862   : > { %3468 = vmatpush1.bf16.msra.mxu0 %v5621_v61  ;;  %3597 = vmatpush1.bf16.msra.mxu1 %v5627_v2  ;;  %v5625_v61 = vcombine.low %v3148_v47, %v3156_v55  ;;  %v6421_v2 = vld [vmem:[%s6776_s21 + $0xd8] sm:$0xff]   ;;  %v6420_v47 = vld [vmem:[%s6776_s21 + $0x68] sm:$0xff]  }
 0x863   : > { %3469 = vmatprep.subr.bf16.mxu0 %v5638_v20  ;;  %3598 = vmatprep.subr.bf16.mxu1 %v5644_v29  ;;  %v6423_v20 = vld [vmem:[%s6776_s21 + $0x98] sm:$0xff]   ;;  %v6418_v29 = vld [vmem:[%s6776_s21 + $0x20] sm:$0xff]   ;;  %v6422_v55 = vld [vmem:[%s6776_s21 + $0x28] sm:$0xff]  }
 0x864   : > { %3499 = vmatprep.mubr.bf16.mxu0 %v6654_v40  ;;  %3628 = vmatprep.mubr.bf16.mxu1 %v6654_v40 }
 0x866   : > { %3470 = vmatpush1.bf16.msra.mxu0 %v5637_v7  ;;  %3599 = vmatpush1.bf16.msra.mxu1 %v5643_v8  ;;  %v6426_v7 = vld [vmem:[%s6776_s21 + $0x30] sm:$0xff]   ;;  %v6427_v8 = vld [vmem:[%s6776_s21 + $0xa0] sm:$0xff]  }
 0x867   : > { %3553 = vmatprep.subr.bf16.mxu0 %v5626_v53  ;;  %3682 = vmatprep.subr.bf16.mxu1 %v5632_v59  ;;  %v6428_v53 = vld [vmem:[%s6776_s21 + $0x78] sm:$0xff]   ;;  %v6429_v59 = vld [vmem:[%s6776_s21 + $0xe8] sm:$0xff]  }
 0x869   : > { %5652 = vmatmul.mubr.msk.bf16.vlgmr.msra.gmra.mrb[80].mxu0 %vm764_vm1, %v7412_v43  ;;  %5655 = vmatmul.mubr.msk.bf16.vlgmr.msra.gmra.mrb[80].mxu1 %vm764_vm1, %v7412_v43 }
 0x86a   : > { %3554 = vmatpush1.bf16.msra.mxu0 %v5625_v61  ;;  %3683 = vmatpush1.bf16.msra.mxu1 %v5631_v33  ;;  %v6434_v61 = vld [vmem:[%s6776_s21 + $0xb0] sm:$0xff]   ;;  %v6436_v33 = vld [vmem:[%s6776_s21 + $0xf8] sm:$0xff]  }
 0x86b   : > { %3555 = vmatprep.subr.bf16.mxu0 %v5642_v58  ;;  %3684 = vmatprep.subr.bf16.mxu1 %v5648_v6  ;;  %v6438_v58 = vld [vmem:[%s6776_s21 + $0xb8] sm:$0xff]   ;;  %v6441_v6 = vld [vmem:[%s6776_s21 + $0x1c0] sm:$0xff]  }
 0x86c   : > { %3585 = vmatprep.mubr.bf16.mxu0 %v6654_v40  ;;  %3714 = vmatprep.mubr.bf16.mxu1 %v6654_v40 }
 0x86e   : > { %3556 = vmatpush1.bf16.msra.mxu0 %v5641_v28  ;;  %3685 = vmatpush1.bf16.msra.mxu1 %v5647_v46  ;;  %v7497_v28 = vrot.slane %v7493_v18, %v7491_v45 }
 0x86f   : > { %3639 = vmatprep.subr.bf16.mxu0 %v5630_v56  ;;  %5892 = vmatprep.subr.bf16.mxu1 %v6404_v52 }
 0x871   : > { %5654 = vmatmul.mubr.msk.bf16.vlgmr.msra.gmra.mrb[84].mxu0 %vm764_vm1, %v7412_v43  ;;  %5657 = vmatmul.mubr.msk.bf16.vlgmr.msra.gmra.mrb[84].mxu1 %vm764_vm1, %v7412_v43 }
 0x872   : > { %3640 = vmatpush1.bf16.msra.mxu0 %v5629_v14  ;;  %3671 = vmatprep.mubr.bf16.mxu0 %v6654_v40  ;;  %v3177_v14 = vld [vmem:[%s722_s27] sm:$0xff] }
 0x873   : > { %3641 = vmatprep.subr.bf16.mxu0 %v5646_v34  ;;  %5893 = vmatpush3.bf16.msra.mxu1 %v6405_v25  ;;  %v3184_v34 = vrot.slane %v3177_v14, %v6800_v15  ;;  %v3200_v54 = vrot.slane %v3177_v14, %v7328_v19  ;;  %v3188_v36 = vrot.slane %v3177_v14, %v6796_v13 }
 0x874   : > { %5894 = vmatprep.subr.bf16.mxu1 %v6406_v35 }
 0x876   : > { %3642 = vmatpush1.bf16.msra.mxu0 %v5645_v38  ;;  %v3204_v38 = vrot.slane %v3177_v14, %v7337_v22 }
 0x877   : > { %3725 = vmatprep.subr.bf16.mxu0 %v5634_v39  ;;  %5895 = vmatpush3.bf16.msra.mxu1 %v6407_v50 }
 0x879   : > { %5656 = vmatmul.mubr.msk.bf16.vlgmr.msra.gmra.mrb[88].mxu0 %vm764_vm1, %v7412_v43 }
 0x87a   : > { %3726 = vmatpush1.bf16.msra.mxu0 %v5633_v62  ;;  %3757 = vmatprep.mubr.bf16.mxu0 %v6654_v40  ;;  %v6408_v40 = vld [vmem:[%s6776_s21 + $0x50] sm:$0xff]  }
 0x87b   : > { %3727 = vmatprep.subr.bf16.mxu0 %v5650_v1  ;;  %5896 = vmatprep.subr.bf16.mxu1 %v6408_v40 }
 0x87c   : > { %5897 = vmatpush3.bf16.msra.mxu1 %v6410_v9  ;;  %v3216_v9 = vrot.slane %v7493_v18, %v6800_v15  ;;  %v7516_v15 = vsub.s32 7, %v6787_v12 }
 0x87d   : > { %5898 = vmatprep.subr.bf16.mxu1 %v6412_v42 }
 0x87e   : > { %3728 = vmatpush1.bf16.msra.mxu0 %v5649_v5 }
 0x87f   : > { %5914 = vmatprep.subr.bf16.mxu0 %v6409_v31 }
 0x880   : > { %5899 = vmatpush3.bf16.msra.mxu1 %v6414_v48  ;;  %v3220_v48 = vrot.slane %v7493_v18, %v6796_v13 }
 0x881   : > { %5658 = vmatmul.mubr.msk.bf16.vlgmr.msra.gmra.mrb[92].mxu0 %vm764_vm1, %v7412_v43  ;;  %v6416_v43 = vld [vmem:[%s6776_s21 + $0x60] sm:$0xff]  }
 0x882   : > { %5915 = vmatpush3.bf16.msra.mxu0 %v6411_v37  ;;  %5900 = vmatprep.subr.bf16.mxu1 %v6416_v43 }
 0x883   : > { %5916 = vmatprep.subr.bf16.mxu0 %v6413_v11 }
 0x884   : > { %5901 = vmatpush3.bf16.msra.mxu1 %v6418_v29 }
 0x885   : > { %5902 = vmatprep.subr.bf16.mxu1 %v6420_v47 }
 0x886   : > { %5917 = vmatpush3.bf16.msra.mxu0 %v6415_v57  ;;  %v3192_v57 = vrot.slane %v3177_v14, %v7289_v17 }
 0x887   : > { %5918 = vmatprep.subr.bf16.mxu0 %v6417_v16 }
 0x888   : > { %5903 = vmatpush3.bf16.msra.mxu1 %v6422_v55 }
 0x889   : > { %5904 = vmatprep.subr.bf16.mxu1 %v6424_v27 }
 0x88a   : > { %5919 = vmatpush3.bf16.msra.mxu0 %v6419_v44  ;;  %v3196_v44 = vrot.slane %v3177_v14, %v7387_v63 }
 0x88b   : > { %5920 = vmatprep.subr.bf16.mxu0 %v6421_v2 }
 0x88c   : > { %5905 = vmatpush3.bf16.msra.mxu1 %v6426_v7 }
 0x88d   : > { %5906 = vmatprep.subr.bf16.mxu1 %v6428_v53 }
 0x88e   : > { %5921 = vmatpush3.bf16.msra.mxu0 %v6423_v20 }
 0x88f   : > { %5922 = vmatprep.subr.bf16.mxu0 %v6425_v23 }
 0x890   : > { %5907 = vmatpush3.bf16.msra.mxu1 %v6430_v21 }
 0x891   : > { %5936 = vmatprep.subr.bf16.mxu1 %v6433_v4 }
 0x892   : > { %5923 = vmatpush3.bf16.msra.mxu0 %v6427_v8 }
 0x893   : > { %5924 = vmatprep.subr.bf16.mxu0 %v6429_v59 }
 0x896   : > { %5925 = vmatpush3.bf16.msra.mxu0 %v6431_v60  ;;  %v6435_v60 = vld [vmem:[%s6776_s21 + $0x100] sm:$0xff]  }
 0x897   : > { %5926 = vmatprep.subr.bf16.mxu0 %v6432_v3 }
 0x89a   : > { %5927 = vmatpush3.bf16.msra.mxu0 %v6434_v61 }
 0x89b   : > { %5928 = vmatprep.subr.bf16.mxu0 %v6436_v33 }
 0x89e   : > { %5929 = vmatpush3.bf16.msra.mxu0 %v6438_v58  ;;  %v6437_v58 = vld [vmem:[%s6776_s21 + $0x148] sm:$0xff]  }
 0x89f   : > { %5958 = vmatprep.subr.bf16.mxu0 %v6441_v6 }
 0x8f9   : > { %v7499_v46 = vpop.f32.mrb[72].mxu1 }
 0x8fa   : > { %v6315_v56 = vpop.f32.mrb[73].mxu1 }
 0x8fb   : > { %v7501_v41 = vpop.f32.mrb[74].mxu1 }
 0x8fc   : > { %v6316_v10 = vpop.f32.mrb[75].mxu1 }
 0x934   : > { %v3458_v39 = vpop.f32.mrb[76].mxu0  ;;  %v3544_v24 = vpop.f32.mrb[76].mxu1 }
 0x935   : > { %v3459_v26 = vadd.f32 %v3458_v39, %v3184_v34  ;;  %v3545_v62 = vadd.f32 %v3544_v24, %v3200_v54  ;;  %v3460_v1 = vpop.f32.mrb[77].mxu0  ;;  %v3546_v5 = vpop.f32.mrb[77].mxu1  ;;  %v3232_v24 = vrot.slane %v7493_v18, %v7328_v19 }
 0x936   : > { %v3461_v52 = vadd.f32 %v3460_v1, %v3188_v36  ;;  %v3547_v25 = vadd.f32 %v3546_v5, %v3204_v38  ;;  %v3462_v35 = vpop.f32.mrb[78].mxu0  ;;  %v3548_v31 = vpop.f32.mrb[78].mxu1  ;;  %v6439_v5 = vld [vmem:[%s6776_s21 + $0x108] sm:$0xff]  }
 0x937   : > { %v3463_v37 = vadd.f32 %v3462_v35, %v3184_v34  ;;  %v3549_v50 = vadd.f32 %v3548_v31, %v3200_v54  ;;  %v3464_v11 = vpop.f32.mrb[79].mxu0  ;;  %v3550_v40 = vpop.f32.mrb[79].mxu1  ;;  %v3768_v2 = vmax.f32 %v3459_v26, 0.0  ;;  %v3772_v43 = vmax.f32 %v3545_v62, 0.0 }
 0x938   : > { %v3465_v16 = vadd.f32 %v3464_v11, %v3188_v36  ;;  %v3551_v42 = vadd.f32 %v3550_v40, %v3204_v38  ;;  %v3769_v47 = vmax.f32 %v3461_v52, 0.0  ;;  %v3773_v55 = vmax.f32 %v3547_v25, 0.0 }
 0x939   : > { %v3784_v20 = vmax.f32 %v3463_v37, 0.0  ;;  %v3788_v29 = vmax.f32 %v3549_v50, 0.0  ;;  %v3208_v54 = vrot.slane %v3177_v14, %v7491_v45  ;;  %v3212_v26 = vrot.slane %v3177_v14, %v7516_v15  ;;  %v6440_v50 = vld [vmem:[%s6776_s21 + $0x150] sm:$0xff]  }
 0x93a   : > { %v3785_v27 = vmax.f32 %v3465_v16, 0.0  ;;  %v3789_v23 = vmax.f32 %v3551_v42, 0.0  ;;  %v3236_v52 = vrot.slane %v7493_v18, %v7337_v22 }
 0x93b   : > { %v3800_v7 = vpack.c.bf16 %v3784_v20, %v3768_v2  ;;  %v7513_v8 = vpack.c.bf16 %v3788_v29, %v3772_v43  ;;  %v6442_v2 = vld [vmem:[%s6776_s21 + $0x110] sm:$0xff]   ;;  %v6443_v43 = vld [vmem:[%s6776_s21 + $0x180] sm:$0xff]  }
 0x93c   : > { %v3801_v53 = vpack.c.bf16 %v3785_v27, %v3769_v47  ;;  %v3805_v59 = vpack.c.bf16 %v3789_v23, %v3773_v55  ;;  %v3501_v21 = vpop.f32.mrb[80].mxu0  ;;  %v3630_v13 = vpop.f32.mrb[80].mxu1  ;;  %v6444_v27 = vld [vmem:[%s6776_s21 + $0x158] sm:$0xff]   ;;  %v6445_v23 = vld [vmem:[%s6776_s21 + $0x1c8] sm:$0xff]  }
 0x93d   : > { %v3502_v3 = vadd.f32 %v3501_v21, %v3192_v57  ;;  %v3631_v4 = vadd.f32 %v3630_v13, %v3216_v9  ;;  %v3503_v61 = vpop.f32.mrb[81].mxu0  ;;  %v3632_v33 = vpop.f32.mrb[81].mxu1 }
 0x93e   : > { %v3504_v6 = vadd.f32 %v3503_v61, %v3196_v44  ;;  %v3633_v56 = vadd.f32 %v3632_v33, %v3220_v48  ;;  %v3505_v10 = vpop.f32.mrb[82].mxu0  ;;  %v3634_v34 = vpop.f32.mrb[82].mxu1  ;;  %4875 = vmatprep.mubr.bf16.mxu1 %v3801_v53  ;;  %v3224_v61 = vrot.slane %v7493_v18, %v7289_v17 }
 0x93f   : > { %v3506_v12 = vadd.f32 %v3505_v10, %v3192_v57  ;;  %v3635_v36 = vadd.f32 %v3634_v34, %v3216_v9  ;;  %v3507_v38 = vpop.f32.mrb[83].mxu0  ;;  %v3636_v39 = vpop.f32.mrb[83].mxu1  ;;  %4876 = vmatmul.mubr.bf16.vlgmr.msra.gmra.mrb[88].mxu1 %v3800_v7  ;;  %v3770_v25 = vmax.f32 %v3502_v3, 0.0  ;;  %v3776_v35 = vmax.f32 %v3631_v4, 0.0 }
 0x940   : > { %v3508_v62 = vadd.f32 %v3507_v38, %v3196_v44  ;;  %v3637_v1 = vadd.f32 %v3636_v39, %v3220_v48  ;;  %5937 = vmatpush3.bf16.msra.mxu1 %v6435_v60  ;;  %4957 = vmatprep.mubr.bf16.mxu1 %v3805_v59  ;;  %v3771_v11 = vmax.f32 %v3504_v6, 0.0  ;;  %v3777_v40 = vmax.f32 %v3633_v56, 0.0  ;;  %v6446_v6 = vld [vmem:[%s6776_s21 + $0x118] sm:$0xff]   ;;  %v6447_v56 = vld [vmem:[%s6776_s21 + $0x188] sm:$0xff]   ;;  %v6448_v38 = vld [vmem:[%s6776_s21 + $0x160] sm:$0xff]  }
 0x941   : > { %v3786_v31 = vmax.f32 %v3506_v12, 0.0  ;;  %v3792_v37 = vmax.f32 %v3635_v36, 0.0  ;;  %5938 = vmatprep.subr.bf16.mxu1 %v6437_v58  ;;  %v3228_v10 = vrot.slane %v7493_v18, %v7387_v63  ;;  %v6449_v39 = vld [vmem:[%s6776_s21 + $0x1d0] sm:$0xff]  }
 0x942   : > { %v3787_v57 = vmax.f32 %v3508_v62, 0.0  ;;  %v3793_v14 = vmax.f32 %v3637_v1, 0.0 }
 0x943   : > { %v3802_v9 = vpack.c.bf16 %v3786_v31, %v3770_v25  ;;  %v7528_v16 = vpack.c.bf16 %v3792_v37, %v3776_v35  ;;  %v6450_v37 = vld [vmem:[%s6776_s21 + $0x120] sm:$0xff]  }
 0x944   : > { %v3803_v42 = vpack.c.bf16 %v3787_v57, %v3771_v11  ;;  %v7530_v44 = vpack.c.bf16 %v3793_v14, %v3777_v40  ;;  %5939 = vmatpush3.bf16.msra.mxu1 %v6439_v5  ;;  %v3587_v22 = vpop.f32.mrb[84].mxu0  ;;  %v3716_v48 = vpop.f32.mrb[84].mxu1  ;;  %v6452_v57 = vld [vmem:[%s6776_s21 + $0x168] sm:$0xff]   ;;  %v6453_v14 = vld [vmem:[%s6776_s21 + $0x1d8] sm:$0xff]  }
 0x945   : > { %v3588_v20 = vadd.f32 %v3587_v22, %v3208_v54  ;;  %v3717_v29 = vadd.f32 %v3716_v48, %v3232_v24  ;;  %v3589_v47 = vpop.f32.mrb[85].mxu0  ;;  %v3718_v55 = vpop.f32.mrb[85].mxu1  ;;  %5940 = vmatprep.subr.bf16.mxu1 %v6440_v50  ;;  %v6451_v50 = vld [vmem:[%s6776_s21 + $0x190] sm:$0xff]  }
 0x946   : > { %v3590_v7 = vadd.f32 %v3589_v47, %v3212_v26  ;;  %v3719_v53 = vadd.f32 %v3718_v55, %v3236_v52  ;;  %v3591_v59 = vpop.f32.mrb[86].mxu0  ;;  %v3720_v21 = vpop.f32.mrb[86].mxu1  ;;  %4916 = vmatprep.mubr.bf16.mxu0 %v3803_v42  ;;  %v6456_v55 = vld [vmem:[%s6776_s21 + $0x170] sm:$0xff]  }
 0x947   : > { %v3592_v13 = vadd.f32 %v3591_v59, %v3208_v54  ;;  %v3721_v60 = vadd.f32 %v3720_v21, %v3232_v24  ;;  %v3593_v3 = vpop.f32.mrb[87].mxu0  ;;  %v3722_v4 = vpop.f32.mrb[87].mxu1  ;;  %4917 = vmatmul.mubr.bf16.vlgmr.msra.gmra.mrb[96].mxu0 %v3802_v9  ;;  %v3774_v34 = vmax.f32 %v3588_v20, 0.0  ;;  %v3780_v54 = vmax.f32 %v3717_v29, 0.0  ;;  %v6455_v20 = vld [vmem:[%s6776_s21 + $0x198] sm:$0xff]  }
 0x948   : > { %v3594_v33 = vadd.f32 %v3593_v3, %v3212_v26  ;;  %v3723_v58 = vadd.f32 %v3722_v4, %v3236_v52  ;;  %5941 = vmatpush3.bf16.msra.mxu1 %v6442_v2  ;;  %5959 = vmatpush3.bf16.msra.mxu0 %v6443_v43  ;;  %v3775_v24 = vmax.f32 %v3590_v7, 0.0  ;;  %v3781_v26 = vmax.f32 %v3719_v53, 0.0  ;;  %v6454_v43 = vld [vmem:[%s6776_s21 + $0x128] sm:$0xff]   ;;  %v6459_v3 = vld [vmem:[%s6776_s21 + $0x1a0] sm:$0xff]  }
 0x949   : > { %v3790_v12 = vmax.f32 %v3592_v13, 0.0  ;;  %v3796_v36 = vmax.f32 %v3721_v60, 0.0  ;;  %5942 = vmatprep.subr.bf16.mxu1 %v6444_v27  ;;  %5960 = vmatprep.subr.bf16.mxu0 %v6445_v23  ;;  %v6457_v27 = vld [vmem:[%s6776_s21 + $0x1e0] sm:$0xff]   ;;  %v3244_v53 = vrot.slane %v7493_v18, %v7516_v15  ;;  %v6458_v60 = vld [vmem:[%s6776_s21 + $0x130] sm:$0xff]  }
 0x94a   : > { %v3791_v62 = vmax.f32 %v3594_v33, 0.0  ;;  %v3797_v1 = vmax.f32 %v3723_v58, 0.0  ;;  %v6460_v33 = vld [vmem:[%s6776_s21 + $0x178] sm:$0xff]   ;;  %v6461_v58 = vld [vmem:[%s6776_s21 + $0x1e8] sm:$0xff]  }
 0x94b   : > { %v7544_v5 = vpack.c.bf16 %v3790_v12, %v3774_v34  ;;  %v7546_v52 = vpack.c.bf16 %v3796_v36, %v3780_v54  ;;  %v6462_v54 = vld [vmem:[%s6776_s21 + $0x138] sm:$0xff]   ;;  %v6463_v12 = vld [vmem:[%s6776_s21 + $0x1a8] sm:$0xff]  }
 0x94c   : > { %v3807_v25 = vpack.c.bf16 %v3791_v62, %v3775_v24  ;;  %v7548_v35 = vpack.c.bf16 %v3797_v1, %v3781_v26  ;;  %5943 = vmatpush3.bf16.msra.mxu1 %v6446_v6  ;;  %5961 = vmatpush3.bf16.msra.mxu0 %v6447_v56  ;;  %v3673_v31 = vpop.f32.mrb[88].mxu0  ;;  %v6465_v24 = vld [vmem:[%s6776_s21 + $0x240] sm:$0xff]  }
 0x94d   : > { %v3674_v11 = vadd.f32 %v3673_v31, %v3224_v61  ;;  %v3675_v40 = vpop.f32.mrb[89].mxu0  ;;  %5944 = vmatprep.subr.bf16.mxu1 %v6448_v38  ;;  %5962 = vmatprep.subr.bf16.mxu0 %v6449_v39  ;;  %v6464_v39 = vld [vmem:[%s6776_s21 + $0x1f0] sm:$0xff]   ;;  %v6467_v31 = vld [vmem:[%s6776_s21 + $0x200] sm:$0xff]  }
 0x94e   : > { %v3676_v9 = vadd.f32 %v3675_v40, %v3228_v10  ;;  %v3677_v42 = vpop.f32.mrb[90].mxu0  ;;  %4998 = vmatprep.mubr.bf16.mxu0 %v3807_v25  ;;  %v6466_v25 = vld [vmem:[%s6776_s21 + $0x1b0] sm:$0xff]   ;;  %v6471_v40 = vld [vmem:[%s6776_s21 + $0x208] sm:$0xff]  }
 0x94f   : > { %v3678_v22 = vadd.f32 %v3677_v42, %v3224_v61  ;;  %v3679_v48 = vpop.f32.mrb[91].mxu0  ;;  %v3778_v29 = vmax.f32 %v3674_v11, 0.0  ;;  %v6470_v11 = vld [vmem:[%s6776_s21 + $0x1b8] sm:$0xff]  }
 0x950   : > { %v3680_v2 = vadd.f32 %v3679_v48, %v3228_v10  ;;  %5945 = vmatpush3.bf16.msra.mxu1 %v6450_v37  ;;  %5963 = vmatpush3.bf16.msra.mxu0 %v6451_v50  ;;  %v3779_v23 = vmax.f32 %v3676_v9, 0.0  ;;  %v6468_v37 = vld [vmem:[%s6776_s21 + $0x1f8] sm:$0xff]   ;;  %v6469_v50 = vld [vmem:[%s6776_s21 + $0x248] sm:$0xff]   ;;  %v6474_v9 = vld [vmem:[%s6776_s21 + $0x210] sm:$0xff]  }
 0x951   : > { %v3794_v47 = vmax.f32 %v3678_v22, 0.0  ;;  %5946 = vmatprep.subr.bf16.mxu1 %v6452_v57  ;;  %5964 = vmatprep.subr.bf16.mxu0 %v6453_v14  ;;  %v6472_v57 = vld [vmem:[%s6776_s21 + $0x250] sm:$0xff]   ;;  %v6473_v14 = vld [vmem:[%s6776_s21 + $0x2c0] sm:$0xff]   ;;  %v6476_v42 = vld [vmem:[%s6776_s21 + $0x258] sm:$0xff]  }
 0x952   : > { %v3795_v7 = vmax.f32 %v3680_v2, 0.0  ;;  %v6477_v22 = vld [vmem:[%s6776_s21 + $0x2c8] sm:$0xff]   ;;  %v6480_v2 = vld [vmem:[%s6776_s21 + $0x260] sm:$0xff]  }
 0x953   : > { %v7560_v59 = vpack.c.bf16 %v3794_v47, %v3778_v29  ;;  %v6479_v48 = vld [vmem:[%s6776_s21 + $0x288] sm:$0xff]   ;;  %v6485_v47 = vld [vmem:[%s6776_s21 + $0x2d8] sm:$0xff]  }
 0x954   : > { %v3811_v21 = vpack.c.bf16 %v3795_v7, %v3779_v23  ;;  %5947 = vmatpush3.bf16.msra.mxu1 %v6454_v43  ;;  %5965 = vmatpush3.bf16.msra.mxu0 %v6455_v20  ;;  %v3759_v13 = vpop.f32.mrb[92].mxu0  ;;  %v6481_v43 = vld [vmem:[%s6776_s21 + $0x2d0] sm:$0xff]   ;;  %v6482_v20 = vld [vmem:[%s6776_s21 + $0x220] sm:$0xff]   ;;  %v6484_v29 = vld [vmem:[%s6776_s21 + $0x268] sm:$0xff]  }
 0x955   : > { %v3760_v4 = vadd.f32 %v3759_v13, %v7497_v28  ;;  %v3761_v61 = vpop.f32.mrb[93].mxu0  ;;  %5948 = vmatprep.subr.bf16.mxu1 %v6456_v55  ;;  %5966 = vmatprep.subr.bf16.mxu0 %v6457_v27  ;;  %v6486_v55 = vld [vmem:[%s6776_s21 + $0x228] sm:$0xff]   ;;  %v6487_v27 = vld [vmem:[%s6776_s21 + $0x298] sm:$0xff]   ;;  %v6488_v23 = vld [vmem:[%s6776_s21 + $0x270] sm:$0xff]  }
 0x956   : > { %v3762_v18 = vadd.f32 %v3761_v61, %v3244_v53  ;;  %v3763_v6 = vpop.f32.mrb[94].mxu0  ;;  %v6489_v7 = vld [vmem:[%s6776_s21 + $0x2e0] sm:$0xff]   ;;  %v6492_v13 = vld [vmem:[%s6776_s21 + $0x278] sm:$0xff]   ;;  %v6496_v61 = vld [vmem:[%s6776_s21 + $0x2f0] sm:$0xff]  }
 0x957   : > { %v3764_v56 = vadd.f32 %v3763_v6, %v7497_v28  ;;  %v3765_v10 = vpop.f32.mrb[95].mxu0  ;;  %v3782_v36 = vmax.f32 %v3760_v4, 0.0  ;;  %v6495_v4 = vld [vmem:[%s6776_s21 + $0x2a8] sm:$0xff]   ;;  %v6500_v6 = vld [vmem:[%s6776_s21 + $0x2f8] sm:$0xff]  }
 0x958   : > { %v3766_v34 = vadd.f32 %v3765_v10, %v3244_v53  ;;  %5949 = vmatpush3.bf16.msra.mxu1 %v6458_v60  ;;  %5967 = vmatpush3.bf16.msra.mxu0 %v6459_v3  ;;  %v3783_v26 = vmax.f32 %v3762_v18, 0.0  ;;  %v6490_v53 = vld [vmem:[%s6776_s21 + $0x230] sm:$0xff]   ;;  %v6493_v60 = vld [vmem:[%s6776_s21 + $0x2e8] sm:$0xff]   ;;  %v6494_v3 = vld [vmem:[%s6776_s21 + $0x238] sm:$0xff]  }
 0x959   : > { %v3798_v38 = vmax.f32 %v3764_v56, 0.0  ;;  %5950 = vmatprep.subr.bf16.mxu1 %v6460_v33  ;;  %5968 = vmatprep.subr.bf16.mxu0 %v6461_v58  ;;  %v6497_v33 = vld [vmem:[%s6776_s21 + $0x340] sm:$0xff]   ;;  %v6498_v58 = vld [vmem:[%s6776_s21 + $0x2b0] sm:$0xff]   ;;  %v6501_v56 = vld [vmem:[%s6776_s21 + $0x348] sm:$0xff]  }
 0x95a   : > { %v3799_v28 = vmax.f32 %v3766_v34, 0.0  ;;  %v6499_v18 = vld [vmem:[%s6776_s21 + $0x300] sm:$0xff]   ;;  %v6502_v10 = vld [vmem:[%s6776_s21 + $0x2b8] sm:$0xff]   ;;  %v6503_v34 = vld [vmem:[%s6776_s21 + $0x308] sm:$0xff]  }
 0x95b   : > { %v7572_v62 = vpack.c.bf16 %v3798_v38, %v3782_v36  ;;  %v6506_v36 = vld [vmem:[%s6776_s21 + $0x310] sm:$0xff]   ;;  %v6508_v38 = vld [vmem:[%s6776_s21 + $0x358] sm:$0xff]  }
 0x95c   : > { %v7574_v1 = vpack.c.bf16 %v3799_v28, %v3783_v26  ;;  %5951 = vmatpush3.bf16.msra.mxu1 %v6462_v54  ;;  %5969 = vmatpush3.bf16.msra.mxu0 %v6463_v12  ;;  %v6504_v54 = vld [vmem:[%s6776_s21 + $0x350] sm:$0xff]   ;;  %v6505_v12 = vld [vmem:[%s6776_s21 + $0x3c0] sm:$0xff]  }
 0x95d   : > { %5970 = vmatprep.subr.bf16.mxu0 %v6464_v39  ;;  %5980 = vmatprep.subr.bf16.mxu1 %v6465_v24  ;;  %v6509_v39 = vld [vmem:[%s6776_s21 + $0x3c8] sm:$0xff]   ;;  %v6512_v26 = vld [vmem:[%s6776_s21 + $0x360] sm:$0xff]   ;;  %v6513_v28 = vld [vmem:[%s6776_s21 + $0x3d0] sm:$0xff]  }
 0x95e   : > { %v6511_v24 = vld [vmem:[%s6776_s21 + $0x388] sm:$0xff]  }
 0x95f   : > { %4958 = vmatmul.mubr.bf16.vlgmr.msra.gmra.mrb[92].mxu1 %v7513_v8  ;;  %v6475_v8 = vld [vmem:[%s6776_s21 + $0x280] sm:$0xff]  }
 0x960   : > { %5971 = vmatpush3.bf16.msra.mxu0 %v6466_v25  ;;  %5981 = vmatpush3.bf16.msra.mxu1 %v6467_v31  ;;  %v6514_v25 = vld [vmem:[%s6776_s21 + $0x320] sm:$0xff]   ;;  %v6516_v31 = vld [vmem:[%s6776_s21 + $0x368] sm:$0xff]  }
 0x961   : > { %5039 = vmatprep.mubr.bf16.mxu1 %v7530_v44  ;;  %5972 = vmatprep.subr.bf16.mxu0 %v6468_v37  ;;  %v6478_v44 = vld [vmem:[%s6776_s21 + $0x218] sm:$0xff]  }
 0x962   : > { %5982 = vmatprep.subr.bf16.mxu1 %v6469_v50  ;;  %v6517_v37 = vld [vmem:[%s6776_s21 + $0x3d8] sm:$0xff]  }
 0x963   : > { %v6519_v50 = vld [vmem:[%s6776_s21 + $0x398] sm:$0xff]  }
 0x964   : > { %5973 = vmatpush3.bf16.msra.mxu0 %v6470_v11  ;;  %5983 = vmatpush3.bf16.msra.mxu1 %v6471_v40  ;;  %v6520_v11 = vld [vmem:[%s6776_s21 + $0x370] sm:$0xff]   ;;  %v6521_v40 = vld [vmem:[%s6776_s21 + $0x3e0] sm:$0xff]  }
 0x965   : > { %5984 = vmatprep.subr.bf16.mxu1 %v6472_v57  ;;  %6002 = vmatprep.subr.bf16.mxu0 %v6473_v14  ;;  %v6522_v57 = vld [vmem:[%s6776_s21 + $0x330] sm:$0xff]   ;;  %v6523_v14 = vld [vmem:[%s6776_s21 + $0x3a0] sm:$0xff]  }
 0x967   : > { %4999 = vmatmul.mubr.bf16.vlgmr.msra.gmra.mrb[100].mxu0 %v7544_v5  ;;  %v6483_v5 = vld [vmem:[%s6776_s21 + $0x290] sm:$0xff]  }
 0x968   : > { %5985 = vmatpush3.bf16.msra.mxu1 %v6474_v9  ;;  %6003 = vmatpush3.bf16.msra.mxu0 %v6475_v8  ;;  %v6524_v9 = vld [vmem:[%s6776_s21 + $0x378] sm:$0xff]   ;;  %v6525_v8 = vld [vmem:[%s6776_s21 + $0x3e8] sm:$0xff]  }
 0x969   : > { %5080 = vmatprep.mubr.bf16.mxu0 %v3811_v21  ;;  %5986 = vmatprep.subr.bf16.mxu1 %v6476_v42  ;;  %v6491_v21 = vld [vmem:[%s6776_s21 + $0x2a0] sm:$0xff]   ;;  %v6526_v42 = vld [vmem:[%s6776_s21 + $0x338] sm:$0xff]  }
 0x96a   : > { %6004 = vmatprep.subr.bf16.mxu0 %v6477_v22  ;;  %v6527_v22 = vld [vmem:[%s6776_s21 + $0x3a8] sm:$0xff]  }
 0x96c   : > { %5987 = vmatpush3.bf16.msra.mxu1 %v6478_v44  ;;  %6005 = vmatpush3.bf16.msra.mxu0 %v6479_v48  ;;  %v6528_v44 = vld [vmem:[%s6776_s21 + $0x3f0] sm:$0xff]  }
 0x96d   : > { %5988 = vmatprep.subr.bf16.mxu1 %v6480_v2  ;;  %6006 = vmatprep.subr.bf16.mxu0 %v6481_v43  ;;  %v6529_v48 = vld [vmem:[%s6776_s21 + $0x3b0] sm:$0xff]   ;;  %v6530_v2 = vld [vmem:[%s6776_s21 + $0x3f8] sm:$0xff]  }
 0x96e   : > { %v6531_v43 = vld [vmem:[%s6776_s21 + $0x3b8] sm:$0xff]  }
 0x970   : > { %5989 = vmatpush3.bf16.msra.mxu1 %v6482_v20  ;;  %6007 = vmatpush3.bf16.msra.mxu0 %v6483_v5 }
 0x971   : > { %5990 = vmatprep.subr.bf16.mxu1 %v6484_v29  ;;  %6008 = vmatprep.subr.bf16.mxu0 %v6485_v47 }
 0x974   : > { %5991 = vmatpush3.bf16.msra.mxu1 %v6486_v55  ;;  %6009 = vmatpush3.bf16.msra.mxu0 %v6487_v27 }
 0x975   : > { %5992 = vmatprep.subr.bf16.mxu1 %v6488_v23  ;;  %6010 = vmatprep.subr.bf16.mxu0 %v6489_v7  ;;  %v4841_v23 = vpop.permute.xlu1 %4840 }
 0x978   : > { %5993 = vmatpush3.bf16.msra.mxu1 %v6490_v53  ;;  %6011 = vmatpush3.bf16.msra.mxu0 %v6491_v21 }
 0x979   : > { %5994 = vmatprep.subr.bf16.mxu1 %v6492_v13  ;;  %6012 = vmatprep.subr.bf16.mxu0 %v6493_v60 }
 0x97c   : > { %5995 = vmatpush3.bf16.msra.mxu1 %v6494_v3  ;;  %6013 = vmatpush3.bf16.msra.mxu0 %v6495_v4 }
 0x97d   : > { %6014 = vmatprep.subr.bf16.mxu0 %v6496_v61  ;;  %6024 = vmatprep.subr.bf16.mxu1 %v6497_v33 }
 0x97f   : > { %5040 = vmatmul.mubr.bf16.vlgmr.msra.gmra.mrb[96].mxu1 %v7528_v16  ;;  %v6507_v16 = vld [vmem:[%s6776_s21 + $0x380] sm:$0xff]  }
 0x980   : > { %6015 = vmatpush3.bf16.msra.mxu0 %v6498_v58  ;;  %6025 = vmatpush3.bf16.msra.mxu1 %v6499_v18 }
 0x981   : > { %5121 = vmatprep.mubr.bf16.mxu1 %v7548_v35  ;;  %6016 = vmatprep.subr.bf16.mxu0 %v6500_v6  ;;  %v6510_v35 = vld [vmem:[%s6776_s21 + $0x318] sm:$0xff]  }
 0x982   : > { %6026 = vmatprep.subr.bf16.mxu1 %v6501_v56 }
 0x984   : > { %6017 = vmatpush3.bf16.msra.mxu0 %v6502_v10  ;;  %6027 = vmatpush3.bf16.msra.mxu1 %v6503_v34 }
 0x985   : > { %6028 = vmatprep.subr.bf16.mxu1 %v6504_v54  ;;  %6046 = vmatprep.subr.bf16.mxu0 %v6505_v12 }
 0x987   : > { %5081 = vmatmul.mubr.bf16.vlgmr.msra.gmra.mrb[104].mxu0 %v7560_v59  ;;  %v6515_v59 = vld [vmem:[%s6776_s21 + $0x390] sm:$0xff]  }
 0x988   : > { %6029 = vmatpush3.bf16.msra.mxu1 %v6506_v36  ;;  %6047 = vmatpush3.bf16.msra.mxu0 %v6507_v16 }
 0x989   : > { %5162 = vmatprep.mubr.bf16.mxu0 %v7574_v1  ;;  %6030 = vmatprep.subr.bf16.mxu1 %v6508_v38  ;;  %v6518_v1 = vld [vmem:[%s6776_s21 + $0x328] sm:$0xff]  }
 0x98a   : > { %6048 = vmatprep.subr.bf16.mxu0 %v6509_v39 }
 0x98c   : > { %6031 = vmatpush3.bf16.msra.mxu1 %v6510_v35  ;;  %6049 = vmatpush3.bf16.msra.mxu0 %v6511_v24 }
 0x98d   : > { %6032 = vmatprep.subr.bf16.mxu1 %v6512_v26  ;;  %6050 = vmatprep.subr.bf16.mxu0 %v6513_v28 }
 0x990   : > { %6033 = vmatpush3.bf16.msra.mxu1 %v6514_v25  ;;  %6051 = vmatpush3.bf16.msra.mxu0 %v6515_v59 }
 0x991   : > { %6034 = vmatprep.subr.bf16.mxu1 %v6516_v31  ;;  %6052 = vmatprep.subr.bf16.mxu0 %v6517_v37 }
 0x994   : > { %6035 = vmatpush3.bf16.msra.mxu1 %v6518_v1  ;;  %6053 = vmatpush3.bf16.msra.mxu0 %v6519_v50 }
 0x995   : > { %6036 = vmatprep.subr.bf16.mxu1 %v6520_v11  ;;  %6054 = vmatprep.subr.bf16.mxu0 %v6521_v40 }
 0x998   : > { %6037 = vmatpush3.bf16.msra.mxu1 %v6522_v57  ;;  %6055 = vmatpush3.bf16.msra.mxu0 %v6523_v14 }
 0x999   : > { %6038 = vmatprep.subr.bf16.mxu1 %v6524_v9  ;;  %6056 = vmatprep.subr.bf16.mxu0 %v6525_v8 }
 0x99c   : > { %6039 = vmatpush3.bf16.msra.mxu1 %v6526_v42  ;;  %6057 = vmatpush3.bf16.msra.mxu0 %v6527_v22 }
 0x99d   : > { %6058 = vmatprep.subr.bf16.mxu0 %v6528_v44  ;;  %6317 = vmatprep.subr.bf16.mxu1 %v6637_v0 }
 0x99f   : > { %5122 = vmatmul.mubr.bf16.vlgmr.msra.gmra.mrb[100].mxu1 %v7546_v52 }
 0x9a0   : > { %6059 = vmatpush3.bf16.msra.mxu0 %v6529_v48  ;;  %6325 = vmatprep.mubr.msk.bf16.mxu1 %vm6638_vm0, %v6637_v0 }
 0x9a1   : > { %6060 = vmatprep.subr.bf16.mxu0 %v6530_v2 }
 0x9a4   : > { %6061 = vmatpush3.bf16.msra.mxu0 %v6531_v43 }
 0x9a7   : > { %5163 = vmatmul.mubr.bf16.vlgmr.msra.gmra.mrb[108].mxu0 %v7572_v62 }
 0xa12   : > { %v5908_v20 = vpop.f32.mrb[88].mxu1 }
 0xa13   : > { %v5909_v5 = vpop.f32.mrb[89].mxu1 }
 0xa14   : > { %v5910_v29 = vadd.f32 %v5909_v5, %v5908_v20  ;;  %v5911_v47 = vpop.f32.mrb[90].mxu1 }
 0xa15   : > { %v5912_v55 = vpop.f32.mrb[91].mxu1 }
 0xa16   : > { %v5913_v27 = vadd.f32 %v5912_v55, %v5911_v47  ;;  %v4878_v21 = vadd.f32 %v5910_v29, %v4841_v23 }
 0xa18   : > { %v4881_v3 = vadd.f32 %v5913_v27, %v4841_v23  ;;  %v3017_v23 = vpop.permute.xlu0 %3016 }
 0xa1a   : > { %v5930_v7 = vpop.f32.mrb[96].mxu0 }
 0xa1b   : > { %v5931_v53 = vpop.f32.mrb[97].mxu0 }
 0xa1c   : > { %v5932_v52 = vadd.f32 %v5931_v53, %v5930_v7  ;;  %v5933_v13 = vpop.f32.mrb[98].mxu0 }
 0xa1d   : > { %v5934_v60 = vpop.f32.mrb[99].mxu0 }
 0xa1e   : > { %v4919_v4 = vadd.f32 %v5932_v52, %v4878_v21  ;;  %v5935_v61 = vadd.f32 %v5934_v60, %v5933_v13  ;;  %v3058_v13 = vadd.f32 %v7499_v46, %v3017_v23 }
 0xa20   : > { %v4922_v33 = vadd.f32 %v5935_v61, %v4881_v3 }
 0xa32   : > { %v5952_v58 = vpop.f32.mrb[92].mxu1 }
 0xa33   : > { %v5953_v18 = vpop.f32.mrb[93].mxu1 }
 0xa34   : > { %v5954_v62 = vadd.f32 %v5953_v18, %v5952_v58  ;;  %v5955_v6 = vpop.f32.mrb[94].mxu1 }
 0xa35   : > { %v5956_v56 = vpop.f32.mrb[95].mxu1 }
 0xa36   : > { %v4960_v10 = vadd.f32 %v5954_v62, %v4919_v4  ;;  %v5957_v34 = vadd.f32 %v5956_v56, %v5955_v6  ;;  %v3064_v62 = vadd.f32 %v3058_v13, %v7343_v30 }
 0xa38   : > { %v4963_v54 = vadd.f32 %v5957_v34, %v4922_v33  ;;  %v3061_v33 = vadd.f32 %v7501_v41, %v3017_v23  ;;  %v3066_v56 = vsel %vm764_vm1, %v3064_v62, 0.0 }
 0xa3a   : > { %v5974_v12 = vpop.f32.mrb[100].mxu0  ;;  %v3065_v46 = vadd.f32 %v3061_v33, %v7345_v32 }
 0xa3b   : > { %v5975_v36 = vpop.f32.mrb[101].mxu0 }
 0xa3c   : > { %v5976_v16 = vadd.f32 %v5975_v36, %v5974_v12  ;;  %v5977_v38 = vpop.f32.mrb[102].mxu0 }
 0xa3d   : > { %v5978_v39 = vpop.f32.mrb[103].mxu0 }
 0xa3e   : > { %v5001_v35 = vadd.f32 %v5976_v16, %v4960_v10  ;;  %v5979_v24 = vadd.f32 %v5978_v39, %v5977_v38  ;;  %v3069_v10 = vsel %vm764_vm1, %v3065_v46, 0.0 }
 0xa40   : > { %v5004_v26 = vadd.f32 %v5979_v24, %v4963_v54 }
 0xa52   : > { %v5996_v28 = vpop.f32.mrb[96].mxu1 }
 0xa53   : > { %v5997_v25 = vpop.f32.mrb[97].mxu1 }
 0xa54   : > { %v5998_v59 = vadd.f32 %v5997_v25, %v5996_v28  ;;  %v5999_v31 = vpop.f32.mrb[98].mxu1 }
 0xa55   : > { %v6000_v37 = vpop.f32.mrb[99].mxu1 }
 0xa56   : > { %v5042_v1 = vadd.f32 %v5998_v59, %v5001_v35  ;;  %v6001_v50 = vadd.f32 %v6000_v37, %v5999_v31 }
 0xa58   : > { %v5045_v11 = vadd.f32 %v6001_v50, %v5004_v26  ;;  %v6533_v50 = vld [vmem:[%s727_s24 + $0x8] sm:$0xff]  }
 0xa5a   : > { %v6018_v40 = vpop.f32.mrb[104].mxu0 }
 0xa5b   : > { %v6019_v57 = vpop.f32.mrb[105].mxu0 }
 0xa5c   : > { %v6020_v14 = vadd.f32 %v6019_v57, %v6018_v40  ;;  %v6021_v9 = vpop.f32.mrb[106].mxu0 }
 0xa5d   : > { %v6022_v8 = vpop.f32.mrb[107].mxu0 }
 0xa5e   : > { %v5083_v42 = vadd.f32 %v6020_v14, %v5042_v1  ;;  %v6023_v22 = vadd.f32 %v6022_v8, %v6021_v9  ;;  %v6532_v1 = vld [vmem:[%s727_s24] sm:$0xff]  }
 0xa5f   : > { %6318 = vmatpush3.bf16.msra.mxu1 %v6532_v1 }
 0xa60   : > { %v5086_v44 = vadd.f32 %v6023_v22, %v5045_v11  ;;  %6319 = vmatprep.subr.bf16.mxu1 %v6637_v0  ;;  %v6534_v11 = vld [vmem:[%s727_s24 + $0x10] sm:$0xff]  }
 0xa63   : > { %6320 = vmatpush3.bf16.msra.mxu1 %v6533_v50 }
 0xa64   : > { %6321 = vmatprep.subr.bf16.mxu1 %v6637_v0 }
 0xa67   : > { %6322 = vmatpush3.bf16.msra.mxu1 %v6534_v11 }
 0xa68   : > { %6323 = vmatprep.subr.bf16.mxu1 %v6637_v0 }
 0xa72   : > { %v6040_v48 = vpop.f32.mrb[100].mxu1 }
 0xa73   : > { %v6041_v2 = vpop.f32.mrb[101].mxu1 }
 0xa74   : > { %v6042_v43 = vadd.f32 %v6041_v2, %v6040_v48  ;;  %v6043_v20 = vpop.f32.mrb[102].mxu1  ;;  %v6627_v2 = vld [vmem:[%s6793_s22 + $0x8] sm:$0xff] }
 0xa75   : > { %v6044_v5 = vpop.f32.mrb[103].mxu1  ;;  %v5208_v0 = vrot.slane %v6627_v2, %v7387_v63 }
 0xa76   : > { %v5124_v29 = vadd.f32 %v6042_v43, %v5083_v42  ;;  %v6045_v47 = vadd.f32 %v6044_v5, %v6043_v20  ;;  %v5202_v43 = vrot.slane %v6627_v2, %v7289_v17 }
 0xa78   : > { %v5127_v55 = vadd.f32 %v6045_v47, %v5086_v44  ;;  %v6535_v44 = vld [vmem:[%s727_s24 + $0x18] sm:$0xff]  }
 0xa79   : > { %6324 = vmatpush3.bf16.msra.mxu1 %v6535_v44 }
 0xa7a   : > { %v6062_v27 = vpop.f32.mrb[108].mxu0 }
 0xa7b   : > { %v6063_v7 = vpop.f32.mrb[109].mxu0 }
 0xa7c   : > { %v6064_v53 = vadd.f32 %v6063_v7, %v6062_v27  ;;  %v6065_v21 = vpop.f32.mrb[110].mxu0 }
 0xa7d   : > { %v6066_v52 = vpop.f32.mrb[111].mxu0 }
 0xa7e   : > { %v5165_v60 = vadd.f32 %v6064_v53, %v5124_v29  ;;  %v6067_v3 = vadd.f32 %v6066_v52, %v6065_v21 }
 0xa80   : > { %v5168_v4 = vadd.f32 %v6067_v3, %v5127_v55  ;;  %v5171_v61 = vadd.f32 %v5165_v60, %v7406_v49 }
 0xa82   : > { %v5173_v58 = vsel %vm764_vm1, %v5171_v61, 0.0  ;;  %v5172_v18 = vadd.f32 %v5168_v4, %v7408_v51  ;;  %v6628_v4 = vld [vmem:[%s6793_s22] sm:$0xff] }
 0xa83   : > { %5174 = vadd.xlane.f32.xlu1 %v5173_v58  ;;  %v3095_v63 = vrot.slane %v6628_v4, %v7491_v45  ;;  %v5233_v45 = vrot.slane %v6627_v2, %v7328_v19 }
 0xa84   : > { %v5176_v6 = vsel %vm764_vm1, %v5172_v18, 0.0 }
 0xa85   : > { %5177 = vadd.xlane.f32.xlu0 %v5176_v6 }
 0xa87   : > { %3067 = vadd.xlane.f32.xlu1 %v3066_v56 }
 0xa8b   : > { %3070 = vadd.xlane.f32.xlu1 %v3069_v10 }
 0xb10   : > { %v5175_v49 = vpop.xlane.xlu1 %5174 }
 0xb11   : > { %v5179_v41 = vmul.f32 0.03125, %v5175_v49 }
 0xb12   : > { %v5178_v34 = vpop.xlane.xlu0 %5177 }
 0xb13   : > { %v5181_v54 = vsub.f32 %v5171_v61, %v5179_v41  ;;  %v5180_v12 = vmul.f32 0.03125, %v5178_v34 }
 0xb14   : > { %v3068_v51 = vpop.xlane.xlu1 %3067 }
 0xb15   : > { %v5182_v36 = vsub.f32 %v5172_v18, %v5180_v12  ;;  %v3072_v30 = vmul.f32 0.03125, %v3068_v51  ;;  %v5183_v16 = vmul.f32 %v5181_v54, %v5181_v54  ;;  %v3101_v18 = vrot.slane %v6628_v4, %v7516_v15 }
 0xb17   : > { %v3074_v38 = vsub.f32 %v3064_v62, %v3072_v30  ;;  %v5185_v39 = vsel %vm764_vm1, %v5183_v16, 0.0  ;;  %v5184_v35 = vmul.f32 %v5182_v36, %v5182_v36 }
 0xb18   : > { %5186 = vadd.xlane.f32.xlu1 %v5185_v39  ;;  %v3071_v32 = vpop.xlane.xlu1 %3070 }
 0xb19   : > { %v3073_v24 = vmul.f32 0.03125, %v3071_v32  ;;  %v3076_v26 = vmul.f32 %v3074_v38, %v3074_v38  ;;  %v5188_v25 = vsel %vm764_vm1, %v5184_v35, 0.0 }
 0xb1b   : > { %v3075_v28 = vsub.f32 %v3065_v46, %v3073_v24  ;;  %v3078_v59 = vsel %vm764_vm1, %v3076_v26, 0.0 }
 0xb1c   : > { %5189 = vadd.xlane.f32.xlu1 %v5188_v25  ;;  %3079 = vadd.xlane.f32.xlu0 %v3078_v59 }
 0xb1d   : > { %v3077_v31 = vmul.f32 %v3075_v28, %v3075_v28 }
 0xb1f   : > { %v3081_v37 = vsel %vm764_vm1, %v3077_v31, 0.0 }
 0xb20   : > { %3082 = vadd.xlane.f32.xlu1 %v3081_v37 }
 0xba5   : > { %v5187_v40 = vpop.xlane.xlu1 %5186 }
 0xba6   : > { %v5191_v57 = vmul.f32 0.03125, %v5187_v40 }
 0xba8   : > { %v5193_v14 = vadd.f32 1e-05, %v5191_v57 }
 0xba9   : > { %v5190_v9 = vpop.xlane.xlu1 %5189  ;;  %v3080_v7 = vpop.xlane.xlu0 %3079 }
 0xbaa   : > { %6608 = vrsqrt.f32 %v5193_v14  ;;  %v5192_v8 = vmul.f32 0.03125, %v5190_v9  ;;  %v3084_v21 = vmul.f32 0.03125, %v3080_v7 }
 0xbac   : > { %v5194_v42 = vadd.f32 1e-05, %v5192_v8  ;;  %v3086_v13 = vadd.f32 1e-05, %v3084_v21 }
 0xbad   : > { %v3083_v53 = vpop.xlane.xlu1 %3082 }
 0xbae   : > { %6610 = vrsqrt.f32 %v5194_v42  ;;  %v3085_v52 = vmul.f32 0.03125, %v3083_v53 }
 0xbaf   : > { %6612 = vrsqrt.f32 %v3086_v13 }
 0xbb0   : > { %v3087_v60 = vadd.f32 1e-05, %v3085_v52 }
 0xbb2   : > { %6614 = vrsqrt.f32 %v3087_v60 }
 0xbb4   : > { %v6609_v22 = vpop.eup %6608 }
 0xbb5   : > { %v5197_v48 = vmul.f32 %v6609_v22, %v5181_v54 }
 0xbb7   : > { %v5203_v29 = vmul.f32 %v5202_v43, %v5197_v48 }
 0xbb8   : > { %v6611_v20 = vpop.eup %6610 }
 0xbb9   : > { %v5198_v5 = vmul.f32 %v6611_v20, %v5182_v36  ;;  %v5209_v55 = vadd.f32 %v5208_v0, %v5203_v29  ;;  %v6613_v17 = vpop.eup %6612 }
 0xbba   : > { %v3090_v61 = vmul.f32 %v6613_v17, %v3074_v38 }
 0xbbb   : > { %v5204_v47 = vmul.f32 %v5202_v43, %v5198_v5 }
 0xbbc   : > { %v6615_v3 = vpop.eup %6614  ;;  %v3096_v58 = vmul.f32 %v3095_v63, %v3090_v61 }
 0xbbd   : > { %v5210_v27 = vadd.f32 %v5208_v0, %v5204_v47  ;;  %v3091_v33 = vmul.f32 %v6615_v3, %v3075_v28 }
 0xbbe   : > { %v3102_v56 = vadd.f32 %v3101_v18, %v3096_v58 }
 0xbbf   : > { %v6385_v23 = vpack.i.bf16 %v5210_v27, %v5209_v55  ;;  %v3097_v62 = vmul.f32 %v3095_v63, %v3091_v33 }
 0xbc1   : > { %6386 = vrot.lane.b32.xlu0 %v6385_v23, %s6650_s23  ;;  %v3103_v49 = vadd.f32 %v3101_v18, %v3097_v62 }
 0xc33   : > { %v6387_v6 = vpop.permute.xlu0 %6386 }
 0xc34   : > { %v6389_v46 = vunpack.i.h.bf16 %v6387_v6  ;;  %v6388_v10 = vunpack.i.l.bf16 %v6387_v6 }
 0xc36   : > { %v5219_v41 = vsel %vm764_vm1, %v3102_v56, %v6388_v10  ;;  %v5220_v34 = vsel %vm764_vm1, %v3103_v49, %v6389_v46 }
 0xc37   : > { %v5221_v54 = vpack.c.bf16 %v5220_v34, %v5219_v41 }
 0xc39   : > { %6326 = vmatmul.mubr.msk.bf16.vlgmr.msra.gmra.mrb[104].mxu1 %vm3019_vm6, %v5221_v54 }
 0xd0c   : > { %v5295_v12 = vpop.f32.mrb[104].mxu1 }
 0xd0d   : > { %v5296_v51 = vadd.f32 %v5295_v12, %v5233_v45  ;;  %v6327_v36 = vpop.f32.mrb[105].mxu1 }
 0xd0e   : > { %v5298_v30 = vpop.f32.mrb[106].mxu1 }
 0xd0f   : > { %v5792_v15 = vmul.f32 -1.442695, %v5296_v51  ;;  %v5299_v16 = vadd.f32 %v5298_v30, %v5233_v45  ;;  %v6328_v38 = vpop.f32.mrb[107].mxu1 }
 0xd11   : > { %6616 = vpow2.f32 %v5792_v15  ;;  %v5793_v39 = vmul.f32 -1.442695, %v5299_v16 }
 0xd13   : > { %6618 = vpow2.f32 %v5793_v39 }
 0xd1b   : > { %v6617_v35 = vpop.eup %6616 }
 0xd1c   : > { %v5308_v32 = vadd.f32 1.0, %v6617_v35 }
 0xd1d   : > { %v6619_v24 = vpop.eup %6618 }
 0xd1e   : > { %6620 = vrcp.f32 %v5308_v32  ;;  %v5309_v26 = vadd.f32 1.0, %v6619_v24 }
 0xd20   : > { %6622 = vrcp.f32 %v5309_v26 }
 0xd28   : > { %v6621_v28 = vpop.eup %6620 }
 0xd29   : > { %v5314_v25 = vsub.f32 1.0, %v6621_v28  ;;  %v5318_v31 = vmul.f32 %v6621_v28, %v5209_v55 }
 0xd2a   : > { %v6623_v19 = vpop.eup %6622 }
 0xd2b   : > { %v5316_v59 = vmul.f32 %v5314_v25, %v3102_v56  ;;  %v5315_v37 = vsub.f32 1.0, %v6623_v19  ;;  %v5319_v11 = vmul.f32 %v6623_v19, %v5210_v27 }
 0xd2d   : > { %v5320_v1 = vadd.f32 %v5318_v31, %v5316_v59  ;;  %v5317_v50 = vmul.f32 %v5315_v37, %v3103_v49 }
 0xd2f   : > { %5322 = vst.msk [vmem:[%s732_s19] sm:$0xff] %vm764_vm1, %v5320_v1  ;;  %v5321_v40 = vadd.f32 %v5319_v11, %v5317_v50 }
 0xd31   : > { %5323 = vst.msk [vmem:[%s732_s19 + $0x8] sm:$0xff] %vm764_vm1, %v5321_v40 }
 0xd32 PF: > { %s7712_s25 = sld [smem:[#allocation2_spill]] }
 0xd38   : > { %s24_s29 = sadd.s32 1, %s7712_s25  }
 0xd39   : > { %p21_p5 = scmp.ge.s32.totalorder %s24_s29, 4  }
 0xd3b   :  { %23 = sbr.rel (!%p21_p5) target bundleno = 1 (0x1), region = 145 }

</bundles_post_ra>
